<compile_context>
chip_gen: v6e
topology: v6e:2x2x1
jax: 0.10.0
libtpu: 0.0.40
codegen_flags: <defaults>
</compile_context>

<pallas_src>
import math

import jax
import jax.numpy as jnp
from jax.experimental import pallas as pl
from jax.experimental.pallas import tpu as pltpu

# ------------------------- model hyper-parameters ---------------------------
B = 2                      # batch
S = 8                      # number of gene sub-vectors (sequence length)
D_MODEL = 32               # d_model
NHEAD = 4                  # attention heads
DIM_FF = 2 * D_MODEL       # transformer feed-forward width (assumed 2*d_model)
NUM_GENES = S * D_MODEL    # 256
NUM_CELL_TYPES = 10
LOGITS_PAD = 128           # lane-dense padded classifier width
H1, H2 = 512, 256          # GFUP hidden_dims
LEAKY_SLOPE = 0.01
LN_EPS = 1e-5


# ======================= fully fused forward kernel =========================
def fused_kernel(x_ref, pe_ref,
                 wqkv_ref, bqkv_ref, wo_ref, bo_ref,
                 ln1g_ref, ln1b_ref, w1_ref, b1_ref, w2_ref, b2_ref,
                 ln2g_ref, ln2b_ref,
                 we1_ref, be1_ref, we2_ref, be2_ref,
                 wd1_ref, bd1_ref, wd2_ref, bd2_ref,
                 wa_ref, ba_ref, wc_ref, bc_ref,
                 logits_ref, gf_ref, at_ref):
    bs = x_ref.shape[0]                 # B * S
    bnum = bs // S                      # B
    hd = D_MODEL // NHEAD
    scale = 1.0 / math.sqrt(hd)

    # ---- positional encoding (added once for the whole batch) ----
    xp = x_ref[...] + pe_ref[...]                                    # (B*S, D)

    # ---- multi-head self-attention (heads batched over B) ----
    qkv = jnp.dot(xp, wqkv_ref[...],
                  preferred_element_type=jnp.float32) + bqkv_ref[...]  # (B*S, 3D)
    q = qkv[:, 0 * D_MODEL:1 * D_MODEL].reshape(bnum, S, D_MODEL)
    k = qkv[:, 1 * D_MODEL:2 * D_MODEL].reshape(bnum, S, D_MODEL)
    v = qkv[:, 2 * D_MODEL:3 * D_MODEL].reshape(bnum, S, D_MODEL)

    heads = []
    for h in range(NHEAD):                                           # unrolled
        qh = q[:, :, h * hd:(h + 1) * hd]
        kh = k[:, :, h * hd:(h + 1) * hd]
        vh = v[:, :, h * hd:(h + 1) * hd]
        s = jnp.einsum('bqd,bkd->bqk', qh, kh,
                       preferred_element_type=jnp.float32) * scale   # (B,S,S)
        s = s - jnp.max(s, axis=-1, keepdims=True)
        e = jnp.exp(s)
        p = e * pl.reciprocal(jnp.sum(e, axis=-1, keepdims=True), approx=True)
        heads.append(jnp.einsum('bqk,bkd->bqd', p, vh,
                                preferred_element_type=jnp.float32))
    attn = jnp.concatenate(heads, axis=-1).reshape(bs, D_MODEL)      # (B*S, D)
    attn = jnp.dot(attn, wo_ref[...],
                   preferred_element_type=jnp.float32) + bo_ref[...]

    # ---- residual + layernorm 1 (post-norm) ----
    h1 = xp + attn
    mu = jnp.mean(h1, axis=-1, keepdims=True)
    var = jnp.mean(jnp.square(h1 - mu), axis=-1, keepdims=True)
    h1 = (h1 - mu) * jax.lax.rsqrt(var + LN_EPS) * ln1g_ref[...] + ln1b_ref[...]

    # ---- feed-forward (relu) ----
    f = jnp.dot(h1, w1_ref[...], preferred_element_type=jnp.float32) + b1_ref[...]
    f = jnp.maximum(f, 0.0)
    f = jnp.dot(f, w2_ref[...], preferred_element_type=jnp.float32) + b2_ref[...]

    # ---- residual + layernorm 2 ----
    h2 = h1 + f
    mu2 = jnp.mean(h2, axis=-1, keepdims=True)
    var2 = jnp.mean(jnp.square(h2 - mu2), axis=-1, keepdims=True)
    h2 = (h2 - mu2) * jax.lax.rsqrt(var2 + LN_EPS) * ln2g_ref[...] + ln2b_ref[...]

    # ---- flatten tokens -> (B, NUM_GENES) gene vector, in-register ----
    h3 = h2.reshape(bnum, S, D_MODEL)
    h_flat = jnp.concatenate([h3[:, t, :] for t in range(S)], axis=-1)  # (B, 256)

    # ---- GeneFlowUNetPredictor (U-Net MLP; dropout = identity in eval) ----
    def leaky(y):
        return jnp.where(y >= 0.0, y, LEAKY_SLOPE * y)

    e1 = leaky(jnp.dot(h_flat, we1_ref[...],
                       preferred_element_type=jnp.float32) + be1_ref[...])   # (B,512)
    e2 = leaky(jnp.dot(e1, we2_ref[...],
                       preferred_element_type=jnp.float32) + be2_ref[...])   # (B,256)
    d1 = leaky(jnp.dot(e2, wd1_ref[...],
                       preferred_element_type=jnp.float32) + bd1_ref[...]) + e1
    gf = jnp.dot(d1, wd2_ref[...],
                 preferred_element_type=jnp.float32) + bd2_ref[...]          # (B,256)

    # gene-attention softmax head
    al = jnp.dot(gf, wa_ref[...],
                 preferred_element_type=jnp.float32) + ba_ref[...]
    al = al - jnp.max(al, axis=-1, keepdims=True)
    ea = jnp.exp(al)
    at = ea * pl.reciprocal(jnp.sum(ea, axis=-1, keepdims=True), approx=True)

    # attention-gated classifier (padded to 128 lanes -> unmasked stores)
    logits = jnp.dot(gf * at, wc_ref[...],
                     preferred_element_type=jnp.float32) + bc_ref[...]       # (B,128)

    logits_ref[...] = logits.astype(logits_ref.dtype)
    gf_ref[...] = gf.astype(gf_ref.dtype)
    at_ref[...] = at.astype(at_ref.dtype)


# ============================ full model ====================================
def model_forward(x, p):
    bnum = x.shape[0]
    x2 = x.reshape(bnum * S, D_MODEL)                 # layout-only, outside kernel
    pe2 = jnp.tile(p["pe"], (bnum, 1))                # (B*S, D), 2 KiB

    vmem_spec = pl.BlockSpec(memory_space=pltpu.MemorySpace.VMEM)
    inputs = (
        x2, pe2,
        p["wqkv"], p["bqkv"], p["wo"], p["bo"],
        p["ln1_g"], p["ln1_b"], p["w_ff1"], p["b_ff1"], p["w_ff2"], p["b_ff2"],
        p["ln2_g"], p["ln2_b"],
        p["w_e1"], p["b_e1"], p["w_e2"], p["b_e2"],
        p["w_d1"], p["b_d1"], p["w_d2"], p["b_d2"],
        p["w_attn"], p["b_attn"], p["w_cls_pad"], p["b_cls_pad"],
    )

    out_shape = (
        jax.ShapeDtypeStruct((bnum, LOGITS_PAD), jnp.float32),   # padded logits
        jax.ShapeDtypeStruct((bnum, NUM_GENES), jnp.float32),    # gene_features
        jax.ShapeDtypeStruct((bnum, NUM_GENES), jnp.float32),    # attentions
    )

    logits_pad, gene_features, attentions = pl.pallas_call(
        fused_kernel,
        out_shape=out_shape,
        in_specs=[vmem_spec] * len(inputs),
        out_specs=(vmem_spec, vmem_spec, vmem_spec),
    )(*inputs)

    logits = logits_pad[:, :NUM_CELL_TYPES]
    return logits, gene_features, attentions


# ========================== parameter init ==================================
def sinusoidal_pe(seq_len, dim):
    pos = jnp.arange(seq_len, dtype=jnp.float32)[:, None]
    i = jnp.arange(dim, dtype=jnp.float32)[None, :]
    angle = pos / jnp.power(10000.0, (2.0 * jnp.floor(i / 2.0)) / dim)
    return jnp.where(i % 2 == 0, jnp.sin(angle), jnp.cos(angle)).astype(
        jnp.float32)


def init_params(key):
    keys = iter(jax.random.split(key, 16))

    def dense(k, fan_in, fan_out):
        return (jax.random.normal(k, (fan_in, fan_out), jnp.float32)
                * (1.0 / math.sqrt(fan_in)))

    w_cls = dense(key, NUM_GENES, NUM_CELL_TYPES)
    b_cls = jnp.zeros((1, NUM_CELL_TYPES), jnp.float32)
    # zero-pad the classifier head to a lane-dense width ONCE (sliced back in
    # the wrapper) so the kernel never emits masked partial stores.
    w_cls_pad = jnp.zeros((NUM_GENES, LOGITS_PAD), jnp.float32)
    w_cls_pad = w_cls_pad.at[:, :NUM_CELL_TYPES].set(w_cls)
    b_cls_pad = jnp.zeros((1, LOGITS_PAD), jnp.float32)
    b_cls_pad = b_cls_pad.at[:, :NUM_CELL_TYPES].set(b_cls)

    p = {
        "pe": sinusoidal_pe(S, D_MODEL),
        # transformer encoder layer
        "wqkv": dense(next(keys), D_MODEL, 3 * D_MODEL),
        "bqkv": jnp.zeros((1, 3 * D_MODEL), jnp.float32),
        "wo": dense(next(keys), D_MODEL, D_MODEL),
        "bo": jnp.zeros((1, D_MODEL), jnp.float32),
        "ln1_g": jnp.ones((1, D_MODEL), jnp.float32),
        "ln1_b": jnp.zeros((1, D_MODEL), jnp.float32),
        "w_ff1": dense(next(keys), D_MODEL, DIM_FF),
        "b_ff1": jnp.zeros((1, DIM_FF), jnp.float32),
        "w_ff2": dense(next(keys), DIM_FF, D_MODEL),
        "b_ff2": jnp.zeros((1, D_MODEL), jnp.float32),
        "ln2_g": jnp.ones((1, D_MODEL), jnp.float32),
        "ln2_b": jnp.zeros((1, D_MODEL), jnp.float32),
        # GFUP
        "w_e1": dense(next(keys), NUM_GENES, H1),
        "b_e1": jnp.zeros((1, H1), jnp.float32),
        "w_e2": dense(next(keys), H1, H2),
        "b_e2": jnp.zeros((1, H2), jnp.float32),
        "w_d1": dense(next(keys), H2, H1),
        "b_d1": jnp.zeros((1, H1), jnp.float32),
        "w_d2": dense(next(keys), H1, NUM_GENES),
        "b_d2": jnp.zeros((1, NUM_GENES), jnp.float32),
        "w_attn": dense(next(keys), NUM_GENES, NUM_GENES),
        "b_attn": jnp.zeros((1, NUM_GENES), jnp.float32),
        "w_cls_pad": w_cls_pad,
        "b_cls_pad": b_cls_pad,
    }
    return p


# ================================ main ======================================
if __name__ == "__main__":
    root = jax.random.PRNGKey(0)
    kx, kp = jax.random.split(root)

    x = jax.random.normal(kx, (B, S, D_MODEL), jnp.float32)
    params = init_params(kp)

    logits, gene_features, attentions = jax.jit(model_forward)(x, params)
    jax.block_until_ready((logits, gene_features, attentions))

    assert logits.shape == (B, NUM_CELL_TYPES)
    assert gene_features.shape == (B, NUM_GENES)
    assert attentions.shape == (B, NUM_GENES)
    assert bool(jnp.all(jnp.isfinite(logits)))
    assert bool(jnp.all(jnp.isfinite(gene_features)))
    # attention rows are softmax-normalized (approx reciprocal -> loose tol)
    assert bool(jnp.allclose(jnp.sum(attentions, axis=-1), 1.0, atol=1e-2))

    print("KERNEL_OK")
</pallas_src>

<mosaic_0001>
module attributes {stable_mosaic.version = 11 : i64} {
  func.func @fused_kernel(%arg0: memref<16x32xf32, #tpu.memory_space<vmem>>, %arg1: memref<16x32xf32, #tpu.memory_space<vmem>>, %arg2: memref<32x96xf32, #tpu.memory_space<vmem>>, %arg3: memref<1x96xf32, #tpu.memory_space<vmem>>, %arg4: memref<32x32xf32, #tpu.memory_space<vmem>>, %arg5: memref<1x32xf32, #tpu.memory_space<vmem>>, %arg6: memref<1x32xf32, #tpu.memory_space<vmem>>, %arg7: memref<1x32xf32, #tpu.memory_space<vmem>>, %arg8: memref<32x64xf32, #tpu.memory_space<vmem>>, %arg9: memref<1x64xf32, #tpu.memory_space<vmem>>, %arg10: memref<64x32xf32, #tpu.memory_space<vmem>>, %arg11: memref<1x32xf32, #tpu.memory_space<vmem>>, %arg12: memref<1x32xf32, #tpu.memory_space<vmem>>, %arg13: memref<1x32xf32, #tpu.memory_space<vmem>>, %arg14: memref<256x512xf32, #tpu.memory_space<vmem>>, %arg15: memref<1x512xf32, #tpu.memory_space<vmem>>, %arg16: memref<512x256xf32, #tpu.memory_space<vmem>>, %arg17: memref<1x256xf32, #tpu.memory_space<vmem>>, %arg18: memref<256x512xf32, #tpu.memory_space<vmem>>, %arg19: memref<1x512xf32, #tpu.memory_space<vmem>>, %arg20: memref<512x256xf32, #tpu.memory_space<vmem>>, %arg21: memref<1x256xf32, #tpu.memory_space<vmem>>, %arg22: memref<256x256xf32, #tpu.memory_space<vmem>>, %arg23: memref<1x256xf32, #tpu.memory_space<vmem>>, %arg24: memref<256x128xf32, #tpu.memory_space<vmem>>, %arg25: memref<1x128xf32, #tpu.memory_space<vmem>>, %arg26: memref<2x128xf32, #tpu.memory_space<vmem>>, %arg27: memref<2x256xf32, #tpu.memory_space<vmem>>, %arg28: memref<2x256xf32, #tpu.memory_space<vmem>>) attributes {dimension_semantics = [], scalar_prefetch = 0 : i64, scratch_operands = 0 : i64, tpu.core_type = #tpu.core_type<tc>} {
    %c0 = arith.constant 0 : index
    %c0_0 = arith.constant 0 : index
    %0 = vector.load %arg0[%c0, %c0_0] : memref<16x32xf32, #tpu.memory_space<vmem>>, vector<16x32xf32>
    %c0_1 = arith.constant 0 : index
    %c0_2 = arith.constant 0 : index
    %1 = vector.load %arg1[%c0_1, %c0_2] : memref<16x32xf32, #tpu.memory_space<vmem>>, vector<16x32xf32>
    %2 = arith.addf %0, %1 : vector<16x32xf32>
    %c0_3 = arith.constant 0 : index
    %c0_4 = arith.constant 0 : index
    %3 = vector.load %arg2[%c0_3, %c0_4] : memref<32x96xf32, #tpu.memory_space<vmem>>, vector<32x96xf32>
    %cst = arith.constant dense<0.000000e+00> : vector<16x96xf32>
    %4 = tpu.matmul %2, %3, %cst {dimension_numbers = #tpu.dot_dimension_numbers<[1], [0], [0], [1], [0, 0, 1, 1], [], []>} : vector<16x32xf32>, vector<32x96xf32>, vector<16x96xf32> -> vector<16x96xf32>
    %c0_5 = arith.constant 0 : index
    %c0_6 = arith.constant 0 : index
    %5 = vector.load %arg3[%c0_5, %c0_6] : memref<1x96xf32, #tpu.memory_space<vmem>>, vector<1x96xf32>
    %6 = vector.broadcast %5 : vector<1x96xf32> to vector<16x96xf32>
    %7 = arith.addf %4, %6 : vector<16x96xf32>
    %8 = vector.extract_strided_slice %7 {offsets = [0, 0], sizes = [16, 32], strides = [1, 1]} : vector<16x96xf32> to vector<16x32xf32>
    %9 = vector.shape_cast %8 : vector<16x32xf32> to vector<2x8x32xf32>
    %10 = vector.extract_strided_slice %7 {offsets = [0, 32], sizes = [16, 32], strides = [1, 1]} : vector<16x96xf32> to vector<16x32xf32>
    %11 = vector.shape_cast %10 : vector<16x32xf32> to vector<2x8x32xf32>
    %12 = vector.extract_strided_slice %7 {offsets = [0, 64], sizes = [16, 32], strides = [1, 1]} : vector<16x96xf32> to vector<16x32xf32>
    %13 = vector.shape_cast %12 : vector<16x32xf32> to vector<2x8x32xf32>
    %14 = vector.extract_strided_slice %9 {offsets = [0, 0, 0], sizes = [2, 8, 8], strides = [1, 1, 1]} : vector<2x8x32xf32> to vector<2x8x8xf32>
    %15 = vector.extract_strided_slice %11 {offsets = [0, 0, 0], sizes = [2, 8, 8], strides = [1, 1, 1]} : vector<2x8x32xf32> to vector<2x8x8xf32>
    %16 = vector.extract_strided_slice %13 {offsets = [0, 0, 0], sizes = [2, 8, 8], strides = [1, 1, 1]} : vector<2x8x32xf32> to vector<2x8x8xf32>
    "tpu.trace_start"() <{level = 10 : i32, message = "bqd,bkd->bqk"}> : () -> ()
    %cst_7 = arith.constant dense<0.000000e+00> : vector<2x8x8xf32>
    %17 = tpu.matmul %14, %15, %cst_7 {dimension_numbers = #tpu.dot_dimension_numbers<[2], [2], [1], [1], [0, 0, 0, 1, 1, 1], [0], [0]>} : vector<2x8x8xf32>, vector<2x8x8xf32>, vector<2x8x8xf32> -> vector<2x8x8xf32>
    "tpu.trace_stop"() : () -> ()
    %cst_8 = arith.constant 0.353553385 : f32
    %18 = vector.broadcast %cst_8 : f32 to vector<2x8x8xf32>
    %19 = arith.mulf %17, %18 : vector<2x8x8xf32>
    %cst_9 = arith.constant dense<0xFF800000> : vector<2x8xf32>
    %20 = vector.multi_reduction <maximumf>, %19, %cst_9 [2] : vector<2x8x8xf32> to vector<2x8xf32>
    %21 = vector.shape_cast %20 : vector<2x8xf32> to vector<2x8x1xf32>
    %22 = vector.broadcast %21 : vector<2x8x1xf32> to vector<2x8x8xf32>
    %23 = arith.subf %19, %22 : vector<2x8x8xf32>
    %24 = math.exp %23 : vector<2x8x8xf32>
    %cst_10 = arith.constant dense<0.000000e+00> : vector<2x8xf32>
    %25 = vector.multi_reduction <add>, %24, %cst_10 [2] : vector<2x8x8xf32> to vector<2x8xf32>
    %26 = vector.shape_cast %25 : vector<2x8xf32> to vector<2x8x1xf32>
    %27 = tpu.reciprocal %26 {approx = true} : vector<2x8x1xf32> -> vector<2x8x1xf32>
    %28 = vector.broadcast %27 : vector<2x8x1xf32> to vector<2x8x8xf32>
    %29 = arith.mulf %24, %28 : vector<2x8x8xf32>
    "tpu.trace_start"() <{level = 10 : i32, message = "bqk,bkd->bqd"}> : () -> ()
    %cst_11 = arith.constant dense<0.000000e+00> : vector<2x8x8xf32>
    %30 = tpu.matmul %29, %16, %cst_11 {dimension_numbers = #tpu.dot_dimension_numbers<[2], [1], [1], [2], [0, 0, 0, 1, 1, 2], [0], [0]>} : vector<2x8x8xf32>, vector<2x8x8xf32>, vector<2x8x8xf32> -> vector<2x8x8xf32>
    "tpu.trace_stop"() : () -> ()
    %31 = vector.extract_strided_slice %9 {offsets = [0, 0, 8], sizes = [2, 8, 8], strides = [1, 1, 1]} : vector<2x8x32xf32> to vector<2x8x8xf32>
    %32 = vector.extract_strided_slice %11 {offsets = [0, 0, 8], sizes = [2, 8, 8], strides = [1, 1, 1]} : vector<2x8x32xf32> to vector<2x8x8xf32>
    %33 = vector.extract_strided_slice %13 {offsets = [0, 0, 8], sizes = [2, 8, 8], strides = [1, 1, 1]} : vector<2x8x32xf32> to vector<2x8x8xf32>
    "tpu.trace_start"() <{level = 10 : i32, message = "bqd,bkd->bqk"}> : () -> ()
    %cst_12 = arith.constant dense<0.000000e+00> : vector<2x8x8xf32>
    %34 = tpu.matmul %31, %32, %cst_12 {dimension_numbers = #tpu.dot_dimension_numbers<[2], [2], [1], [1], [0, 0, 0, 1, 1, 1], [0], [0]>} : vector<2x8x8xf32>, vector<2x8x8xf32>, vector<2x8x8xf32> -> vector<2x8x8xf32>
    "tpu.trace_stop"() : () -> ()
    %cst_13 = arith.constant 0.353553385 : f32
    %35 = vector.broadcast %cst_13 : f32 to vector<2x8x8xf32>
    %36 = arith.mulf %34, %35 : vector<2x8x8xf32>
    %cst_14 = arith.constant dense<0xFF800000> : vector<2x8xf32>
    %37 = vector.multi_reduction <maximumf>, %36, %cst_14 [2] : vector<2x8x8xf32> to vector<2x8xf32>
    %38 = vector.shape_cast %37 : vector<2x8xf32> to vector<2x8x1xf32>
    %39 = vector.broadcast %38 : vector<2x8x1xf32> to vector<2x8x8xf32>
    %40 = arith.subf %36, %39 : vector<2x8x8xf32>
    %41 = math.exp %40 : vector<2x8x8xf32>
    %cst_15 = arith.constant dense<0.000000e+00> : vector<2x8xf32>
    %42 = vector.multi_reduction <add>, %41, %cst_15 [2] : vector<2x8x8xf32> to vector<2x8xf32>
    %43 = vector.shape_cast %42 : vector<2x8xf32> to vector<2x8x1xf32>
    %44 = tpu.reciprocal %43 {approx = true} : vector<2x8x1xf32> -> vector<2x8x1xf32>
    %45 = vector.broadcast %44 : vector<2x8x1xf32> to vector<2x8x8xf32>
    %46 = arith.mulf %41, %45 : vector<2x8x8xf32>
    "tpu.trace_start"() <{level = 10 : i32, message = "bqk,bkd->bqd"}> : () -> ()
    %cst_16 = arith.constant dense<0.000000e+00> : vector<2x8x8xf32>
    %47 = tpu.matmul %46, %33, %cst_16 {dimension_numbers = #tpu.dot_dimension_numbers<[2], [1], [1], [2], [0, 0, 0, 1, 1, 2], [0], [0]>} : vector<2x8x8xf32>, vector<2x8x8xf32>, vector<2x8x8xf32> -> vector<2x8x8xf32>
    "tpu.trace_stop"() : () -> ()
    %48 = vector.extract_strided_slice %9 {offsets = [0, 0, 16], sizes = [2, 8, 8], strides = [1, 1, 1]} : vector<2x8x32xf32> to vector<2x8x8xf32>
    %49 = vector.extract_strided_slice %11 {offsets = [0, 0, 16], sizes = [2, 8, 8], strides = [1, 1, 1]} : vector<2x8x32xf32> to vector<2x8x8xf32>
    %50 = vector.extract_strided_slice %13 {offsets = [0, 0, 16], sizes = [2, 8, 8], strides = [1, 1, 1]} : vector<2x8x32xf32> to vector<2x8x8xf32>
    "tpu.trace_start"() <{level = 10 : i32, message = "bqd,bkd->bqk"}> : () -> ()
    %cst_17 = arith.constant dense<0.000000e+00> : vector<2x8x8xf32>
    %51 = tpu.matmul %48, %49, %cst_17 {dimension_numbers = #tpu.dot_dimension_numbers<[2], [2], [1], [1], [0, 0, 0, 1, 1, 1], [0], [0]>} : vector<2x8x8xf32>, vector<2x8x8xf32>, vector<2x8x8xf32> -> vector<2x8x8xf32>
    "tpu.trace_stop"() : () -> ()
    %cst_18 = arith.constant 0.353553385 : f32
    %52 = vector.broadcast %cst_18 : f32 to vector<2x8x8xf32>
    %53 = arith.mulf %51, %52 : vector<2x8x8xf32>
    %cst_19 = arith.constant dense<0xFF800000> : vector<2x8xf32>
    %54 = vector.multi_reduction <maximumf>, %53, %cst_19 [2] : vector<2x8x8xf32> to vector<2x8xf32>
    %55 = vector.shape_cast %54 : vector<2x8xf32> to vector<2x8x1xf32>
    %56 = vector.broadcast %55 : vector<2x8x1xf32> to vector<2x8x8xf32>
    %57 = arith.subf %53, %56 : vector<2x8x8xf32>
    %58 = math.exp %57 : vector<2x8x8xf32>
    %cst_20 = arith.constant dense<0.000000e+00> : vector<2x8xf32>
    %59 = vector.multi_reduction <add>, %58, %cst_20 [2] : vector<2x8x8xf32> to vector<2x8xf32>
    %60 = vector.shape_cast %59 : vector<2x8xf32> to vector<2x8x1xf32>
    %61 = tpu.reciprocal %60 {approx = true} : vector<2x8x1xf32> -> vector<2x8x1xf32>
    %62 = vector.broadcast %61 : vector<2x8x1xf32> to vector<2x8x8xf32>
    %63 = arith.mulf %58, %62 : vector<2x8x8xf32>
    "tpu.trace_start"() <{level = 10 : i32, message = "bqk,bkd->bqd"}> : () -> ()
    %cst_21 = arith.constant dense<0.000000e+00> : vector<2x8x8xf32>
    %64 = tpu.matmul %63, %50, %cst_21 {dimension_numbers = #tpu.dot_dimension_numbers<[2], [1], [1], [2], [0, 0, 0, 1, 1, 2], [0], [0]>} : vector<2x8x8xf32>, vector<2x8x8xf32>, vector<2x8x8xf32> -> vector<2x8x8xf32>
    "tpu.trace_stop"() : () -> ()
    %65 = vector.extract_strided_slice %9 {offsets = [0, 0, 24], sizes = [2, 8, 8], strides = [1, 1, 1]} : vector<2x8x32xf32> to vector<2x8x8xf32>
    %66 = vector.extract_strided_slice %11 {offsets = [0, 0, 24], sizes = [2, 8, 8], strides = [1, 1, 1]} : vector<2x8x32xf32> to vector<2x8x8xf32>
    %67 = vector.extract_strided_slice %13 {offsets = [0, 0, 24], sizes = [2, 8, 8], strides = [1, 1, 1]} : vector<2x8x32xf32> to vector<2x8x8xf32>
    "tpu.trace_start"() <{level = 10 : i32, message = "bqd,bkd->bqk"}> : () -> ()
    %cst_22 = arith.constant dense<0.000000e+00> : vector<2x8x8xf32>
    %68 = tpu.matmul %65, %66, %cst_22 {dimension_numbers = #tpu.dot_dimension_numbers<[2], [2], [1], [1], [0, 0, 0, 1, 1, 1], [0], [0]>} : vector<2x8x8xf32>, vector<2x8x8xf32>, vector<2x8x8xf32> -> vector<2x8x8xf32>
    "tpu.trace_stop"() : () -> ()
    %cst_23 = arith.constant 0.353553385 : f32
    %69 = vector.broadcast %cst_23 : f32 to vector<2x8x8xf32>
    %70 = arith.mulf %68, %69 : vector<2x8x8xf32>
    %cst_24 = arith.constant dense<0xFF800000> : vector<2x8xf32>
    %71 = vector.multi_reduction <maximumf>, %70, %cst_24 [2] : vector<2x8x8xf32> to vector<2x8xf32>
    %72 = vector.shape_cast %71 : vector<2x8xf32> to vector<2x8x1xf32>
    %73 = vector.broadcast %72 : vector<2x8x1xf32> to vector<2x8x8xf32>
    %74 = arith.subf %70, %73 : vector<2x8x8xf32>
    %75 = math.exp %74 : vector<2x8x8xf32>
    %cst_25 = arith.constant dense<0.000000e+00> : vector<2x8xf32>
    %76 = vector.multi_reduction <add>, %75, %cst_25 [2] : vector<2x8x8xf32> to vector<2x8xf32>
    %77 = vector.shape_cast %76 : vector<2x8xf32> to vector<2x8x1xf32>
    %78 = tpu.reciprocal %77 {approx = true} : vector<2x8x1xf32> -> vector<2x8x1xf32>
    %79 = vector.broadcast %78 : vector<2x8x1xf32> to vector<2x8x8xf32>
    %80 = arith.mulf %75, %79 : vector<2x8x8xf32>
    "tpu.trace_start"() <{level = 10 : i32, message = "bqk,bkd->bqd"}> : () -> ()
    %cst_26 = arith.constant dense<0.000000e+00> : vector<2x8x8xf32>
    %81 = tpu.matmul %80, %67, %cst_26 {dimension_numbers = #tpu.dot_dimension_numbers<[2], [1], [1], [2], [0, 0, 0, 1, 1, 2], [0], [0]>} : vector<2x8x8xf32>, vector<2x8x8xf32>, vector<2x8x8xf32> -> vector<2x8x8xf32>
    "tpu.trace_stop"() : () -> ()
    %82 = tpu.concatenate %30, %47, %64, %81 in 2 : vector<2x8x8xf32>, vector<2x8x8xf32>, vector<2x8x8xf32>, vector<2x8x8xf32> -> vector<2x8x32xf32>
    %83 = vector.shape_cast %82 : vector<2x8x32xf32> to vector<16x32xf32>
    %c0_27 = arith.constant 0 : index
    %c0_28 = arith.constant 0 : index
    %84 = vector.load %arg4[%c0_27, %c0_28] : memref<32x32xf32, #tpu.memory_space<vmem>>, vector<32x32xf32>
    %cst_29 = arith.constant dense<0.000000e+00> : vector<16x32xf32>
    %85 = tpu.matmul %83, %84, %cst_29 {dimension_numbers = #tpu.dot_dimension_numbers<[1], [0], [0], [1], [0, 0, 1, 1], [], []>} : vector<16x32xf32>, vector<32x32xf32>, vector<16x32xf32> -> vector<16x32xf32>
    %c0_30 = arith.constant 0 : index
    %c0_31 = arith.constant 0 : index
    %86 = vector.load %arg5[%c0_30, %c0_31] : memref<1x32xf32, #tpu.memory_space<vmem>>, vector<1x32xf32>
    %87 = vector.broadcast %86 : vector<1x32xf32> to vector<16x32xf32>
    %88 = arith.addf %85, %87 : vector<16x32xf32>
    %89 = arith.addf %2, %88 : vector<16x32xf32>
    %cst_32 = arith.constant dense<0.000000e+00> : vector<16xf32>
    %90 = vector.multi_reduction <add>, %89, %cst_32 [1] : vector<16x32xf32> to vector<16xf32>
    %91 = vector.shape_cast %90 : vector<16xf32> to vector<16x1xf32>
    %cst_33 = arith.constant 3.200000e+01 : f32
    %92 = vector.broadcast %cst_33 : f32 to vector<16x1xf32>
    %93 = arith.divf %91, %92 : vector<16x1xf32>
    %94 = vector.broadcast %93 : vector<16x1xf32> to vector<16x32xf32>
    %95 = arith.subf %89, %94 : vector<16x32xf32>
    %96 = arith.mulf %95, %95 : vector<16x32xf32>
    %cst_34 = arith.constant dense<0.000000e+00> : vector<16xf32>
    %97 = vector.multi_reduction <add>, %96, %cst_34 [1] : vector<16x32xf32> to vector<16xf32>
    %98 = vector.shape_cast %97 : vector<16xf32> to vector<16x1xf32>
    %cst_35 = arith.constant 3.200000e+01 : f32
    %99 = vector.broadcast %cst_35 : f32 to vector<16x1xf32>
    %100 = arith.divf %98, %99 : vector<16x1xf32>
    %101 = vector.broadcast %93 : vector<16x1xf32> to vector<16x32xf32>
    %102 = arith.subf %89, %101 : vector<16x32xf32>
    %cst_36 = arith.constant 9.99999974E-6 : f32
    %103 = vector.broadcast %cst_36 : f32 to vector<16x1xf32>
    %104 = arith.addf %100, %103 : vector<16x1xf32>
    %105 = math.rsqrt %104 : vector<16x1xf32>
    %106 = vector.broadcast %105 : vector<16x1xf32> to vector<16x32xf32>
    %107 = arith.mulf %102, %106 : vector<16x32xf32>
    %c0_37 = arith.constant 0 : index
    %c0_38 = arith.constant 0 : index
    %108 = vector.load %arg6[%c0_37, %c0_38] : memref<1x32xf32, #tpu.memory_space<vmem>>, vector<1x32xf32>
    %109 = vector.broadcast %108 : vector<1x32xf32> to vector<16x32xf32>
    %110 = arith.mulf %107, %109 : vector<16x32xf32>
    %c0_39 = arith.constant 0 : index
    %c0_40 = arith.constant 0 : index
    %111 = vector.load %arg7[%c0_39, %c0_40] : memref<1x32xf32, #tpu.memory_space<vmem>>, vector<1x32xf32>
    %112 = vector.broadcast %111 : vector<1x32xf32> to vector<16x32xf32>
    %113 = arith.addf %110, %112 : vector<16x32xf32>
    %c0_41 = arith.constant 0 : index
    %c0_42 = arith.constant 0 : index
    %114 = vector.load %arg8[%c0_41, %c0_42] : memref<32x64xf32, #tpu.memory_space<vmem>>, vector<32x64xf32>
    %cst_43 = arith.constant dense<0.000000e+00> : vector<16x64xf32>
    %115 = tpu.matmul %113, %114, %cst_43 {dimension_numbers = #tpu.dot_dimension_numbers<[1], [0], [0], [1], [0, 0, 1, 1], [], []>} : vector<16x32xf32>, vector<32x64xf32>, vector<16x64xf32> -> vector<16x64xf32>
    %c0_44 = arith.constant 0 : index
    %c0_45 = arith.constant 0 : index
    %116 = vector.load %arg9[%c0_44, %c0_45] : memref<1x64xf32, #tpu.memory_space<vmem>>, vector<1x64xf32>
    %117 = vector.broadcast %116 : vector<1x64xf32> to vector<16x64xf32>
    %118 = arith.addf %115, %117 : vector<16x64xf32>
    %cst_46 = arith.constant 0.000000e+00 : f32
    %119 = vector.broadcast %cst_46 : f32 to vector<16x64xf32>
    %120 = arith.maximumf %118, %119 : vector<16x64xf32>
    %c0_47 = arith.constant 0 : index
    %c0_48 = arith.constant 0 : index
    %121 = vector.load %arg10[%c0_47, %c0_48] : memref<64x32xf32, #tpu.memory_space<vmem>>, vector<64x32xf32>
    %cst_49 = arith.constant dense<0.000000e+00> : vector<16x32xf32>
    %122 = tpu.matmul %120, %121, %cst_49 {dimension_numbers = #tpu.dot_dimension_numbers<[1], [0], [0], [1], [0, 0, 1, 1], [], []>} : vector<16x64xf32>, vector<64x32xf32>, vector<16x32xf32> -> vector<16x32xf32>
    %c0_50 = arith.constant 0 : index
    %c0_51 = arith.constant 0 : index
    %123 = vector.load %arg11[%c0_50, %c0_51] : memref<1x32xf32, #tpu.memory_space<vmem>>, vector<1x32xf32>
    %124 = vector.broadcast %123 : vector<1x32xf32> to vector<16x32xf32>
    %125 = arith.addf %122, %124 : vector<16x32xf32>
    %126 = arith.addf %113, %125 : vector<16x32xf32>
    %cst_52 = arith.constant dense<0.000000e+00> : vector<16xf32>
    %127 = vector.multi_reduction <add>, %126, %cst_52 [1] : vector<16x32xf32> to vector<16xf32>
    %128 = vector.shape_cast %127 : vector<16xf32> to vector<16x1xf32>
    %cst_53 = arith.constant 3.200000e+01 : f32
    %129 = vector.broadcast %cst_53 : f32 to vector<16x1xf32>
    %130 = arith.divf %128, %129 : vector<16x1xf32>
    %131 = vector.broadcast %130 : vector<16x1xf32> to vector<16x32xf32>
    %132 = arith.subf %126, %131 : vector<16x32xf32>
    %133 = arith.mulf %132, %132 : vector<16x32xf32>
    %cst_54 = arith.constant dense<0.000000e+00> : vector<16xf32>
    %134 = vector.multi_reduction <add>, %133, %cst_54 [1] : vector<16x32xf32> to vector<16xf32>
    %135 = vector.shape_cast %134 : vector<16xf32> to vector<16x1xf32>
    %cst_55 = arith.constant 3.200000e+01 : f32
    %136 = vector.broadcast %cst_55 : f32 to vector<16x1xf32>
    %137 = arith.divf %135, %136 : vector<16x1xf32>
    %138 = vector.broadcast %130 : vector<16x1xf32> to vector<16x32xf32>
    %139 = arith.subf %126, %138 : vector<16x32xf32>
    %cst_56 = arith.constant 9.99999974E-6 : f32
    %140 = vector.broadcast %cst_56 : f32 to vector<16x1xf32>
    %141 = arith.addf %137, %140 : vector<16x1xf32>
    %142 = math.rsqrt %141 : vector<16x1xf32>
    %143 = vector.broadcast %142 : vector<16x1xf32> to vector<16x32xf32>
    %144 = arith.mulf %139, %143 : vector<16x32xf32>
    %c0_57 = arith.constant 0 : index
    %c0_58 = arith.constant 0 : index
    %145 = vector.load %arg12[%c0_57, %c0_58] : memref<1x32xf32, #tpu.memory_space<vmem>>, vector<1x32xf32>
    %146 = vector.broadcast %145 : vector<1x32xf32> to vector<16x32xf32>
    %147 = arith.mulf %144, %146 : vector<16x32xf32>
    %c0_59 = arith.constant 0 : index
    %c0_60 = arith.constant 0 : index
    %148 = vector.load %arg13[%c0_59, %c0_60] : memref<1x32xf32, #tpu.memory_space<vmem>>, vector<1x32xf32>
    %149 = vector.broadcast %148 : vector<1x32xf32> to vector<16x32xf32>
    %150 = arith.addf %147, %149 : vector<16x32xf32>
    %151 = vector.shape_cast %150 : vector<16x32xf32> to vector<2x8x32xf32>
    %152 = vector.extract_strided_slice %151 {offsets = [0, 0, 0], sizes = [2, 1, 32], strides = [1, 1, 1]} : vector<2x8x32xf32> to vector<2x1x32xf32>
    %153 = vector.shape_cast %152 : vector<2x1x32xf32> to vector<2x32xf32>
    %154 = vector.extract_strided_slice %151 {offsets = [0, 1, 0], sizes = [2, 1, 32], strides = [1, 1, 1]} : vector<2x8x32xf32> to vector<2x1x32xf32>
    %155 = vector.shape_cast %154 : vector<2x1x32xf32> to vector<2x32xf32>
    %156 = vector.extract_strided_slice %151 {offsets = [0, 2, 0], sizes = [2, 1, 32], strides = [1, 1, 1]} : vector<2x8x32xf32> to vector<2x1x32xf32>
    %157 = vector.shape_cast %156 : vector<2x1x32xf32> to vector<2x32xf32>
    %158 = vector.extract_strided_slice %151 {offsets = [0, 3, 0], sizes = [2, 1, 32], strides = [1, 1, 1]} : vector<2x8x32xf32> to vector<2x1x32xf32>
    %159 = vector.shape_cast %158 : vector<2x1x32xf32> to vector<2x32xf32>
    %160 = vector.extract_strided_slice %151 {offsets = [0, 4, 0], sizes = [2, 1, 32], strides = [1, 1, 1]} : vector<2x8x32xf32> to vector<2x1x32xf32>
    %161 = vector.shape_cast %160 : vector<2x1x32xf32> to vector<2x32xf32>
    %162 = vector.extract_strided_slice %151 {offsets = [0, 5, 0], sizes = [2, 1, 32], strides = [1, 1, 1]} : vector<2x8x32xf32> to vector<2x1x32xf32>
    %163 = vector.shape_cast %162 : vector<2x1x32xf32> to vector<2x32xf32>
    %164 = vector.extract_strided_slice %151 {offsets = [0, 6, 0], sizes = [2, 1, 32], strides = [1, 1, 1]} : vector<2x8x32xf32> to vector<2x1x32xf32>
    %165 = vector.shape_cast %164 : vector<2x1x32xf32> to vector<2x32xf32>
    %166 = vector.extract_strided_slice %151 {offsets = [0, 7, 0], sizes = [2, 1, 32], strides = [1, 1, 1]} : vector<2x8x32xf32> to vector<2x1x32xf32>
    %167 = vector.shape_cast %166 : vector<2x1x32xf32> to vector<2x32xf32>
    %168 = tpu.concatenate %153, %155, %157, %159, %161, %163, %165, %167 in 1 : vector<2x32xf32>, vector<2x32xf32>, vector<2x32xf32>, vector<2x32xf32>, vector<2x32xf32>, vector<2x32xf32>, vector<2x32xf32>, vector<2x32xf32> -> vector<2x256xf32>
    %c0_61 = arith.constant 0 : index
    %c0_62 = arith.constant 0 : index
    %169 = vector.load %arg14[%c0_61, %c0_62] : memref<256x512xf32, #tpu.memory_space<vmem>>, vector<256x512xf32>
    %cst_63 = arith.constant dense<0.000000e+00> : vector<2x512xf32>
    %170 = tpu.matmul %168, %169, %cst_63 {dimension_numbers = #tpu.dot_dimension_numbers<[1], [0], [0], [1], [0, 0, 1, 1], [], []>} : vector<2x256xf32>, vector<256x512xf32>, vector<2x512xf32> -> vector<2x512xf32>
    %c0_64 = arith.constant 0 : index
    %c0_65 = arith.constant 0 : index
    %171 = vector.load %arg15[%c0_64, %c0_65] : memref<1x512xf32, #tpu.memory_space<vmem>>, vector<1x512xf32>
    %172 = vector.broadcast %171 : vector<1x512xf32> to vector<2x512xf32>
    %173 = arith.addf %170, %172 : vector<2x512xf32>
    %cst_66 = arith.constant 0.000000e+00 : f32
    %174 = vector.broadcast %cst_66 : f32 to vector<2x512xf32>
    %175 = arith.cmpf oge, %173, %174 : vector<2x512xf32>
    %cst_67 = arith.constant 0.00999999977 : f32
    %176 = vector.broadcast %cst_67 : f32 to vector<2x512xf32>
    %177 = arith.mulf %176, %173 : vector<2x512xf32>
    %178 = arith.select %175, %173, %177 : vector<2x512xi1>, vector<2x512xf32>
    %c0_68 = arith.constant 0 : index
    %c0_69 = arith.constant 0 : index
    %179 = vector.load %arg16[%c0_68, %c0_69] : memref<512x256xf32, #tpu.memory_space<vmem>>, vector<512x256xf32>
    %cst_70 = arith.constant dense<0.000000e+00> : vector<2x256xf32>
    %180 = tpu.matmul %178, %179, %cst_70 {dimension_numbers = #tpu.dot_dimension_numbers<[1], [0], [0], [1], [0, 0, 1, 1], [], []>} : vector<2x512xf32>, vector<512x256xf32>, vector<2x256xf32> -> vector<2x256xf32>
    %c0_71 = arith.constant 0 : index
    %c0_72 = arith.constant 0 : index
    %181 = vector.load %arg17[%c0_71, %c0_72] : memref<1x256xf32, #tpu.memory_space<vmem>>, vector<1x256xf32>
    %182 = vector.broadcast %181 : vector<1x256xf32> to vector<2x256xf32>
    %183 = arith.addf %180, %182 : vector<2x256xf32>
    %cst_73 = arith.constant 0.000000e+00 : f32
    %184 = vector.broadcast %cst_73 : f32 to vector<2x256xf32>
    %185 = arith.cmpf oge, %183, %184 : vector<2x256xf32>
    %cst_74 = arith.constant 0.00999999977 : f32
    %186 = vector.broadcast %cst_74 : f32 to vector<2x256xf32>
    %187 = arith.mulf %186, %183 : vector<2x256xf32>
    %188 = arith.select %185, %183, %187 : vector<2x256xi1>, vector<2x256xf32>
    %c0_75 = arith.constant 0 : index
    %c0_76 = arith.constant 0 : index
    %189 = vector.load %arg18[%c0_75, %c0_76] : memref<256x512xf32, #tpu.memory_space<vmem>>, vector<256x512xf32>
    %cst_77 = arith.constant dense<0.000000e+00> : vector<2x512xf32>
    %190 = tpu.matmul %188, %189, %cst_77 {dimension_numbers = #tpu.dot_dimension_numbers<[1], [0], [0], [1], [0, 0, 1, 1], [], []>} : vector<2x256xf32>, vector<256x512xf32>, vector<2x512xf32> -> vector<2x512xf32>
    %c0_78 = arith.constant 0 : index
    %c0_79 = arith.constant 0 : index
    %191 = vector.load %arg19[%c0_78, %c0_79] : memref<1x512xf32, #tpu.memory_space<vmem>>, vector<1x512xf32>
    %192 = vector.broadcast %191 : vector<1x512xf32> to vector<2x512xf32>
    %193 = arith.addf %190, %192 : vector<2x512xf32>
    %cst_80 = arith.constant 0.000000e+00 : f32
    %194 = vector.broadcast %cst_80 : f32 to vector<2x512xf32>
    %195 = arith.cmpf oge, %193, %194 : vector<2x512xf32>
    %cst_81 = arith.constant 0.00999999977 : f32
    %196 = vector.broadcast %cst_81 : f32 to vector<2x512xf32>
    %197 = arith.mulf %196, %193 : vector<2x512xf32>
    %198 = arith.select %195, %193, %197 : vector<2x512xi1>, vector<2x512xf32>
    %199 = arith.addf %198, %178 : vector<2x512xf32>
    %c0_82 = arith.constant 0 : index
    %c0_83 = arith.constant 0 : index
    %200 = vector.load %arg20[%c0_82, %c0_83] : memref<512x256xf32, #tpu.memory_space<vmem>>, vector<512x256xf32>
    %cst_84 = arith.constant dense<0.000000e+00> : vector<2x256xf32>
    %201 = tpu.matmul %199, %200, %cst_84 {dimension_numbers = #tpu.dot_dimension_numbers<[1], [0], [0], [1], [0, 0, 1, 1], [], []>} : vector<2x512xf32>, vector<512x256xf32>, vector<2x256xf32> -> vector<2x256xf32>
    %c0_85 = arith.constant 0 : index
    %c0_86 = arith.constant 0 : index
    %202 = vector.load %arg21[%c0_85, %c0_86] : memref<1x256xf32, #tpu.memory_space<vmem>>, vector<1x256xf32>
    %203 = vector.broadcast %202 : vector<1x256xf32> to vector<2x256xf32>
    %204 = arith.addf %201, %203 : vector<2x256xf32>
    %c0_87 = arith.constant 0 : index
    %c0_88 = arith.constant 0 : index
    %205 = vector.load %arg22[%c0_87, %c0_88] : memref<256x256xf32, #tpu.memory_space<vmem>>, vector<256x256xf32>
    %cst_89 = arith.constant dense<0.000000e+00> : vector<2x256xf32>
    %206 = tpu.matmul %204, %205, %cst_89 {dimension_numbers = #tpu.dot_dimension_numbers<[1], [0], [0], [1], [0, 0, 1, 1], [], []>} : vector<2x256xf32>, vector<256x256xf32>, vector<2x256xf32> -> vector<2x256xf32>
    %c0_90 = arith.constant 0 : index
    %c0_91 = arith.constant 0 : index
    %207 = vector.load %arg23[%c0_90, %c0_91] : memref<1x256xf32, #tpu.memory_space<vmem>>, vector<1x256xf32>
    %208 = vector.broadcast %207 : vector<1x256xf32> to vector<2x256xf32>
    %209 = arith.addf %206, %208 : vector<2x256xf32>
    %cst_92 = arith.constant dense<0xFF800000> : vector<2xf32>
    %210 = vector.multi_reduction <maximumf>, %209, %cst_92 [1] : vector<2x256xf32> to vector<2xf32>
    %211 = vector.shape_cast %210 : vector<2xf32> to vector<2x1xf32>
    %212 = vector.broadcast %211 : vector<2x1xf32> to vector<2x256xf32>
    %213 = arith.subf %209, %212 : vector<2x256xf32>
    %214 = math.exp %213 : vector<2x256xf32>
    %cst_93 = arith.constant dense<0.000000e+00> : vector<2xf32>
    %215 = vector.multi_reduction <add>, %214, %cst_93 [1] : vector<2x256xf32> to vector<2xf32>
    %216 = vector.shape_cast %215 : vector<2xf32> to vector<2x1xf32>
    %217 = tpu.reciprocal %216 {approx = true} : vector<2x1xf32> -> vector<2x1xf32>
    %218 = vector.broadcast %217 : vector<2x1xf32> to vector<2x256xf32>
    %219 = arith.mulf %214, %218 : vector<2x256xf32>
    %220 = arith.mulf %204, %219 : vector<2x256xf32>
    %c0_94 = arith.constant 0 : index
    %c0_95 = arith.constant 0 : index
    %221 = vector.load %arg24[%c0_94, %c0_95] : memref<256x128xf32, #tpu.memory_space<vmem>>, vector<256x128xf32>
    %cst_96 = arith.constant dense<0.000000e+00> : vector<2x128xf32>
    %222 = tpu.matmul %220, %221, %cst_96 {dimension_numbers = #tpu.dot_dimension_numbers<[1], [0], [0], [1], [0, 0, 1, 1], [], []>} : vector<2x256xf32>, vector<256x128xf32>, vector<2x128xf32> -> vector<2x128xf32>
    %c0_97 = arith.constant 0 : index
    %c0_98 = arith.constant 0 : index
    %223 = vector.load %arg25[%c0_97, %c0_98] : memref<1x128xf32, #tpu.memory_space<vmem>>, vector<1x128xf32>
    %224 = vector.broadcast %223 : vector<1x128xf32> to vector<2x128xf32>
    %225 = arith.addf %222, %224 : vector<2x128xf32>
    %c0_99 = arith.constant 0 : index
    %c0_100 = arith.constant 0 : index
    %226 = vector.load %arg26[%c0_99, %c0_100] : memref<2x128xf32, #tpu.memory_space<vmem>>, vector<2x128xf32>
    tpu.vector_store %arg26[%c0_99, %c0_100], %225 {strides = array<i32>} : memref<2x128xf32, #tpu.memory_space<vmem>>, vector<2x128xf32>,
    %c0_101 = arith.constant 0 : index
    %c0_102 = arith.constant 0 : index
    %227 = vector.load %arg27[%c0_101, %c0_102] : memref<2x256xf32, #tpu.memory_space<vmem>>, vector<2x256xf32>
    tpu.vector_store %arg27[%c0_101, %c0_102], %204 {strides = array<i32>} : memref<2x256xf32, #tpu.memory_space<vmem>>, vector<2x256xf32>,
    %c0_103 = arith.constant 0 : index
    %c0_104 = arith.constant 0 : index
    %228 = vector.load %arg28[%c0_103, %c0_104] : memref<2x256xf32, #tpu.memory_space<vmem>>, vector<2x256xf32>
    tpu.vector_store %arg28[%c0_103, %c0_104], %219 {strides = array<i32>} : memref<2x256xf32, #tpu.memory_space<vmem>>, vector<2x256xf32>,
    return
  }
}

</mosaic_0001>

<bundles_post_ra>
// kernel: model_forward.1
= control target key start
LH: loop header
LB: loop body
LE: loop exit
PB: predicated region body
PF: predicated region fallthrough
CT: control target
= control target key end

     0   :  { %s4920_s0 = inlined_call_operand.vmem [shape: f32[16,32], index: 0, kind: input, shape index: {}]   ;;  %s4921_s1 = inlined_call_operand.vmem [shape: f32[16,32], index: 1, kind: input, shape index: {}]   ;;  %s4922_s2 = inlined_call_operand.vmem [shape: f32[32,96], index: 2, kind: input, shape index: {}]   ;;  %s4923_s3 = inlined_call_operand.vmem [shape: f32[1,96], index: 3, kind: input, shape index: {}]   ;;  %s4924_s4 = inlined_call_operand.vmem [shape: f32[32,32], index: 4, kind: input, shape index: {}]   ;;  %s4925_s5 = inlined_call_operand.vmem [shape: f32[1,32], index: 5, kind: input, shape index: {}]   ;;  %s4926_s6 = inlined_call_operand.vmem [shape: f32[1,32], index: 6, kind: input, shape index: {}]   ;;  %s4927_s7 = inlined_call_operand.vmem [shape: f32[1,32], index: 7, kind: input, shape index: {}]   ;;  %s4928_s8 = inlined_call_operand.vmem [shape: f32[32,64], index: 8, kind: input, shape index: {}]   ;;  %s4929_s9 = inlined_call_operand.hbm [shape: f32[1,64], index: 9, kind: input, shape index: {}]   ;;  %s4930_s10 = inlined_call_operand.vmem [shape: f32[64,32], index: 10, kind: input, shape index: {}]   ;;  %s4931_s11 = inlined_call_operand.hbm [shape: f32[1,32], index: 11, kind: input, shape index: {}]   ;;  %s4932_s12 = inlined_call_operand.hbm [shape: f32[1,32], index: 12, kind: input, shape index: {}]   ;;  %s4933_s13 = inlined_call_operand.hbm [shape: f32[1,32], index: 13, kind: input, shape index: {}]   ;;  %s4934_s14 = inlined_call_operand.hbm [shape: f32[256,512], index: 14, kind: input, shape index: {}]   ;;  %s4935_s15 = inlined_call_operand.vmem [shape: f32[1,512], index: 15, kind: input, shape index: {}]   ;;  %s4936_s16 = inlined_call_operand.hbm [shape: f32[512,256], index: 16, kind: input, shape index: {}]   ;;  %s4937_s17 = inlined_call_operand.vmem [shape: f32[1,256], index: 17, kind: input, shape index: {}]   ;;  %s4938_s18 = inlined_call_operand.hbm [shape: f32[256,512], index: 18, kind: input, shape index: {}]   ;;  %s4939_s19 = inlined_call_operand.vmem [shape: f32[1,512], index: 19, kind: input, shape index: {}]   ;;  %s4940_s20 = inlined_call_operand.hbm [shape: f32[512,256], index: 20, kind: input, shape index: {}]   ;;  %s4941_s21 = inlined_call_operand.vmem [shape: f32[1,256], index: 21, kind: input, shape index: {}]   ;;  %s4942_s22 = inlined_call_operand.hbm [shape: f32[256,256], index: 22, kind: input, shape index: {}]   ;;  %s4943_s23 = inlined_call_operand.hbm [shape: f32[1,256], index: 23, kind: input, shape index: {}]   ;;  %s4944_s24 = inlined_call_operand.hbm [shape: f32[256,128], index: 24, kind: input, shape index: {}]   ;;  %s4945_s25 = inlined_call_operand.hbm [shape: f32[1,128], index: 25, kind: input, shape index: {}]   ;;  %s4946_s26 = inlined_call_operand.hbm [shape: f32[2,128], index: 26, kind: output, shape index: {0}]   ;;  %s4947_s27 = inlined_call_operand.hbm [shape: f32[2,256], index: 27, kind: output, shape index: {1}]   ;;  %s4948_s28 = inlined_call_operand.hbm [shape: f32[2,256], index: 28, kind: output, shape index: {2}]  }
   0x1   :  { %4955 = sst [smem:[#allocation35_spill]] %s4920_s0 }
   0x2   :  { %4956 = sst [smem:[#allocation36_spill]] %s4921_s1 }
   0x3   :  { %4957 = sst [smem:[#allocation37_spill]] %s4922_s2 }
   0x4   :  { %4958 = sst [smem:[#allocation38_spill]] %s4923_s3 }
   0x5   :  { %4959 = sst [smem:[#allocation39_spill]] %s4924_s4 }
   0x6   :  { %4960 = sst [smem:[#allocation40_spill]] %s4925_s5 }
   0x7   :  { %4961 = sst [smem:[#allocation41_spill]] %s4926_s6 }
   0x8   :  { %4962 = sst [smem:[#allocation42_spill]] %s4927_s7 }
   0x9   :  { %4963 = sst [smem:[#allocation43_spill]] %s4928_s8 }
   0xa   :  { %4964 = sst [smem:[#allocation44_spill]] %s4929_s9 }
   0xb   :  { %4965 = sst [smem:[#allocation45_spill]] %s4930_s10 }
   0xc   :  { %4966 = sst [smem:[#allocation46_spill]] %s4931_s11 }
   0xd   :  { %4967 = sst [smem:[#allocation47_spill]] %s4932_s12 }
   0xe   :  { %34 = vsyncpa [#allocation3], 0 }
   0xf   :  { %35 = vsyncpa [#allocation6], 0 }
  0x10   :  { %36 = vsyncpa [#allocation9], 0 }
  0x11   :  { %37 = vsyncpa [#allocation12], 0 }
  0x12   :  { %38 = vsyncpa [#allocation15], 0 }
  0x13   :  { %39 = vsyncpa [#allocation18], 0 }
  0x14   :  { %40 = vsyncpa [#allocation21], 0 }
  0x15   :  { %41 = vsyncpa [#allocation4], 0 }
  0x16   :  { %42 = vsyncpa [#allocation24], 0  ;;  %s4342_s8 = smov [#allocation5]   ;;  %s4343_s9 = smov [#allocation8]  }
  0x17   :  { %s79_s5 = sshll.u32 %s4342_s8, 4  ;;  %s99_s30 = sshll.u32 %s4343_s9, 4  ;;  %s80_s5 = int_to_ptr.vmem [resolvable:$true] %s79_s5  ;;  %s100_s30 = int_to_ptr.vmem [resolvable:$true] %s99_s30 }
  0x18   :  { %s4032_s3 = scalar_lea.vmem %s80_s5, 16  ;;  %s4036_s6 = scalar_lea.vmem %s80_s5, 32 }
  0x19   :  { %p4033_p0 = scmp.ne.s32.totalorder %s80_s5, %s4032_s3  ;;  %p4037_p1 = scmp.lt.s32.totalorder %s80_s5, %s80_s5 }
  0x1a   :  { %p4038_p2 = scmp.lt.s32.totalorder %s4036_s6, %s4032_s3 }
  0x1c   :  { %p4039_p3 = por %p4038_p2, %p4037_p1 }
  0x1e   :  { %p4040_p4 = pnand %p4039_p3, %p4033_p0 }
  0x20   :  { %4043 = shalt.err (!%p4040_p4)
}
  0x21   :  { %s4968_s11 = sld [smem:[#allocation46_spill]]  ;;  %s4052_s29 = scalar_lea.vmem %s100_s30, 16 }
  0x22   :  { %p4053_p5 = scmp.ne.s32.totalorder %s100_s30, %s4052_s29  ;;  %s4056_s2 = scalar_lea.vmem %s100_s30, 32 }
  0x23   :  { %p4057_p6 = scmp.lt.s32.totalorder %s100_s30, %s100_s30  ;;  %p4058_p7 = scmp.lt.s32.totalorder %s4056_s2, %s4052_s29 }
  0x25   :  { %p4059_p8 = por %p4058_p7, %p4057_p6 }
  0x27   :  { %82 = dma.hbm_to_vmem [thread:$0]  %s4968_s11, 16, %s80_s5, [#allocation6]  }
  0x28   :  { %p4060_p9 = pnand %p4059_p8, %p4053_p5 }
  0x2a   :  { %4063 = shalt.err (!%p4060_p9)
}
  0x2b   :  { %102 = dma.hbm_to_vmem [thread:$0]  %s4933_s13, 16, %s100_s30, [#allocation9]  }
  0x2c   :  { %s4344_s1 = smov [#allocation11]  }
  0x2d   :  { %s122_s4 = sshll.u32 %s4344_s1, 4  ;;  %s123_s4 = int_to_ptr.vmem [resolvable:$true] %s122_s4 }
  0x2e   :  { %s4072_s8 = scalar_lea.vmem %s123_s4, 16384  ;;  %p4077_p11 = scmp.lt.s32.totalorder %s123_s4, %s123_s4 }
  0x2f   :  { %p4073_p10 = scmp.ne.s32.totalorder %s123_s4, %s4072_s8  ;;  %p4078_p12 = scmp.lt.s32.totalorder %s4072_s8, %s4072_s8 }
  0x31   :  { %p4079_p13 = por %p4078_p12, %p4077_p11 }
  0x33   :  { %p4080_p0 = pnand %p4079_p13, %p4073_p10 }
  0x35   :  { %4083 = shalt.err (!%p4080_p0)
}
  0x36   :  { %s4345_s5 = smov 256   ;;  %s4346_s9 = smov 16  }
  0x37   :  { %128 = dma.hbm_to_vmem [thread:$0]  %s4936_s16, 16384, %s123_s4, [#allocation12], %s4345_s5, %s4345_s5, %s4346_s9  }
  0x38   :  { %s4347_s13 = smov [#allocation14]   ;;  %s4348_s10 = smov [#allocation17]  }
  0x39   :  { %s150_s30 = sshll.u32 %s4347_s13, 4  ;;  %s177_s0 = sshll.u32 %s4348_s10, 4  ;;  %s151_s30 = int_to_ptr.vmem [resolvable:$true] %s150_s30  ;;  %s178_s0 = int_to_ptr.vmem [resolvable:$true] %s177_s0 }
  0x3a   :  { %s4092_s11 = scalar_lea.vmem %s151_s30, 16384  ;;  %p4097_p2 = scmp.lt.s32.totalorder %s151_s30, %s151_s30 }
  0x3b   :  { %p4093_p1 = scmp.ne.s32.totalorder %s151_s30, %s4092_s11  ;;  %p4098_p3 = scmp.lt.s32.totalorder %s4092_s11, %s4092_s11 }
  0x3d   :  { %p4099_p4 = por %p4098_p3, %p4097_p2 }
  0x3f   :  { %p4100_p5 = pnand %p4099_p4, %p4093_p1 }
  0x41   :  { %4103 = shalt.err (!%p4100_p5)
}
  0x42   :  { %156 = dma.hbm_to_vmem [thread:$0]  %s4940_s20, 16384, %s151_s30, [#allocation15], %s4345_s5, %s4345_s5, %s4346_s9  }
  0x43   :  { %s4112_s16 = scalar_lea.vmem %s178_s0, 32  ;;  %p4117_p7 = scmp.lt.s32.totalorder %s178_s0, %s178_s0 }
  0x44   :  { %p4113_p6 = scmp.ne.s32.totalorder %s178_s0, %s4112_s16  ;;  %p4118_p8 = scmp.lt.s32.totalorder %s4112_s16, %s4112_s16 }
  0x46   :  { %p4119_p9 = por %p4118_p8, %p4117_p7 }
  0x48   :  { %p4120_p10 = pnand %p4119_p9, %p4113_p6 }
  0x4a   :  { %4123 = shalt.err (!%p4120_p10)
}
  0x4b   :  { %180 = dma.hbm_to_vmem [thread:$0]  %s4943_s23, 32, %s178_s0, [#allocation18]  }
  0x4c   :  { %s4349_s1 = smov [#allocation2]   ;;  %s4350_s8 = smov [#allocation7]  }
  0x4d   :  { %s67_s4 = sshll.u32 %s4349_s1, 4  ;;  %s89_s3 = sshll.u32 %s4350_s8, 4  ;;  %s68_s4 = int_to_ptr.vmem [resolvable:$true] %s67_s4  ;;  %s90_s3 = int_to_ptr.vmem [resolvable:$true] %s89_s3 }
  0x4e   :  { %s4132_s6 = scalar_lea.vmem %s68_s4, 16  ;;  %s4136_s20 = scalar_lea.vmem %s68_s4, 32 }
  0x4f   :  { %p4133_p11 = scmp.ne.s32.totalorder %s68_s4, %s4132_s6  ;;  %p4137_p12 = scmp.lt.s32.totalorder %s68_s4, %s68_s4 }
  0x50   :  { %p4138_p13 = scmp.lt.s32.totalorder %s4136_s20, %s4132_s6 }
  0x52   :  { %p4139_p0 = por %p4138_p13, %p4137_p12 }
  0x54   :  { %p4140_p1 = pnand %p4139_p0, %p4133_p11 }
  0x56   :  { %4143 = shalt.err (!%p4140_p1)
}
  0x57   :  { %s4969_s10 = sld [smem:[#allocation44_spill]]  ;;  %s4152_s11 = scalar_lea.vmem %s90_s3, 16 }
  0x58   :  { %p4153_p2 = scmp.ne.s32.totalorder %s90_s3, %s4152_s11  ;;  %s4156_s23 = scalar_lea.vmem %s90_s3, 32 }
  0x59   :  { %p4157_p3 = scmp.lt.s32.totalorder %s90_s3, %s90_s3  ;;  %p4158_p4 = scmp.lt.s32.totalorder %s4156_s23, %s4152_s11 }
  0x5b   :  { %p4159_p5 = por %p4158_p4, %p4157_p3 }
  0x5d   :  { %70 = dma.hbm_to_vmem [thread:$0]  %s4969_s10, 16, %s68_s4, [#allocation3]  }
  0x5e   :  { %p4160_p6 = pnand %p4159_p5, %p4153_p2 }
  0x60   :  { %4163 = shalt.err (!%p4160_p6)
}
  0x61   :  { %s4970_s2 = sld [smem:[#allocation47_spill]]  ;;  %s4351_s16 = smov [#allocation10]  }
  0x62   :  { %s108_s7 = sshll.u32 %s4351_s16, 4  ;;  %s109_s7 = int_to_ptr.vmem [resolvable:$true] %s108_s7 }
  0x63   :  { %s4172_s12 = scalar_lea.vmem %s109_s7, 16384  ;;  %p4177_p8 = scmp.lt.s32.totalorder %s109_s7, %s109_s7 }
  0x64   :  { %p4173_p7 = scmp.ne.s32.totalorder %s109_s7, %s4172_s12  ;;  %p4178_p9 = scmp.lt.s32.totalorder %s4172_s12, %s4172_s12 }
  0x66   :  { %p4179_p10 = por %p4178_p9, %p4177_p8 }
  0x67   :  { %92 = dma.hbm_to_vmem [thread:$0]  %s4970_s2, 16, %s90_s3, [#allocation6]  }
  0x68   :  { %p4180_p11 = pnand %p4179_p10, %p4173_p7 }
  0x6a   :  { %4183 = shalt.err (!%p4180_p11)
}
  0x6b   :  { %s4352_s1 = smov 512   ;;  %s4353_s4 = smov 32  }
  0x6c   :  { %114 = dma.hbm_to_vmem [thread:$0]  %s4934_s14, 16384, %s109_s7, [#allocation9], %s4352_s1, %s4352_s1, %s4353_s4  }
  0x6d   :  { %s4354_s20 = smov [#allocation13]   ;;  %s4355_s3 = smov [#allocation16]  }
  0x6e   :  { %s136_s13 = sshll.u32 %s4354_s20, 4  ;;  %s164_s30 = sshll.u32 %s4355_s3, 4  ;;  %s137_s13 = int_to_ptr.vmem [resolvable:$true] %s136_s13  ;;  %s165_s30 = int_to_ptr.vmem [resolvable:$true] %s164_s30 }
  0x6f   :  { %s4192_s10 = scalar_lea.vmem %s137_s13, 16384  ;;  %p4197_p13 = scmp.lt.s32.totalorder %s137_s13, %s137_s13 }
  0x70   :  { %p4193_p12 = scmp.ne.s32.totalorder %s137_s13, %s4192_s10  ;;  %p4198_p0 = scmp.lt.s32.totalorder %s4192_s10, %s4192_s10 }
  0x72   :  { %p4199_p1 = por %p4198_p0, %p4197_p13 }
  0x74   :  { %p4200_p2 = pnand %p4199_p1, %p4193_p12 }
  0x76   :  { %4203 = shalt.err (!%p4200_p2)
}
  0x77   :  { %142 = dma.hbm_to_vmem [thread:$0]  %s4938_s18, 16384, %s137_s13, [#allocation12], %s4352_s1, %s4352_s1, %s4353_s4  }
  0x78   :  { %s4212_s0 = scalar_lea.vmem %s165_s30, 8192  ;;  %p4217_p4 = scmp.lt.s32.totalorder %s165_s30, %s165_s30 }
  0x79   :  { %p4213_p3 = scmp.ne.s32.totalorder %s165_s30, %s4212_s0  ;;  %p4218_p5 = scmp.lt.s32.totalorder %s4212_s0, %s4212_s0 }
  0x7b   :  { %p4219_p6 = por %p4218_p5, %p4217_p4 }
  0x7d   :  { %p4220_p7 = pnand %p4219_p6, %p4213_p3 }
  0x7f   :  { %4223 = shalt.err (!%p4220_p7)
}
  0x80   :  { %170 = dma.hbm_to_vmem [thread:$0]  %s4942_s22, 8192, %s165_s30, [#allocation15], %s4345_s5, %s4345_s5, %s4346_s9  }
  0x81   :  { %s4356_s2 = smov [#allocation19]  }
  0x82   :  { %s186_s16 = sshll.u32 %s4356_s2, 4  ;;  %s187_s16 = int_to_ptr.vmem [resolvable:$true] %s186_s16 }
  0x83   :  { %s4232_s7 = scalar_lea.vmem %s187_s16, 4096  ;;  %p4237_p9 = scmp.lt.s32.totalorder %s187_s16, %s187_s16 }
  0x84   :  { %p4233_p8 = scmp.ne.s32.totalorder %s187_s16, %s4232_s7  ;;  %p4238_p10 = scmp.lt.s32.totalorder %s4232_s7, %s4232_s7 }
  0x86   :  { %p4239_p11 = por %p4238_p10, %p4237_p9 }
  0x88   :  { %p4240_p12 = pnand %p4239_p11, %p4233_p8 }
  0x8a   :  { %4243 = shalt.err (!%p4240_p12)
}
  0x8b   :  { %s4357_s18 = smov 128   ;;  %s4358_s12 = smov 8  }
  0x8c   :  { %192 = dma.hbm_to_vmem [thread:$0]  %s4944_s24, 4096, %s187_s16, [#allocation18], %s4357_s18, %s4357_s18, %s4358_s12  }
  0x8d   :  { %s4359_s6 = smov [#allocation20]  }
  0x8e   :  { %s199_s20 = sshll.u32 %s4359_s6, 4  ;;  %s200_s20 = int_to_ptr.vmem [resolvable:$true] %s199_s20 }
  0x8f   :  { %s4252_s22 = scalar_lea.vmem %s200_s20, 16  ;;  %s4256_s5 = scalar_lea.vmem %s200_s20, 32 }
  0x90   :  { %p4253_p13 = scmp.ne.s32.totalorder %s200_s20, %s4252_s22  ;;  %p4257_p0 = scmp.lt.s32.totalorder %s200_s20, %s200_s20 }
  0x91   :  { %p4258_p1 = scmp.lt.s32.totalorder %s4256_s5, %s4252_s22 }
  0x93   :  { %p4259_p2 = por %p4258_p1, %p4257_p0 }
  0x95   :  { %p4260_p3 = pnand %p4259_p2, %p4253_p13 }
  0x97   :  { %4263 = shalt.err (!%p4260_p3)
}
  0x98   :  { %202 = dma.hbm_to_vmem [thread:$0]  %s4945_s25, 16, %s200_s20, [#allocation21]  }
  0x99   :  { %4324 = dma.done.wait [#allocation3], 16  }
  0x9a   :  { %4325 = vsyncadd [#allocation3], 4294967280 }
  0x9b   :  { %4326 = dma.done.wait [#allocation6], 32  }
  0x9c   :  { %4327 = vsyncadd [#allocation6], 4294967264 }
  0x9d   :  { %4328 = dma.done.wait [#allocation9], 16400  }
  0x9e   :  { %4329 = vsyncadd [#allocation9], 4294950896 }
  0x9f   :  { %4330 = dma.done.wait [#allocation12], 32768  }
  0xa0   :  { %4331 = vsyncadd [#allocation12], 4294934528 }
  0xa1   :  { %4332 = dma.done.wait [#allocation15], 24576  }
  0xa2   :  { %4333 = vsyncadd [#allocation15], 4294942720 }
  0xa3   :  { %4334 = dma.done.wait [#allocation18], 4128  }
  0xa4   :  { %4335 = vsyncadd [#allocation18], 4294963168 }
  0xa5   :  { %4336 = dma.done.wait [#allocation21], 16  }
  0xa6   :  { %4337 = vsyncadd [#allocation21], 4294967280  ;;  %s4971_s10 = sld [smem:[#allocation37_spill]]  ;;  %vm256_vm0 = vcmask 261120   ;;  %v4360_v10 = vmov 0.0   ;;  %vm4361_vm1 = vmmov 0  }
  0xa7   :  { %s4972_s14 = sld [smem:[#allocation35_spill]]  ;;  %3807 = vmatprep.subr.mxu1 %v4360_v10  ;;  %3809 = vmatprep.mubr.msk.f32.mxu1 %vm4361_vm1, %v4360_v10  ;;  %s4362_s30 = smov 96   ;;  %vm341_vm2 = vcmask 64512   ;;  %vm1694_vm3 = vcmask 195584   ;;  %vm1691_vm4 = vcmask 130048   ;;  %vm1945_vm5 = vcmask 523264  }
  0xa8   :  { %s4973_s16 = sld [smem:[#allocation36_spill]]  ;;  %s4364_s11 = smov 88   ;;  %vm2076_vm6 = vcmask 1041409   ;;  %vm2120_vm7 = vcmask 785408  }
  0xa9   :  { %s4974_s24 = sld [smem:[#allocation38_spill]]  ;;  %s4365_s25 = smov 120  }
  0xaa   :  { %s4366_s23 = smov 56   ;;  %s4367_s0 = smov 80  }
  0xab   :  { %s4369_s29 = smov 48   ;;  %s4370_s2 = smov 72  }
  0xac   :  { %v248_v0 = vld [vmem:[%s4971_s10 + $0x18] sm:$0xff]  ;;  %v247_v1 = vld [vmem:[%s4971_s10 + $0x10] sm:$0xff]  ;;  %v246_v4 = vld [vmem:[%s4971_s10 + $0x8] sm:$0xff]  ;;  %s4372_s7 = smov 40   ;;  %s4975_s1 = sld [smem:[#allocation39_spill]] }
  0xad   :  { %3796 = vmatprep.subr.mxu0 %v248_v0  ;;  %v239_v2 = vld [vmem:[%s4972_s14] sm:$0xff]  ;;  %v240_v6 = vld [vmem:[%s4972_s14 + $0x8] sm:$0xff]  ;;  %s4368_s14 = smov 112   ;;  %s4373_s13 = smov 24  }
  0xae   :  { %v241_v3 = vld [vmem:[%s4973_s16] sm:$0xff]  ;;  %3797 = vmatpush3.msra.mxu0 %v248_v0  ;;  %v242_v7 = vld [vmem:[%s4973_s16 + $0x8] sm:$0xff]  ;;  %s4371_s16 = smov 104   ;;  %s4978_s8 = sld [smem:[#allocation45_spill]] }
  0xaf   :  { %v4585_v5 = vadd.f32 %v241_v3, %v239_v2  ;;  %3798 = vmatprep.subr.mxu0 %v247_v1  ;;  %v245_v8 = vld [vmem:[%s4971_s10] sm:$0xff]  ;;  %v4598_v9 = vadd.f32 %v242_v7, %v240_v6  ;;  %s4363_s10 = smov 64   ;;  %s4979_s20 = sld [smem:[#allocation41_spill]] }
  0xb0   :  { %3799 = vmatpush3.msra.mxu0 %v247_v1  ;;  %v3658_v12 = vld [vmem:[%s4974_s24] ss:$0 sm:$0xff] }
  0xb1   :  { %3804 = vmatprep.mubr.msk.f32.mxu0 %vm256_vm0, %v4585_v5  ;;  %3800 = vmatprep.subr.mxu0 %v246_v4 }
  0xb2   :  { %3801 = vmatpush3.msra.mxu0 %v246_v4 }
  0xb3   :  { %3802 = vmatprep.subr.mxu0 %v245_v8 }
  0xb4   :  { %3803 = vmatpush3.msra.mxu0 %v245_v8 }
  0xb5   :  { %3805 = vmatmul.mubr.msk.f32.vlgmr.msra.gmra.mxu0 %vm256_vm0, %v4598_v9  ;;  %3817 = vmatprep.subr.mxu0 %v4360_v10 }
  0xb6   :  { %3819 = vmatprep.mubr.msk.f32.mxu0 %vm4361_vm1, %v4360_v10 }
 0x175   :  { %v3806_v11 = vpop.f32.mrf.mxu0 }
 0x176   :  { %v4615_v15 = vadd.f32 %v3806_v11, %v3658_v12 }
 0x177   :  { %v329_v13 = vpop.f32.mrf.mxu0 }
 0x178   :  { %v4611_v14 = vadd.f32 %v3658_v12, %v329_v13 }
 0x17a   :  { %339 = vrot.lane.b32.xlu0 %v4611_v14, %s4362_s30 }
 0x17e   :  { %417 = vrot.lane.b32.xlu0 %v4615_v15, %s4362_s30 }
 0x1ec   :  { %v340_v16 = vpop.permute.xlu0 %339 }
 0x1ed   :  { %3808 = vmatpush3.xpose.msk.msra.mxu1 %vm341_vm2, %v340_v16 }
 0x1ee   :  { %3812 = vmatprep.subr.mxu1 %v4360_v10 }
 0x1f0   :  { %3810 = vmatmul.mubr.msk.f32.vlgmr.msra.gmra.mxu1 %vm341_vm2, %v4611_v14  ;;  %v418_v17 = vpop.permute.xlu0 %417 }
 0x1f1   :  { %3813 = vmatpush3.xpose.msk.msra.mxu1 %vm341_vm2, %v418_v17  ;;  %3814 = vmatprep.mubr.msk.f32.mxu1 %vm4361_vm1, %v4360_v10 }
 0x1f2   :  { %3822 = vmatprep.subr.mxu1 %v4360_v10 }
 0x1f4   :  { %3815 = vmatmul.mubr.msk.f32.vlgmr.msra.gmra.mxu1 %vm341_vm2, %v4615_v15 }
 0x1f5   :  { %3824 = vmatprep.mubr.msk.f32.mxu1 %vm4361_vm1, %v4360_v10 }
 0x2b0   :  { %v412_v18 = vpop.f32.mrf.mxu1 }
 0x2b1   :  { %v493_v19 = vmul.f32 0.35355338, %v412_v18 }
 0x2b2   :  { %v3811_v20 = vpop.f32.mrf.mxu1 }
 0x2b3   :  { %v495_v21 = vsel %vm341_vm2, %v493_v19, -inf }
 0x2b4   :  { %496 = vmax.xlane.f32.xlu1 %v495_v21  ;;  %v489_v22 = vpop.f32.mrf.mxu1 }
 0x2b5   :  { %v494_v23 = vmul.f32 0.35355338, %v489_v22 }
 0x2b6   :  { %v3816_v24 = vpop.f32.mrf.mxu1 }
 0x2b7   :  { %v498_v25 = vsel %vm341_vm2, %v494_v23, -inf }
 0x2b8   :  { %499 = vmax.xlane.f32.xlu1 %v498_v25 }
 0x2c9   :  { %517 = vrot.lane.b32.xlu1 %v4611_v14, %s4363_s10 }
 0x2cd   :  { %593 = vrot.lane.b32.xlu1 %v4615_v15, %s4363_s10 }
 0x2d1   :  { %671 = vrot.lane.b32.xlu1 %v4611_v14, %s4364_s11 }
 0x2d5   :  { %749 = vrot.lane.b32.xlu1 %v4615_v15, %s4364_s11  ;;  %s4976_s11 = sld [smem:[#allocation40_spill]] }
 0x33d   :  { %v497_v26 = vpop.xlane.xlu1 %496 }
 0x33e   :  { %v501_v27 = vsub.f32 %v493_v19, %v497_v26 }
 0x340   :  { %v503_v28 = vmul.f32 1.442695, %v501_v27 }
 0x341   :  { %v500_v29 = vpop.xlane.xlu1 %499 }
 0x342   :  { %3978 = vpow2.f32 %v503_v28  ;;  %v502_v30 = vsub.f32 %v494_v23, %v500_v29 }
 0x344   :  { %v505_v31 = vmul.f32 1.442695, %v502_v30 }
 0x345   :  { %v518_v32 = vpop.permute.xlu1 %517 }
 0x346   :  { %3980 = vpow2.f32 %v505_v31  ;;  %3818 = vmatpush3.msra.mxu0 %v518_v32 }
 0x347   :  { %3827 = vmatprep.subr.mxu0 %v4360_v10 }
 0x349   :  { %v594_v33 = vpop.permute.xlu1 %593 }
 0x34a   :  { %3823 = vmatpush3.msra.mxu1 %v594_v33 }
 0x34b   :  { %3832 = vmatprep.subr.mxu1 %v4360_v10 }
 0x34d   :  { %v672_v38 = vpop.permute.xlu1 %671 }
 0x34f   :  { %v3979_v34 = vpop.eup %3978 }
 0x350   :  { %v507_v35 = vsel %vm341_vm2, %v3979_v34, 0.0 }
 0x351   :  { %508 = vadd.xlane.f32.xlu0 %v507_v35  ;;  %v750_v39 = vpop.permute.xlu1 %749 }
 0x353   :  { %v3981_v36 = vpop.eup %3980 }
 0x354   :  { %v510_v37 = vsel %vm341_vm2, %v3981_v36, 0.0 }
 0x355   :  { %511 = vadd.xlane.f32.xlu1 %v510_v37 }
 0x366   :  { %747 = vrot.lane.b32.xlu1 %v4615_v15, %s4365_s25 }
 0x367   :  { %669 = vrot.lane.b32.xlu0 %v4611_v14, %s4365_s25 }
 0x3da   :  { %v509_v40 = vpop.xlane.xlu0 %508 }
 0x3db   :  { %3982 = vrcp.f32 %v509_v40 }
 0x3de   :  { %v512_v41 = vpop.xlane.xlu1 %511  ;;  %v670_v46 = vpop.permute.xlu0 %669 }
 0x3df   :  { %3984 = vrcp.f32 %v512_v41 }
 0x3e2   :  { %v748_v47 = vpop.permute.xlu1 %747 }
 0x3e8   :  { %v3983_v42 = vpop.eup %3982 }
 0x3e9   :  { %v515_v43 = vmul.f32 %v3983_v42, %v3979_v34 }
 0x3eb   :  { %3820 = vmatmul.mubr.msk.f32.vlgmr.msra.gmra.mxu0 %vm341_vm2, %v515_v43 }
 0x3ec   :  { %v3985_v44 = vpop.eup %3984  ;;  %3828 = vmatpush3.xpose.msk.msra.mxu0 %vm341_vm2, %v672_v38  ;;  %3829 = vmatprep.mubr.msk.f32.mxu0 %vm4361_vm1, %v4360_v10 }
 0x3ed   :  { %v516_v45 = vmul.f32 %v3985_v44, %v3981_v36  ;;  %3837 = vmatprep.subr.mxu0 %v4360_v10 }
 0x3ef   :  { %3825 = vmatmul.mubr.msk.f32.vlgmr.msra.gmra.mxu1 %vm341_vm2, %v516_v45  ;;  %3830 = vmatmul.mubr.msk.f32.vlgmr.msra.gmra.mxu0 %vm341_vm2, %v670_v46 }
 0x3f0   :  { %3833 = vmatpush3.xpose.msk.msra.mxu1 %vm341_vm2, %v750_v39  ;;  %3834 = vmatprep.mubr.msk.f32.mxu1 %vm4361_vm1, %v4360_v10 }
 0x3f1   :  { %3842 = vmatprep.subr.mxu1 %v4360_v10  ;;  %3839 = vmatprep.mubr.msk.f32.mxu0 %vm4361_vm1, %v4360_v10 }
 0x3f3   :  { %3835 = vmatmul.mubr.msk.f32.vlgmr.msra.gmra.mxu1 %vm341_vm2, %v748_v47 }
 0x3f4   :  { %3844 = vmatprep.mubr.msk.f32.mxu1 %vm4361_vm1, %v4360_v10 }
 0x4ab   :  { %v4661_v48 = vpop.f32.mrf.mxu0 }
 0x4ad   :  { %v3821_v49 = vpop.f32.mrf.mxu0 }
 0x4af   :  { %v4663_v50 = vpop.f32.mrf.mxu1  ;;  %v743_v51 = vpop.f32.mrf.mxu0 }
 0x4b0   :  { %v825_v52 = vmul.f32 0.35355338, %v743_v51 }
 0x4b1   :  { %v3826_v53 = vpop.f32.mrf.mxu1  ;;  %v3831_v54 = vpop.f32.mrf.mxu0 }
 0x4b2   :  { %v827_v55 = vsel %vm341_vm2, %v825_v52, -inf }
 0x4b3   :  { %v821_v56 = vpop.f32.mrf.mxu1  ;;  %828 = vmax.xlane.f32.xlu1 %v827_v55 }
 0x4b4   :  { %v826_v57 = vmul.f32 0.35355338, %v821_v56 }
 0x4b5   :  { %v3836_v58 = vpop.f32.mrf.mxu1 }
 0x4b6   :  { %v830_v59 = vsel %vm341_vm2, %v826_v57, -inf }
 0x4b7   :  { %831 = vmax.xlane.f32.xlu0 %v830_v59 }
 0x4c4   :  { %849 = vrot.lane.b32.xlu1 %v4611_v14, %s4366_s23 }
 0x4c8   :  { %1003 = vrot.lane.b32.xlu1 %v4611_v14, %s4367_s0 }
 0x4cc   :  { %1081 = vrot.lane.b32.xlu1 %v4615_v15, %s4367_s0  ;;  %s4977_s0 = sld [smem:[#allocation43_spill]] }
 0x4cd   :  { %925 = vrot.lane.b32.xlu0 %v4615_v15, %s4366_s23 }
 0x4d1   :  { %1001 = vrot.lane.b32.xlu0 %v4611_v14, %s4368_s14 }
 0x53c   :  { %v829_v60 = vpop.xlane.xlu1 %828 }
 0x53d   :  { %v833_v61 = vsub.f32 %v825_v52, %v829_v60 }
 0x53f   :  { %v835_v62 = vmul.f32 1.442695, %v833_v61 }
 0x540   :  { %v850_v63 = vpop.permute.xlu1 %849  ;;  %v832_v0 = vpop.xlane.xlu0 %831 }
 0x541   :  { %3986 = vpow2.f32 %v835_v62  ;;  %v834_v1 = vsub.f32 %v826_v57, %v832_v0  ;;  %3838 = vmatpush3.msra.mxu0 %v850_v63 }
 0x542   :  { %3847 = vmatprep.subr.mxu0 %v4360_v10 }
 0x543   :  { %v837_v2 = vmul.f32 1.442695, %v834_v1 }
 0x544   :  { %v926_v3 = vpop.permute.xlu0 %925  ;;  %v1004_v11 = vpop.permute.xlu1 %1003 }
 0x545   :  { %3988 = vpow2.f32 %v837_v2  ;;  %3843 = vmatpush3.msra.mxu1 %v926_v3 }
 0x546   :  { %3852 = vmatprep.subr.mxu1 %v4360_v10 }
 0x548   :  { %v1082_v12 = vpop.permute.xlu1 %1081  ;;  %v1002_v21 = vpop.permute.xlu0 %1001 }
 0x54e   :  { %v3987_v4 = vpop.eup %3986 }
 0x54f   :  { %v839_v6 = vsel %vm341_vm2, %v3987_v4, 0.0 }
 0x550   :  { %840 = vadd.xlane.f32.xlu1 %v839_v6 }
 0x552   :  { %v3989_v7 = vpop.eup %3988 }
 0x553   :  { %v842_v8 = vsel %vm341_vm2, %v3989_v7, 0.0 }
 0x554   :  { %843 = vadd.xlane.f32.xlu1 %v842_v8 }
 0x565   :  { %1079 = vrot.lane.b32.xlu1 %v4615_v15, %s4368_s14 }
 0x5d9   :  { %v841_v13 = vpop.xlane.xlu1 %840 }
 0x5da   :  { %3990 = vrcp.f32 %v841_v13 }
 0x5dd   :  { %v844_v16 = vpop.xlane.xlu1 %843 }
 0x5de   :  { %3992 = vrcp.f32 %v844_v16 }
 0x5e1   :  { %v1080_v22 = vpop.permute.xlu1 %1079 }
 0x5e7   :  { %v3991_v17 = vpop.eup %3990 }
 0x5e8   :  { %v847_v18 = vmul.f32 %v3991_v17, %v3987_v4 }
 0x5ea   :  { %3840 = vmatmul.mubr.msk.f32.vlgmr.msra.gmra.mxu0 %vm341_vm2, %v847_v18 }
 0x5eb   :  { %v3993_v19 = vpop.eup %3992  ;;  %3848 = vmatpush3.xpose.msk.msra.mxu0 %vm341_vm2, %v1004_v11  ;;  %3849 = vmatprep.mubr.msk.f32.mxu0 %vm4361_vm1, %v4360_v10 }
 0x5ec   :  { %v848_v20 = vmul.f32 %v3993_v19, %v3989_v7  ;;  %3857 = vmatprep.subr.mxu0 %v4360_v10 }
 0x5ee   :  { %3845 = vmatmul.mubr.msk.f32.vlgmr.msra.gmra.mxu1 %vm341_vm2, %v848_v20  ;;  %3850 = vmatmul.mubr.msk.f32.vlgmr.msra.gmra.mxu0 %vm341_vm2, %v1002_v21 }
 0x5ef   :  { %3853 = vmatpush3.xpose.msk.msra.mxu1 %vm341_vm2, %v1082_v12  ;;  %3854 = vmatprep.mubr.msk.f32.mxu1 %vm4361_vm1, %v4360_v10 }
 0x5f0   :  { %3862 = vmatprep.subr.mxu1 %v4360_v10  ;;  %3859 = vmatprep.mubr.msk.f32.mxu0 %vm4361_vm1, %v4360_v10 }
 0x5f2   :  { %3855 = vmatmul.mubr.msk.f32.vlgmr.msra.gmra.mxu1 %vm341_vm2, %v1080_v22 }
 0x5f3   :  { %3864 = vmatprep.mubr.msk.f32.mxu1 %vm4361_vm1, %v4360_v10 }
 0x6aa   :  { %v4693_v23 = vpop.f32.mrf.mxu0 }
 0x6ac   :  { %v3841_v24 = vpop.f32.mrf.mxu0 }
 0x6ae   :  { %v4695_v25 = vpop.f32.mrf.mxu1  ;;  %v1075_v26 = vpop.f32.mrf.mxu0 }
 0x6af   :  { %v1157_v27 = vmul.f32 0.35355338, %v1075_v26 }
 0x6b0   :  { %v3846_v28 = vpop.f32.mrf.mxu1  ;;  %v3851_v29 = vpop.f32.mrf.mxu0 }
 0x6b1   :  { %v1159_v30 = vsel %vm341_vm2, %v1157_v27, -inf  ;;  %v1699_v28 = vld [vmem:[%s4975_s1 + $0x10] sm:$0xff]  ;;  %v1698_v29 = vld [vmem:[%s4975_s1 + $0x8] sm:$0xff] }
 0x6b2   :  { %v1153_v31 = vpop.f32.mrf.mxu1  ;;  %1160 = vmax.xlane.f32.xlu0 %v1159_v30  ;;  %v1697_v30 = vld [vmem:[%s4975_s1] sm:$0xff] }
 0x6b3   :  { %v1158_v32 = vmul.f32 0.35355338, %v1153_v31 }
 0x6b4   :  { %v3856_v33 = vpop.f32.mrf.mxu1 }
 0x6b5   :  { %v1162_v34 = vsel %vm341_vm2, %v1158_v32, -inf }
 0x6b6   :  { %1163 = vmax.xlane.f32.xlu1 %v1162_v34 }
 0x6c7   :  { %1181 = vrot.lane.b32.xlu1 %v4611_v14, %s4369_s29 }
 0x6c8   :  { %1257 = vrot.lane.b32.xlu0 %v4615_v15, %s4369_s29 }
 0x6cb   :  { %1335 = vrot.lane.b32.xlu1 %v4611_v14, %s4370_s2 }
 0x6cf   :  { %1413 = vrot.lane.b32.xlu1 %v4615_v15, %s4370_s2 }
 0x6d3   :  { %1411 = vrot.lane.b32.xlu1 %v4615_v15, %s4371_s16 }
 0x73b   :  { %v1161_v35 = vpop.xlane.xlu0 %1160 }
 0x73c   :  { %v1165_v36 = vsub.f32 %v1157_v27, %v1161_v35 }
 0x73e   :  { %v1167_v37 = vmul.f32 1.442695, %v1165_v36 }
 0x73f   :  { %v1164_v38 = vpop.xlane.xlu1 %1163  ;;  %v1258_v39 = vpop.permute.xlu0 %1257 }
 0x740   :  { %3994 = vpow2.f32 %v1167_v37  ;;  %v1166_v40 = vsub.f32 %v1158_v32, %v1164_v38  ;;  %3863 = vmatpush3.msra.mxu1 %v1258_v39 }
 0x741   :  { %3872 = vmatprep.subr.mxu1 %v4360_v10 }
 0x742   :  { %v1169_v41 = vmul.f32 1.442695, %v1166_v40 }
 0x743   :  { %v1182_v42 = vpop.permute.xlu1 %1181 }
 0x744   :  { %3996 = vpow2.f32 %v1169_v41  ;;  %3858 = vmatpush3.msra.mxu0 %v1182_v42 }
 0x745   :  { %3867 = vmatprep.subr.mxu0 %v4360_v10 }
 0x747   :  { %v1336_v51 = vpop.permute.xlu1 %1335 }
 0x74b   :  { %v1414_v55 = vpop.permute.xlu1 %1413 }
 0x74d   :  { %v3995_v43 = vpop.eup %3994 }
 0x74e   :  { %v1171_v44 = vsel %vm341_vm2, %v3995_v43, 0.0 }
 0x74f   :  { %1172 = vadd.xlane.f32.xlu0 %v1171_v44  ;;  %v1412_v58 = vpop.permute.xlu1 %1411 }
 0x751   :  { %v3997_v45 = vpop.eup %3996 }
 0x752   :  { %v1174_v46 = vsel %vm341_vm2, %v3997_v45, 0.0 }
 0x753   :  { %1175 = vadd.xlane.f32.xlu0 %v1174_v46 }
 0x769   :  { %1333 = vrot.lane.b32.xlu0 %v4611_v14, %s4371_s16 }
 0x7d8   :  { %v1173_v47 = vpop.xlane.xlu0 %1172 }
 0x7d9   :  { %3998 = vrcp.f32 %v1173_v47  ;;  %v3685_v47 = vld [vmem:[%s4976_s11] ss:$0 sm:$0xff] }
 0x7dc   :  { %v1176_v49 = vpop.xlane.xlu0 %1175 }
 0x7dd   :  { %4000 = vrcp.f32 %v1176_v49 }
 0x7e0   :  { %v1334_v57 = vpop.permute.xlu0 %1333 }
 0x7e6   :  { %v3999_v52 = vpop.eup %3998 }
 0x7e7   :  { %v1179_v53 = vmul.f32 %v3999_v52, %v3995_v43 }
 0x7e9   :  { %3860 = vmatmul.mubr.msk.f32.vlgmr.msra.gmra.mxu0 %vm341_vm2, %v1179_v53 }
 0x7ea   :  { %v4001_v54 = vpop.eup %4000  ;;  %3868 = vmatpush3.xpose.msk.msra.mxu0 %vm341_vm2, %v1336_v51  ;;  %3869 = vmatprep.mubr.msk.f32.mxu0 %vm4361_vm1, %v4360_v10 }
 0x7eb   :  { %v1180_v56 = vmul.f32 %v4001_v54, %v3997_v45  ;;  %3877 = vmatprep.subr.mxu0 %v4360_v10 }
 0x7ed   :  { %3865 = vmatmul.mubr.msk.f32.vlgmr.msra.gmra.mxu1 %vm341_vm2, %v1180_v56  ;;  %3870 = vmatmul.mubr.msk.f32.vlgmr.msra.gmra.mxu0 %vm341_vm2, %v1334_v57 }
 0x7ee   :  { %3873 = vmatpush3.xpose.msk.msra.mxu1 %vm341_vm2, %v1414_v55  ;;  %3874 = vmatprep.mubr.msk.f32.mxu1 %vm4361_vm1, %v4360_v10 }
 0x7ef   :  { %3882 = vmatprep.subr.mxu1 %v4360_v10  ;;  %3879 = vmatprep.mubr.msk.f32.mxu0 %vm4361_vm1, %v4360_v10 }
 0x7f1   :  { %3875 = vmatmul.mubr.msk.f32.vlgmr.msra.gmra.mxu1 %vm341_vm2, %v1412_v58 }
 0x7f2   :  { %3884 = vmatprep.mubr.msk.f32.mxu1 %vm4361_vm1, %v4360_v10 }
 0x8a9   :  { %v1253_v59 = vpop.f32.mrf.mxu0 }
 0x8ab   :  { %v3861_v60 = vpop.f32.mrf.mxu0 }
 0x8ad   :  { %v1329_v61 = vpop.f32.mrf.mxu1  ;;  %v1407_v62 = vpop.f32.mrf.mxu0 }
 0x8ae   :  { %v1489_v63 = vmul.f32 0.35355338, %v1407_v62 }
 0x8af   :  { %v3866_v0 = vpop.f32.mrf.mxu1  ;;  %v3871_v1 = vpop.f32.mrf.mxu0 }
 0x8b0   :  { %v1491_v2 = vsel %vm341_vm2, %v1489_v63, -inf  ;;  %v1838_v1 = vld [vmem:[%s4977_s0 + $0x10] sm:$0xff] }
 0x8b1   :  { %v1485_v3 = vpop.f32.mrf.mxu1  ;;  %1492 = vmax.xlane.f32.xlu0 %v1491_v2  ;;  %v1837_v2 = vld [vmem:[%s4977_s0 + $0x8] sm:$0xff] }
 0x8b2   :  { %v1490_v4 = vmul.f32 0.35355338, %v1485_v3  ;;  %v1836_v3 = vld [vmem:[%s4977_s0] sm:$0xff] }
 0x8b3   :  { %v3876_v6 = vpop.f32.mrf.mxu1 }
 0x8b4   :  { %v1494_v7 = vsel %vm341_vm2, %v1490_v4, -inf }
 0x8b5   :  { %1495 = vmax.xlane.f32.xlu1 %v1494_v7 }
 0x8c6   :  { %1513 = vrot.lane.b32.xlu1 %v4611_v14, %s4372_s7 }
 0x8ca   :  { %1667 = vrot.lane.b32.xlu1 %v4693_v23, %s4358_s12 }
 0x8ce   :  { %1669 = vrot.lane.b32.xlu1 %v4695_v25, %s4358_s12 }
 0x8d2   :  { %1677 = vrot.lane.b32.xlu1 %v1329_v61, %s4346_s9 }
 0x93a   :  { %v1493_v10 = vpop.xlane.xlu0 %1492 }
 0x93b   :  { %v1497_v8 = vsub.f32 %v1489_v63, %v1493_v10 }
 0x93d   :  { %v1499_v11 = vmul.f32 1.442695, %v1497_v8 }
 0x93e   :  { %v1496_v12 = vpop.xlane.xlu1 %1495 }
 0x93f   :  { %4002 = vpow2.f32 %v1499_v11  ;;  %v1498_v13 = vsub.f32 %v1490_v4, %v1496_v12  ;;  %v1937_v4 = vld [vmem:[%s4978_s8 + $0x38] sm:$0xff] }
 0x941   :  { %v1501_v16 = vmul.f32 1.442695, %v1498_v13 }
 0x942   :  { %v1514_v17 = vpop.permute.xlu1 %1513 }
 0x943   :  { %4004 = vpow2.f32 %v1501_v16  ;;  %3878 = vmatpush3.msra.mxu0 %v1514_v17  ;;  %v3688_v16 = vld [vmem:[%s4979_s20] ss:$0 sm:$0xff] }
 0x946   :  { %v1668_v35 = vpop.permute.xlu1 %1667 }
 0x947   :  { %v1689_v38 = vsel %vm341_vm2, %v4661_v48, %v1668_v35 }
 0x94a   :  { %v1670_v36 = vpop.permute.xlu1 %1669 }
 0x94b   :  { %v1690_v43 = vsel %vm341_vm2, %v4663_v50, %v1670_v36 }
 0x94c   :  { %v4003_v18 = vpop.eup %4002 }
 0x94d   :  { %v1503_v14 = vsel %vm341_vm2, %v4003_v18, 0.0 }
 0x94e   :  { %1504 = vadd.xlane.f32.xlu0 %v1503_v14  ;;  %v1678_v39 = vpop.permute.xlu1 %1677 }
 0x94f   :  { %v1693_v44 = vsel %vm1691_vm4, %v1690_v43, %v1678_v39 }
 0x950   :  { %v4005_v19 = vpop.eup %4004 }
 0x951   :  { %v1506_v20 = vsel %vm341_vm2, %v4005_v19, 0.0 }
 0x952   :  { %1507 = vadd.xlane.f32.xlu0 %v1506_v20 }
 0x968   :  { %1589 = vrot.lane.b32.xlu0 %v4615_v15, %s4372_s7  ;;  %v1700_v15 = vld [vmem:[%s4975_s1 + $0x18] sm:$0xff] }
 0x969   :  { %3887 = vmatprep.subr.mxu0 %v1700_v15 }
 0x96c   :  { %1675 = vrot.lane.b32.xlu0 %v1253_v59, %s4346_s9 }
 0x9d7   :  { %v1505_v21 = vpop.xlane.xlu0 %1504 }
 0x9d8   :  { %4006 = vrcp.f32 %v1505_v21 }
 0x9db   :  { %v1508_v22 = vpop.xlane.xlu0 %1507 }
 0x9dc   :  { %4008 = vrcp.f32 %v1508_v22 }
 0x9df   :  { %v1590_v23 = vpop.permute.xlu0 %1589 }
 0x9e0   :  { %3883 = vmatpush3.msra.mxu1 %v1590_v23 }
 0x9e3   :  { %v1676_v37 = vpop.permute.xlu0 %1675 }
 0x9e4   :  { %v1692_v40 = vsel %vm1691_vm4, %v1689_v38, %v1676_v37  ;;  %v3693_v37 = vld [vmem:[#allocation5] ss:$0 sm:$0xff] }
 0x9e5   :  { %v4007_v24 = vpop.eup %4006 }
 0x9e6   :  { %v1511_v25 = vmul.f32 %v4007_v24, %v4003_v18  ;;  %v1936_v24 = vld [vmem:[%s4978_s8 + $0x30] sm:$0xff] }
 0x9e8   :  { %3880 = vmatmul.mubr.msk.f32.vlgmr.msra.gmra.mxu0 %vm341_vm2, %v1511_v25  ;;  %v1935_v25 = vld [vmem:[%s4978_s8 + $0x28] sm:$0xff] }
 0x9e9   :  { %v4009_v26 = vpop.eup %4008  ;;  %3888 = vmatpush3.msra.mxu0 %v1700_v15  ;;  %v1932_v15 = vld [vmem:[%s4978_s8 + $0x10] sm:$0xff] }
 0x9ea   :  { %v1512_v27 = vmul.f32 %v4009_v26, %v4005_v19  ;;  %3889 = vmatprep.subr.mxu0 %v1699_v28  ;;  %v1934_v26 = vld [vmem:[%s4978_s8 + $0x20] sm:$0xff] }
 0x9eb   :  { %3890 = vmatpush3.msra.mxu0 %v1699_v28  ;;  %v1931_v28 = vld [vmem:[%s4978_s8 + $0x8] sm:$0xff] }
 0x9ec   :  { %3885 = vmatmul.mubr.msk.f32.vlgmr.msra.gmra.mxu1 %vm341_vm2, %v1512_v27  ;;  %3891 = vmatprep.subr.mxu0 %v1698_v29  ;;  %v1933_v27 = vld [vmem:[%s4978_s8 + $0x18] sm:$0xff]  ;;  %vm3454_vm2 = vcmask 1041408  }
 0x9ed   :  { %3892 = vmatpush3.msra.mxu0 %v1698_v29  ;;  %v1930_v29 = vld [vmem:[%s4978_s8] sm:$0xff] }
 0x9ee   :  { %3893 = vmatprep.subr.mxu0 %v1697_v30 }
 0x9ef   :  { %3894 = vmatpush3.msra.mxu0 %v1697_v30  ;;  %v3690_v30 = vld [vmem:[#allocation2] ss:$0 sm:$0xff] }
 0xaa8   :  { %v1585_v31 = vpop.f32.mrf.mxu0 }
 0xaa9   :  { %1683 = vrot.lane.b32.xlu0 %v1585_v31, %s4373_s13 }
 0xaaa   :  { %v3881_v32 = vpop.f32.mrf.mxu0 }
 0xaac   :  { %v1661_v33 = vpop.f32.mrf.mxu1 }
 0xaad   :  { %1685 = vrot.lane.b32.xlu1 %v1661_v33, %s4373_s13  ;;  %s4980_s13 = sld [smem:[#allocation42_spill]] }
 0xaae   :  { %v3886_v34 = vpop.f32.mrf.mxu1 }
 0xab3   :  { %v3689_v18 = vld [vmem:[%s4980_s13] ss:$0 sm:$0xff] }
 0xb1b   :  { %v1684_v41 = vpop.permute.xlu0 %1683 }
 0xb1c   :  { %v1695_v42 = vsel %vm1694_vm3, %v1692_v40, %v1684_v41 }
 0xb1d   :  { %3895 = vmatprep.mubr.msk.f32.mxu0 %vm256_vm0, %v1695_v42 }
 0xb1f   :  { %v1686_v45 = vpop.permute.xlu1 %1685 }
 0xb20   :  { %v1696_v46 = vsel %vm1694_vm3, %v1693_v44, %v1686_v45 }
 0xb21   :  { %3896 = vmatmul.mubr.msk.f32.vlgmr.msra.gmra.mxu0 %vm256_vm0, %v1696_v46 }
 0xbe1   :  { %v3897_v48 = vpop.f32.mrf.mxu0 }
 0xbe2   :  { %v1786_v49 = vadd.f32 %v3897_v48, %v3685_v47 }
 0xbe3   :  { %v1780_v51 = vpop.f32.mrf.mxu0 }
 0xbe4   :  { %v1781_v52 = vadd.f32 %v3685_v47, %v1780_v51  ;;  %v1790_v53 = vadd.f32 %v1786_v49, %v4598_v9 }
 0xbe6   :  { %v1794_v54 = vsel %vm256_vm0, %v1790_v53, 0.0  ;;  %v1789_v55 = vadd.f32 %v1781_v52, %v4585_v5  ;;  %v1839_v5 = vld [vmem:[%s4977_s0 + $0x18] sm:$0xff] }
 0xbe7   :  { %1795 = vadd.xlane.f32.xlu1 %v1794_v54  ;;  %3898 = vmatprep.subr.mxu0 %v1839_v5 }
 0xbe8   :  { %v1791_v50 = vsel %vm256_vm0, %v1789_v55, 0.0  ;;  %3899 = vmatpush3.msra.mxu0 %v1839_v5  ;;  %v2177_v5 = vld [vmem:[#allocation10 + $0x1a0] sm:$0xff] }
 0xbe9   :  { %1792 = vadd.xlane.f32.xlu0 %v1791_v50  ;;  %3900 = vmatprep.subr.mxu0 %v1838_v1 }
 0xbea   :  { %3901 = vmatpush3.msra.mxu0 %v1838_v1  ;;  %v2179_v1 = vld [vmem:[#allocation10 + $0x1b0] sm:$0xff] }
 0xbeb   :  { %3902 = vmatprep.subr.mxu0 %v1837_v2 }
 0xbec   :  { %3903 = vmatpush3.msra.mxu0 %v1837_v2  ;;  %v2174_v2 = vld [vmem:[#allocation10 + $0x188] sm:$0xff] }
 0xbed   :  { %3904 = vmatprep.subr.mxu0 %v1836_v3 }
 0xbee   :  { %3905 = vmatpush3.msra.mxu0 %v1836_v3  ;;  %v2176_v3 = vld [vmem:[#allocation10 + $0x198] sm:$0xff] }
 0xbef   :  { %3909 = vmatprep.subr.mxu0 %v1937_v4 }
 0xc70   :  { %v1796_v56 = vpop.xlane.xlu1 %1795 }
 0xc71   :  { %v1799_v57 = vmul.f32 0.03125, %v1796_v56  ;;  %v2186_v56 = vld [vmem:[#allocation10 + $0x1e8] sm:$0xff] }
 0xc72   :  { %v1793_v58 = vpop.xlane.xlu0 %1792  ;;  %2275 = vmatprep.subr.mxu1 %v2186_v56  ;;  %v2125_v56 = vld [vmem:[#allocation10] sm:$0xff] }
 0xc73   :  { %v1798_v59 = vmul.f32 0.03125, %v1793_v58  ;;  %v1801_v60 = vsub.f32 %v1790_v53, %v1799_v57  ;;  %v2188_v57 = vld [vmem:[#allocation10 + $0x1f8] sm:$0xff]  ;;  %v2185_v58 = vld [vmem:[#allocation10 + $0x1e0] sm:$0xff] }
 0xc74   :  { %2276 = vmatpush1.msra.mxu1 %v2185_v58  ;;  %v2250_v58 = vld [vmem:[#allocation10 + $0x3e8] sm:$0xff] }
 0xc75   :  { %v1800_v61 = vsub.f32 %v1789_v55, %v1798_v59  ;;  %v1803_v0 = vmul.f32 %v1801_v60, %v1801_v60  ;;  %v2187_v59 = vld [vmem:[#allocation10 + $0x1f0] sm:$0xff] }
 0xc77   :  { %v1802_v62 = vmul.f32 %v1800_v61, %v1800_v61  ;;  %v1807_v9 = vsel %vm256_vm0, %v1803_v0, 0.0  ;;  %v2178_v0 = vld [vmem:[#allocation10 + $0x1a8] sm:$0xff] }
 0xc79   :  { %v1804_v63 = vsel %vm256_vm0, %v1802_v62, 0.0  ;;  %v2181_v62 = vld [vmem:[#allocation10 + $0x1c0] sm:$0xff] }
 0xc7a   :  { %1805 = vadd.xlane.f32.xlu0 %v1804_v63  ;;  %v2183_v63 = vld [vmem:[#allocation10 + $0x1d0] sm:$0xff] }
 0xc7e   :  { %1808 = vadd.xlane.f32.xlu0 %v1807_v9  ;;  %v2180_v9 = vld [vmem:[#allocation10 + $0x1b8] sm:$0xff] }
 0xd03   :  { %v1806_v6 = vpop.xlane.xlu0 %1805 }
 0xd04   :  { %v1810_v7 = vmul.f32 0.03125, %v1806_v6  ;;  %v2175_v6 = vld [vmem:[#allocation10 + $0x190] sm:$0xff] }
 0xd06   :  { %v1812_v10 = vadd.f32 1e-05, %v1810_v7  ;;  %v2170_v7 = vld [vmem:[#allocation10 + $0x168] sm:$0xff] }
 0xd07   :  { %v1809_v8 = vpop.xlane.xlu0 %1808 }
 0xd08   :  { %4010 = vrsqrt.f32 %v1812_v10  ;;  %v1811_v11 = vmul.f32 0.03125, %v1809_v8  ;;  %v2172_v10 = vld [vmem:[#allocation10 + $0x178] sm:$0xff]  ;;  %v2169_v8 = vld [vmem:[#allocation10 + $0x160] sm:$0xff] }
 0xd0a   :  { %v1813_v12 = vadd.f32 1e-05, %v1811_v11  ;;  %v2171_v11 = vld [vmem:[#allocation10 + $0x170] sm:$0xff] }
 0xd0c   :  { %4012 = vrsqrt.f32 %v1813_v12  ;;  %v2166_v12 = vld [vmem:[#allocation10 + $0x148] sm:$0xff] }
 0xd15   :  { %v4011_v13 = vpop.eup %4010 }
 0xd16   :  { %v1816_v17 = vmul.f32 %v4011_v13, %v1800_v61  ;;  %v2184_v61 = vld [vmem:[#allocation10 + $0x1d8] sm:$0xff] }
 0xd17   :  { %v2168_v13 = vld [vmem:[#allocation10 + $0x158] sm:$0xff] }
 0xd18   :  { %v1825_v14 = vmul.f32 %v3688_v16, %v1816_v17  ;;  %v2167_v17 = vld [vmem:[#allocation10 + $0x150] sm:$0xff] }
 0xd19   :  { %v4013_v19 = vpop.eup %4012 }
 0xd1a   :  { %v1817_v20 = vmul.f32 %v4013_v19, %v1801_v60  ;;  %v1834_v21 = vadd.f32 %v3689_v18, %v1825_v14  ;;  %v2182_v60 = vld [vmem:[#allocation10 + $0x1c8] sm:$0xff]  ;;  %v2164_v14 = vld [vmem:[#allocation10 + $0x138] sm:$0xff]  ;;  %v2161_v19 = vld [vmem:[#allocation10 + $0x120] sm:$0xff] }
 0xd1b   :  { %2277 = vmatprep.subr.mxu1 %v2182_v60  ;;  %v2249_v60 = vld [vmem:[#allocation10 + $0x3e0] sm:$0xff] }
 0xd1c   :  { %v1826_v22 = vmul.f32 %v3688_v16, %v1817_v20  ;;  %3906 = vmatprep.mubr.msk.f32.mxu0 %vm256_vm0, %v1834_v21  ;;  %2278 = vmatpush1.msra.mxu1 %v2181_v62  ;;  %v2165_v16 = vld [vmem:[#allocation10 + $0x140] sm:$0xff]  ;;  %v2163_v20 = vld [vmem:[#allocation10 + $0x130] sm:$0xff]  ;;  %v2246_v62 = vld [vmem:[#allocation10 + $0x3c8] sm:$0xff] }
 0xd1d   :  { %2279 = vmatprep.subr.mxu1 %v2178_v0  ;;  %v2245_v0 = vld [vmem:[#allocation10 + $0x3c0] sm:$0xff] }
 0xd1e   :  { %v1835_v23 = vadd.f32 %v3689_v18, %v1826_v22  ;;  %2280 = vmatpush1.msra.mxu1 %v2177_v5  ;;  %v2162_v18 = vld [vmem:[#allocation10 + $0x128] sm:$0xff]  ;;  %v2160_v22 = vld [vmem:[#allocation10 + $0x118] sm:$0xff] }
 0xd1f   :  { %2281 = vmatprep.subr.mxu1 %v2174_v2  ;;  %v2242_v5 = vld [vmem:[#allocation10 + $0x3a8] sm:$0xff]  ;;  %v2241_v2 = vld [vmem:[#allocation10 + $0x3a0] sm:$0xff] }
 0xd20   :  { %3907 = vmatmul.mubr.msk.f32.vlgmr.msra.gmra.mxu0 %vm256_vm0, %v1835_v23 }
 0xd21   :  { %3910 = vmatpush3.msra.mxu0 %v1937_v4  ;;  %v2173_v4 = vld [vmem:[#allocation10 + $0x180] sm:$0xff] }
 0xd22   :  { %3911 = vmatprep.subr.mxu0 %v1936_v24  ;;  %2282 = vmatpush1.msra.mxu1 %v2173_v4  ;;  %v2238_v4 = vld [vmem:[#allocation10 + $0x388] sm:$0xff] }
 0xd23   :  { %3912 = vmatpush3.msra.mxu0 %v1936_v24  ;;  %2283 = vmatprep.subr.mxu1 %v2170_v7  ;;  %v2159_v24 = vld [vmem:[#allocation10 + $0x110] sm:$0xff]  ;;  %v2237_v7 = vld [vmem:[#allocation10 + $0x380] sm:$0xff] }
 0xd24   :  { %3913 = vmatprep.subr.mxu0 %v1935_v25  ;;  %2284 = vmatpush1.msra.mxu1 %v2169_v8  ;;  %v2234_v8 = vld [vmem:[#allocation10 + $0x368] sm:$0xff] }
 0xd25   :  { %3914 = vmatpush3.msra.mxu0 %v1935_v25  ;;  %2285 = vmatprep.subr.mxu1 %v2166_v12  ;;  %v2154_v25 = vld [vmem:[#allocation10 + $0xe8] sm:$0xff]  ;;  %v2233_v12 = vld [vmem:[#allocation10 + $0x360] sm:$0xff] }
 0xd26   :  { %3915 = vmatprep.subr.mxu0 %v1934_v26  ;;  %2286 = vmatpush1.msra.mxu1 %v2165_v16  ;;  %v2230_v16 = vld [vmem:[#allocation10 + $0x348] sm:$0xff] }
 0xd27   :  { %3916 = vmatpush3.msra.mxu0 %v1934_v26  ;;  %2287 = vmatprep.subr.mxu1 %v2162_v18  ;;  %v2156_v26 = vld [vmem:[#allocation10 + $0xf8] sm:$0xff]  ;;  %v2229_v18 = vld [vmem:[#allocation10 + $0x340] sm:$0xff] }
 0xd28   :  { %3917 = vmatprep.subr.mxu0 %v1933_v27  ;;  %2288 = vmatpush1.msra.mxu1 %v2161_v19  ;;  %v2226_v19 = vld [vmem:[#allocation10 + $0x328] sm:$0xff] }
 0xd29   :  { %3918 = vmatpush3.msra.mxu0 %v1933_v27  ;;  %v2153_v27 = vld [vmem:[#allocation10 + $0xe0] sm:$0xff] }
 0xd2a   :  { %3919 = vmatprep.subr.mxu0 %v1932_v15 }
 0xd2b   :  { %3920 = vmatpush3.msra.mxu0 %v1932_v15  ;;  %v2155_v15 = vld [vmem:[#allocation10 + $0xf0] sm:$0xff] }
 0xd2c   :  { %3921 = vmatprep.subr.mxu0 %v1931_v28 }
 0xd2d   :  { %3922 = vmatpush3.msra.mxu0 %v1931_v28  ;;  %v2150_v28 = vld [vmem:[#allocation10 + $0xc8] sm:$0xff] }
 0xd2e   :  { %3923 = vmatprep.subr.mxu0 %v1930_v29 }
 0xd2f   :  { %3924 = vmatpush3.msra.mxu0 %v1930_v29  ;;  %v2152_v29 = vld [vmem:[#allocation10 + $0xd8] sm:$0xff] }
 0xd30   :  { %2346 = vmatprep.subr.mxu0 %v2188_v57  ;;  %v2127_v57 = vld [vmem:[#allocation10 + $0x10] sm:$0xff] }
 0xde0   :  { %v3908_v31 = vpop.f32.mrf.mxu0 }
 0xde1   :  { %v1925_v32 = vadd.f32 %v3908_v31, %v3690_v30  ;;  %v2151_v31 = vld [vmem:[#allocation10 + $0xd0] sm:$0xff] }
 0xde2   :  { %v1919_v33 = vpop.f32.mrf.mxu0 }
 0xde3   :  { %v1920_v34 = vadd.f32 %v3690_v30, %v1919_v33  ;;  %v1929_v36 = vmax.f32 %v1925_v32, 0.0  ;;  %v2149_v30 = vld [vmem:[#allocation10 + $0xc0] sm:$0xff]  ;;  %v2146_v32 = vld [vmem:[#allocation10 + $0xa8] sm:$0xff]  ;;  %v2148_v33 = vld [vmem:[#allocation10 + $0xb8] sm:$0xff] }
 0xde5   :  { %v1928_v35 = vmax.f32 %v1920_v34, 0.0  ;;  %v2145_v34 = vld [vmem:[#allocation10 + $0xa0] sm:$0xff] }
 0xde7   :  { %3925 = vmatprep.mubr.msk.f32.mxu0 %vm1945_vm5, %v1928_v35  ;;  %v2147_v35 = vld [vmem:[#allocation10 + $0xb0] sm:$0xff] }
 0xde8   :  { %3926 = vmatmul.mubr.msk.f32.vlgmr.msra.gmra.mxu0 %vm1945_vm5, %v1929_v36  ;;  %v2142_v36 = vld [vmem:[#allocation10 + $0x88] sm:$0xff] }
 0xde9   :  { %2347 = vmatpush1.msra.mxu0 %v2187_v59  ;;  %v2252_v59 = vld [vmem:[#allocation10 + $0x3f8] sm:$0xff] }
 0xdea   :  { %2348 = vmatprep.subr.mxu0 %v2184_v61  ;;  %v2251_v61 = vld [vmem:[#allocation10 + $0x3f0] sm:$0xff] }
 0xdeb   :  { %2349 = vmatpush1.msra.mxu0 %v2183_v63  ;;  %v2248_v63 = vld [vmem:[#allocation10 + $0x3d8] sm:$0xff] }
 0xdec   :  { %2350 = vmatprep.subr.mxu0 %v2180_v9  ;;  %v2247_v9 = vld [vmem:[#allocation10 + $0x3d0] sm:$0xff] }
 0xded   :  { %2351 = vmatpush1.msra.mxu0 %v2179_v1  ;;  %v2244_v1 = vld [vmem:[#allocation10 + $0x3b8] sm:$0xff] }
 0xdee   :  { %2352 = vmatprep.subr.mxu0 %v2176_v3  ;;  %v2243_v3 = vld [vmem:[#allocation10 + $0x3b0] sm:$0xff] }
 0xdef   :  { %2353 = vmatpush1.msra.mxu0 %v2175_v6  ;;  %v2240_v6 = vld [vmem:[#allocation10 + $0x398] sm:$0xff] }
 0xdf0   :  { %2354 = vmatprep.subr.mxu0 %v2172_v10  ;;  %v2239_v10 = vld [vmem:[#allocation10 + $0x390] sm:$0xff] }
 0xdf1   :  { %2355 = vmatpush1.msra.mxu0 %v2171_v11  ;;  %v2236_v11 = vld [vmem:[#allocation10 + $0x378] sm:$0xff] }
 0xdf2   :  { %2356 = vmatprep.subr.mxu0 %v2168_v13  ;;  %v2235_v13 = vld [vmem:[#allocation10 + $0x370] sm:$0xff] }
 0xdf3   :  { %2357 = vmatpush1.msra.mxu0 %v2167_v17  ;;  %v2232_v17 = vld [vmem:[#allocation10 + $0x358] sm:$0xff] }
 0xdf4   :  { %2358 = vmatprep.subr.mxu0 %v2164_v14  ;;  %v2231_v14 = vld [vmem:[#allocation10 + $0x350] sm:$0xff] }
 0xdf5   :  { %2359 = vmatpush1.msra.mxu0 %v2163_v20  ;;  %v2228_v20 = vld [vmem:[#allocation10 + $0x338] sm:$0xff] }
 0xdf6   :  { %2360 = vmatprep.subr.mxu0 %v2160_v22  ;;  %v2227_v22 = vld [vmem:[#allocation10 + $0x330] sm:$0xff] }
 0xdf7   :  { %2361 = vmatpush1.msra.mxu0 %v2159_v24  ;;  %v2224_v24 = vld [vmem:[#allocation10 + $0x318] sm:$0xff] }
 0xdf8   :  { %2362 = vmatprep.subr.mxu0 %v2156_v26  ;;  %v2223_v26 = vld [vmem:[#allocation10 + $0x310] sm:$0xff] }
 0xdf9   :  { %2363 = vmatpush1.msra.mxu0 %v2155_v15  ;;  %v2220_v15 = vld [vmem:[#allocation10 + $0x2f8] sm:$0xff] }
 0xdfa   :  { %2364 = vmatprep.subr.mxu0 %v2152_v29  ;;  %v2219_v29 = vld [vmem:[#allocation10 + $0x2f0] sm:$0xff] }
 0xdfb   :  { %2365 = vmatpush1.msra.mxu0 %v2151_v31  ;;  %v2216_v31 = vld [vmem:[#allocation10 + $0x2d8] sm:$0xff] }
 0xdfc   :  { %2366 = vmatprep.subr.mxu0 %v2148_v33  ;;  %v2215_v33 = vld [vmem:[#allocation10 + $0x2d0] sm:$0xff] }
 0xdfd   :  { %2367 = vmatpush1.msra.mxu0 %v2147_v35  ;;  %v2212_v35 = vld [vmem:[#allocation10 + $0x2b8] sm:$0xff] }
 0xea8   :  { %v3927_v38 = vpop.f32.mrf.mxu0 }
 0xea9   :  { %v2024_v39 = vadd.f32 %v3927_v38, %v3693_v37  ;;  %v2141_v38 = vld [vmem:[#allocation10 + $0x80] sm:$0xff] }
 0xeaa   :  { %v2018_v40 = vpop.f32.mrf.mxu0 }
 0xeab   :  { %v2019_v41 = vadd.f32 %v3693_v37, %v2018_v40  ;;  %v2028_v42 = vadd.f32 %v2024_v39, %v1835_v23  ;;  %v2157_v23 = vld [vmem:[#allocation10 + $0x100] sm:$0xff]  ;;  %v2144_v37 = vld [vmem:[#allocation10 + $0x98] sm:$0xff]  ;;  %v2143_v39 = vld [vmem:[#allocation10 + $0x90] sm:$0xff] }
 0xeac   :  { %v2138_v40 = vld [vmem:[#allocation10 + $0x68] sm:$0xff]  ;;  %2368 = vmatprep.subr.mxu0 %v2144_v37  ;;  %v2211_v37 = vld [vmem:[#allocation10 + $0x2b0] sm:$0xff] }
 0xead   :  { %v2032_v43 = vsel %vm256_vm0, %v2028_v42, 0.0  ;;  %v2027_v44 = vadd.f32 %v2019_v41, %v1834_v21  ;;  %v2158_v21 = vld [vmem:[#allocation10 + $0x108] sm:$0xff]  ;;  %v2140_v41 = vld [vmem:[#allocation10 + $0x78] sm:$0xff]  ;;  %2369 = vmatpush1.msra.mxu0 %v2143_v39 }
 0xeae   :  { %2033 = vadd.xlane.f32.xlu0 %v2032_v43  ;;  %2289 = vmatprep.subr.mxu1 %v2158_v21  ;;  %v2139_v43 = vld [vmem:[#allocation10 + $0x70] sm:$0xff]  ;;  %v2225_v21 = vld [vmem:[#allocation10 + $0x320] sm:$0xff]  ;;  %v2208_v39 = vld [vmem:[#allocation10 + $0x298] sm:$0xff] }
 0xeaf   :  { %v2029_v45 = vsel %vm256_vm0, %v2027_v44, 0.0  ;;  %2290 = vmatpush1.msra.mxu1 %v2157_v23  ;;  %2370 = vmatprep.subr.mxu0 %v2140_v41  ;;  %v2222_v23 = vld [vmem:[#allocation10 + $0x308] sm:$0xff]  ;;  %v2207_v41 = vld [vmem:[#allocation10 + $0x290] sm:$0xff] }
 0xeb0   :  { %2030 = vadd.xlane.f32.xlu1 %v2029_v45  ;;  %2291 = vmatprep.subr.mxu1 %v2154_v25  ;;  %v2136_v45 = vld [vmem:[#allocation10 + $0x58] sm:$0xff]  ;;  %v2221_v25 = vld [vmem:[#allocation10 + $0x300] sm:$0xff] }
 0xeb1   :  { %2292 = vmatpush1.msra.mxu1 %v2153_v27  ;;  %2371 = vmatpush1.msra.mxu0 %v2139_v43  ;;  %v2218_v27 = vld [vmem:[#allocation10 + $0x2e8] sm:$0xff] }
 0xeb2   :  { %2293 = vmatprep.subr.mxu1 %v2150_v28  ;;  %2372 = vmatprep.subr.mxu0 %v2136_v45  ;;  %v2217_v28 = vld [vmem:[#allocation10 + $0x2e0] sm:$0xff] }
 0xeb3   :  { %2294 = vmatpush1.msra.mxu1 %v2149_v30  ;;  %v2214_v30 = vld [vmem:[#allocation10 + $0x2c8] sm:$0xff] }
 0xeb4   :  { %2295 = vmatprep.subr.mxu1 %v2146_v32  ;;  %v2213_v32 = vld [vmem:[#allocation10 + $0x2c0] sm:$0xff] }
 0xeb5   :  { %2296 = vmatpush1.msra.mxu1 %v2145_v34  ;;  %v2210_v34 = vld [vmem:[#allocation10 + $0x2a8] sm:$0xff] }
 0xeb6   :  { %2297 = vmatprep.subr.mxu1 %v2142_v36  ;;  %v2209_v36 = vld [vmem:[#allocation10 + $0x2a0] sm:$0xff] }
 0xeb7   :  { %2298 = vmatpush1.msra.mxu1 %v2141_v38  ;;  %v2206_v38 = vld [vmem:[#allocation10 + $0x288] sm:$0xff] }
 0xeb8   :  { %2299 = vmatprep.subr.mxu1 %v2138_v40  ;;  %v2205_v40 = vld [vmem:[#allocation10 + $0x280] sm:$0xff] }
 0xf37   :  { %v2034_v46 = vpop.xlane.xlu0 %2033 }
 0xf38   :  { %v2036_v47 = vmul.f32 0.03125, %v2034_v46  ;;  %v2133_v46 = vld [vmem:[#allocation10 + $0x40] sm:$0xff] }
 0xf39   :  { %v2031_v48 = vpop.xlane.xlu1 %2030 }
 0xf3a   :  { %v4814_v49 = vsub.f32 %v2028_v42, %v2036_v47  ;;  %v2035_v51 = vmul.f32 0.03125, %v2031_v48  ;;  %v2137_v42 = vld [vmem:[#allocation10 + $0x60] sm:$0xff]  ;;  %v2135_v47 = vld [vmem:[#allocation10 + $0x50] sm:$0xff]  ;;  %v2130_v48 = vld [vmem:[#allocation10 + $0x28] sm:$0xff] }
 0xf3b   :  { %2300 = vmatpush1.msra.mxu1 %v2137_v42  ;;  %2373 = vmatpush1.msra.mxu0 %v2135_v47 }
 0xf3c   :  { %v4816_v52 = vsub.f32 %v2027_v44, %v2035_v51  ;;  %v2040_v53 = vmul.f32 %v4814_v49, %v4814_v49  ;;  %v2134_v44 = vld [vmem:[#allocation10 + $0x48] sm:$0xff]  ;;  %v2132_v51 = vld [vmem:[#allocation10 + $0x38] sm:$0xff] }
 0xf3d   :  { %2301 = vmatprep.subr.mxu1 %v2134_v44  ;;  %2374 = vmatprep.subr.mxu0 %v2132_v51  ;;  %v3696_v51 = vld [vmem:[#allocation7] ss:$0 sm:$0xff] }
 0xf3e   :  { %v2044_v54 = vsel %vm256_vm0, %v2040_v53, 0.0  ;;  %v2039_v55 = vmul.f32 %v4816_v52, %v4816_v52  ;;  %v2129_v53 = vld [vmem:[#allocation10 + $0x20] sm:$0xff]  ;;  %2302 = vmatpush1.msra.mxu1 %v2133_v46 }
 0xf3f   :  { %2045 = vadd.xlane.f32.xlu0 %v2044_v54  ;;  %v2131_v54 = vld [vmem:[#allocation10 + $0x30] sm:$0xff]  ;;  %2303 = vmatprep.subr.mxu1 %v2130_v48 }
 0xf40   :  { %v2041_v50 = vsel %vm256_vm0, %v2039_v55, 0.0  ;;  %v2126_v55 = vld [vmem:[#allocation10 + $0x8] sm:$0xff]  ;;  %2304 = vmatpush1.msra.mxu1 %v2129_v53  ;;  %2375 = vmatpush1.msra.mxu0 %v2131_v54 }
 0xf41   :  { %2042 = vadd.xlane.f32.xlu1 %v2041_v50  ;;  %v2128_v50 = vld [vmem:[#allocation10 + $0x18] sm:$0xff]  ;;  %2305 = vmatprep.subr.mxu1 %v2126_v55  ;;  %v2202_v54 = vld [vmem:[#allocation10 + $0x268] sm:$0xff] }
 0xf42   :  { %2376 = vmatprep.subr.mxu0 %v2128_v50  ;;  %2306 = vmatpush1.msra.mxu1 %v2125_v56  ;;  %v2204_v55 = vld [vmem:[#allocation10 + $0x278] sm:$0xff] }
 0xf43   :  { %2377 = vmatpush1.msra.mxu0 %v2127_v57  ;;  %2307 = vmatprep.subr.mxu1 %v2250_v58  ;;  %v3697_v56 = vld [vmem:[#allocation8] ss:$0 sm:$0xff]  ;;  %v2201_v57 = vld [vmem:[#allocation10 + $0x260] sm:$0xff]  ;;  %v2203_v58 = vld [vmem:[#allocation10 + $0x270] sm:$0xff] }
 0xf44   :  { %2378 = vmatprep.subr.mxu0 %v2252_v59  ;;  %2308 = vmatpush2.msra.mxu1 %v2249_v60 }
 0xf45   :  { %2379 = vmatpush2.msra.mxu0 %v2251_v61  ;;  %2309 = vmatprep.subr.mxu1 %v2246_v62  ;;  %v2198_v61 = vld [vmem:[#allocation10 + $0x248] sm:$0xff]  ;;  %v2200_v62 = vld [vmem:[#allocation10 + $0x258] sm:$0xff] }
 0xf46   :  { %2380 = vmatprep.subr.mxu0 %v2248_v63  ;;  %2310 = vmatpush2.msra.mxu1 %v2245_v0  ;;  %v2197_v63 = vld [vmem:[#allocation10 + $0x240] sm:$0xff]  ;;  %v2199_v0 = vld [vmem:[#allocation10 + $0x250] sm:$0xff] }
 0xf47   :  { %2381 = vmatpush2.msra.mxu0 %v2247_v9  ;;  %2311 = vmatprep.subr.mxu1 %v2242_v5  ;;  %v2194_v5 = vld [vmem:[#allocation10 + $0x228] sm:$0xff] }
 0xf48   :  { %2382 = vmatprep.subr.mxu0 %v2244_v1  ;;  %2312 = vmatpush2.msra.mxu1 %v2241_v2  ;;  %v2196_v1 = vld [vmem:[#allocation10 + $0x238] sm:$0xff]  ;;  %v2193_v2 = vld [vmem:[#allocation10 + $0x220] sm:$0xff] }
 0xf49   :  { %2383 = vmatpush2.msra.mxu0 %v2243_v3  ;;  %2313 = vmatprep.subr.mxu1 %v2238_v4  ;;  %v2195_v3 = vld [vmem:[#allocation10 + $0x230] sm:$0xff]  ;;  %v2192_v4 = vld [vmem:[#allocation10 + $0x218] sm:$0xff] }
 0xf4a   :  { %2384 = vmatprep.subr.mxu0 %v2240_v6  ;;  %2314 = vmatpush2.msra.mxu1 %v2237_v7 }
 0xf4b   :  { %2385 = vmatpush2.msra.mxu0 %v2239_v10  ;;  %2315 = vmatprep.subr.mxu1 %v2234_v8 }
 0xf4c   :  { %2386 = vmatprep.subr.mxu0 %v2236_v11  ;;  %2316 = vmatpush2.msra.mxu1 %v2233_v12  ;;  %v2189_v11 = vld [vmem:[#allocation10 + $0x200] sm:$0xff] }
 0xf4d   :  { %2387 = vmatpush2.msra.mxu0 %v2235_v13  ;;  %2317 = vmatprep.subr.mxu1 %v2230_v16 }
 0xf4e   :  { %2388 = vmatprep.subr.mxu0 %v2232_v17  ;;  %2318 = vmatpush2.msra.mxu1 %v2229_v18  ;;  %v2191_v18 = vld [vmem:[#allocation10 + $0x210] sm:$0xff] }
 0xf4f   :  { %2389 = vmatpush2.msra.mxu0 %v2231_v14  ;;  %2319 = vmatprep.subr.mxu1 %v2226_v19 }
 0xf50   :  { %2390 = vmatprep.subr.mxu0 %v2228_v20  ;;  %2320 = vmatpush2.msra.mxu1 %v2225_v21 }
 0xf51   :  { %2391 = vmatpush2.msra.mxu0 %v2227_v22  ;;  %2321 = vmatprep.subr.mxu1 %v2222_v23  ;;  %v2460_v22 = vld [vmem:[#allocation11 + $0xf8] sm:$0xff] }
 0xf52   :  { %2392 = vmatprep.subr.mxu0 %v2224_v24  ;;  %2322 = vmatpush2.msra.mxu1 %v2221_v25  ;;  %v2524_v23 = vld [vmem:[#allocation11 + $0x2f8] sm:$0xff] }
 0xf53   :  { %2393 = vmatpush2.msra.mxu0 %v2223_v26  ;;  %2323 = vmatprep.subr.mxu1 %v2218_v27 }
 0xf54   :  { %2394 = vmatprep.subr.mxu0 %v2220_v15  ;;  %2324 = vmatpush2.msra.mxu1 %v2217_v28 }
 0xf55   :  { %2395 = vmatpush2.msra.mxu0 %v2219_v29  ;;  %2325 = vmatprep.subr.mxu1 %v2214_v30 }
 0xf56   :  { %2396 = vmatprep.subr.mxu0 %v2216_v31  ;;  %2326 = vmatpush2.msra.mxu1 %v2213_v32 }
 0xf57   :  { %2397 = vmatpush2.msra.mxu0 %v2215_v33  ;;  %2327 = vmatprep.subr.mxu1 %v2210_v34 }
 0xf58   :  { %2398 = vmatprep.subr.mxu0 %v2212_v35  ;;  %2328 = vmatpush2.msra.mxu1 %v2209_v36 }
 0xf59   :  { %2399 = vmatpush2.msra.mxu0 %v2211_v37  ;;  %2329 = vmatprep.subr.mxu1 %v2206_v38 }
 0xf5a   :  { %2400 = vmatprep.subr.mxu0 %v2208_v39  ;;  %2330 = vmatpush2.msra.mxu1 %v2205_v40 }
 0xf5b   :  { %2401 = vmatpush2.msra.mxu0 %v2207_v41  ;;  %2331 = vmatprep.subr.mxu1 %v2202_v54 }
 0xf5c   :  { %2402 = vmatprep.subr.mxu0 %v2204_v55  ;;  %2332 = vmatpush2.msra.mxu1 %v2201_v57  ;;  %v2459_v55 = vld [vmem:[#allocation11 + $0xf0] sm:$0xff]  ;;  %v2522_v57 = vld [vmem:[#allocation11 + $0x2e8] sm:$0xff] }
 0xf5d   :  { %2403 = vmatpush2.msra.mxu0 %v2203_v58  ;;  %2333 = vmatprep.subr.mxu1 %v2198_v61  ;;  %v2457_v58 = vld [vmem:[#allocation11 + $0xe0] sm:$0xff]  ;;  %v2520_v61 = vld [vmem:[#allocation11 + $0x2d8] sm:$0xff] }
 0xf5e   :  { %2404 = vmatprep.subr.mxu0 %v2200_v62  ;;  %2334 = vmatpush2.msra.mxu1 %v2197_v63  ;;  %v2455_v62 = vld [vmem:[#allocation11 + $0xd0] sm:$0xff] }
 0xf5f   :  { %2405 = vmatpush2.msra.mxu0 %v2199_v0  ;;  %2335 = vmatprep.subr.mxu1 %v2194_v5  ;;  %v2519_v63 = vld [vmem:[#allocation11 + $0x2d0] sm:$0xff]  ;;  %v2454_v0 = vld [vmem:[#allocation11 + $0xc8] sm:$0xff]  ;;  %v2517_v5 = vld [vmem:[#allocation11 + $0x2c0] sm:$0xff] }
 0xf60   :  { %2406 = vmatprep.subr.mxu0 %v2196_v1  ;;  %2336 = vmatpush2.msra.mxu1 %v2193_v2  ;;  %v2452_v1 = vld [vmem:[#allocation11 + $0xb8] sm:$0xff] }
 0xf61   :  { %2407 = vmatpush2.msra.mxu0 %v2195_v3  ;;  %v2516_v2 = vld [vmem:[#allocation11 + $0x2b8] sm:$0xff]  ;;  %v2451_v3 = vld [vmem:[#allocation11 + $0xb0] sm:$0xff] }
 0xf62   :  { %2408 = vmatprep.subr.mxu0 %v2192_v4  ;;  %v2450_v4 = vld [vmem:[#allocation11 + $0xa8] sm:$0xff] }
 0xf63   :  { %2409 = vmatpush2.msra.mxu0 %v2191_v18  ;;  %v2445_v18 = vld [vmem:[#allocation11 + $0x80] sm:$0xff] }
 0xf64   :  { %2640 = vmatprep.subr.mxu0 %v2524_v23  ;;  %v2442_v23 = vld [vmem:[#allocation11 + $0x68] sm:$0xff] }
 0xfc8   :  { %v2046_v42 = vpop.xlane.xlu0 %2045 }
 0xfc9   :  { %v2048_v43 = vmul.f32 0.03125, %v2046_v42 }
 0xfca   :  { %v2043_v44 = vpop.xlane.xlu1 %2042 }
 0xfcb   :  { %v2050_v45 = vadd.f32 1e-05, %v2048_v43  ;;  %v2047_v46 = vmul.f32 0.03125, %v2043_v44 }
 0xfcd   :  { %4014 = vrsqrt.f32 %v2050_v45  ;;  %v2049_v47 = vadd.f32 1e-05, %v2047_v46 }
 0xfcf   :  { %4016 = vrsqrt.f32 %v2049_v47 }
 0xfda   :  { %v4015_v48 = vpop.eup %4014 }
 0xfdb   :  { %v2054_v53 = vmul.f32 %v4015_v48, %v4814_v49 }
 0xfdc   :  { %v4017_v50 = vpop.eup %4016 }
 0xfdd   :  { %v2063_v59 = vmul.f32 %v3696_v51, %v2054_v53  ;;  %v2053_v60 = vmul.f32 %v4017_v50, %v4816_v52  ;;  %v2190_v52 = vld [vmem:[#allocation10 + $0x208] sm:$0xff]  ;;  %v2523_v50 = vld [vmem:[#allocation11 + $0x2f0] sm:$0xff] }
 0xfde   :  { %2337 = vmatprep.subr.mxu1 %v2190_v52  ;;  %v2515_v52 = vld [vmem:[#allocation11 + $0x2b0] sm:$0xff] }
 0xfdf   :  { %v2072_v49 = vadd.f32 %v3697_v56, %v2063_v59  ;;  %v2062_v9 = vmul.f32 %v3696_v51, %v2053_v60  ;;  %2338 = vmatpush2.msra.mxu1 %v2189_v11  ;;  %v2521_v59 = vld [vmem:[#allocation11 + $0x2e0] sm:$0xff]  ;;  %v2456_v60 = vld [vmem:[#allocation11 + $0xd8] sm:$0xff] }
 0xfe0   :  { %2569 = vmatprep.subr.mxu1 %v2460_v22  ;;  %v2512_v11 = vld [vmem:[#allocation11 + $0x298] sm:$0xff]  ;;  %v2507_v22 = vld [vmem:[#allocation11 + $0x270] sm:$0xff] }
 0xfe1   :  { %v2071_v6 = vadd.f32 %v3697_v56, %v2062_v9  ;;  %v2085_v7 = vrot.slane %v2072_v49, 1  ;;  %v2107_v10 = vrot.slane %v2072_v49, 5  ;;  %v2101_v8 = vrot.slane %v2072_v49, 4  ;;  %v2458_v56 = vld [vmem:[#allocation11 + $0xe8] sm:$0xff]  ;;  %v2453_v9 = vld [vmem:[#allocation11 + $0xc0] sm:$0xff] }
 0xfe2   :  { %v2091_v12 = vrot.slane %v2072_v49, 2  ;;  %v2113_v13 = vrot.slane %v2072_v49, 6  ;;  %v2075_v16 = vrot.slane %v2072_v49, 7  ;;  %v2097_v17 = vrot.slane %v2072_v49, 3 }
 0xfe3   :  { %v2084_v14 = vrot.slane %v2071_v6, 2  ;;  %v2106_v19 = vrot.slane %v2071_v6, 6  ;;  %v2079_v20 = vrot.slane %v2071_v6, 1  ;;  %v2100_v21 = vrot.slane %v2071_v6, 5 }
 0xfe4   :  { %v2090_v24 = vrot.slane %v2071_v6, 3  ;;  %v2112_v25 = vrot.slane %v2071_v6, 7  ;;  %v2077_v26 = vsel %vm2076_vm6, %v2075_v16, %v2071_v6  ;;  %v2096_v27 = vrot.slane %v2071_v6, 4  ;;  %v2514_v6 = vld [vmem:[#allocation11 + $0x2a8] sm:$0xff] }
 0xfe5   :  { %v2086_v15 = vsel %vm2076_vm6, %v2085_v7, %v2084_v14  ;;  %v2108_v28 = vsel %vm2076_vm6, %v2107_v10, %v2106_v19  ;;  %v2080_v29 = vsel %vm2076_vm6, %v2072_v49, %v2079_v20  ;;  %v2102_v30 = vsel %vm2076_vm6, %v2101_v8, %v2100_v21  ;;  %v2518_v49 = vld [vmem:[#allocation11 + $0x2c8] sm:$0xff]  ;;  %v2449_v7 = vld [vmem:[#allocation11 + $0xa0] sm:$0xff]  ;;  %v2448_v8 = vld [vmem:[#allocation11 + $0x98] sm:$0xff] }
 0xfe6   :  { %v3968_v31 = vpack.i.bf16 %v2086_v15, %v2108_v28  ;;  %v3963_v32 = vpack.i.bf16 %v2080_v29, %v2102_v30  ;;  %v2092_v33 = vsel %vm2076_vm6, %v2091_v12, %v2090_v24  ;;  %v2114_v34 = vsel %vm2076_vm6, %v2113_v13, %v2112_v25  ;;  %v2513_v10 = vld [vmem:[#allocation11 + $0x2a0] sm:$0xff]  ;;  %v2447_v12 = vld [vmem:[#allocation11 + $0x90] sm:$0xff]  ;;  %v2446_v16 = vld [vmem:[#allocation11 + $0x88] sm:$0xff] }
 0xfe7   :  { %v2098_v35 = vsel %vm2076_vm6, %v2097_v17, %v2096_v27  ;;  %v3973_v36 = vpack.i.bf16 %v2092_v33, %v2114_v34  ;;  %v2511_v13 = vld [vmem:[#allocation11 + $0x290] sm:$0xff]  ;;  %v2510_v17 = vld [vmem:[#allocation11 + $0x288] sm:$0xff]  ;;  %v2509_v14 = vld [vmem:[#allocation11 + $0x280] sm:$0xff] }
 0xfe8   :  { %3969 = vrot.lane.b32.xlu0 %v3968_v31, %s4363_s10  ;;  %3964 = vrot.lane.b32.xlu1 %v3963_v32, %s4353_s4  ;;  %v2444_v19 = vld [vmem:[#allocation11 + $0x78] sm:$0xff]  ;;  %v2443_v21 = vld [vmem:[#allocation11 + $0x70] sm:$0xff]  ;;  %v2506_v24 = vld [vmem:[#allocation11 + $0x268] sm:$0xff] }
 0xfe9   :  { %v2508_v20 = vld [vmem:[#allocation11 + $0x278] sm:$0xff]  ;;  %v2441_v25 = vld [vmem:[#allocation11 + $0x60] sm:$0xff]  ;;  %v2439_v28 = vld [vmem:[#allocation11 + $0x50] sm:$0xff] }
 0xfea   :  { %v2440_v27 = vld [vmem:[#allocation11 + $0x58] sm:$0xff]  ;;  %v2503_v29 = vld [vmem:[#allocation11 + $0x250] sm:$0xff]  ;;  %v2438_v30 = vld [vmem:[#allocation11 + $0x48] sm:$0xff] }
 0xfeb   :  { %v2504_v15 = vld [vmem:[#allocation11 + $0x258] sm:$0xff]  ;;  %v2502_v31 = vld [vmem:[#allocation11 + $0x248] sm:$0xff]  ;;  %v2437_v32 = vld [vmem:[#allocation11 + $0x40] sm:$0xff] }
 0xfec   :  { %3974 = vrot.lane.b32.xlu1 %v3973_v36, %s4362_s30  ;;  %v2501_v33 = vld [vmem:[#allocation11 + $0x240] sm:$0xff]  ;;  %v2436_v34 = vld [vmem:[#allocation11 + $0x38] sm:$0xff]  ;;  %v2435_v36 = vld [vmem:[#allocation11 + $0x30] sm:$0xff] }
0x105a   :  { %v3970_v37 = vpop.permute.xlu0 %3969  ;;  %v3965_v38 = vpop.permute.xlu1 %3964 }
0x105b   :  { %v3967_v39 = vunpack.i.h.bf16 %v3965_v38  ;;  %v3966_v40 = vunpack.i.l.bf16 %v3965_v38  ;;  %v3972_v41 = vunpack.i.h.bf16 %v3970_v37  ;;  %v3971_v42 = vunpack.i.l.bf16 %v3970_v37  ;;  %v2499_v37 = vld [vmem:[#allocation11 + $0x230] sm:$0xff]  ;;  %v2434_v38 = vld [vmem:[#allocation11 + $0x28] sm:$0xff] }
0x105d   :  { %v2118_v43 = vsel %vm256_vm0, %v2077_v26, %v3967_v39  ;;  %v2122_v44 = vsel %vm256_vm0, %v2098_v35, %v3966_v40  ;;  %v2505_v26 = vld [vmem:[#allocation11 + $0x260] sm:$0xff]  ;;  %v2500_v35 = vld [vmem:[#allocation11 + $0x238] sm:$0xff]  ;;  %v2498_v39 = vld [vmem:[#allocation11 + $0x228] sm:$0xff] }
0x105e   :  { %v3975_v45 = vpop.permute.xlu1 %3974  ;;  %v2123_v48 = vsel %vm1945_vm5, %v2122_v44, %v3971_v42  ;;  %v2119_v51 = vsel %vm1945_vm5, %v2118_v43, %v3972_v41  ;;  %v2433_v40 = vld [vmem:[#allocation11 + $0x20] sm:$0xff]  ;;  %v2432_v42 = vld [vmem:[#allocation11 + $0x18] sm:$0xff]  ;;  %v2431_v44 = vld [vmem:[#allocation11 + $0x10] sm:$0xff] }
0x105f   :  { %v3977_v46 = vunpack.i.h.bf16 %v3975_v45  ;;  %v3976_v47 = vunpack.i.l.bf16 %v3975_v45  ;;  %v2497_v41 = vld [vmem:[#allocation11 + $0x220] sm:$0xff]  ;;  %v2496_v43 = vld [vmem:[#allocation11 + $0x218] sm:$0xff]  ;;  %v2495_v45 = vld [vmem:[#allocation11 + $0x210] sm:$0xff] }
0x1061   :  { %v2124_v53 = vsel %vm2120_vm7, %v2123_v48, %v3976_v47  ;;  %v2121_v54 = vsel %vm2120_vm7, %v2119_v51, %v3977_v46  ;;  %v2430_v46 = vld [vmem:[#allocation11 + $0x8] sm:$0xff]  ;;  %v2429_v48 = vld [vmem:[#allocation11] sm:$0xff] }
0x1062   :  { %2339 = vmatprep.mubr.f32.mxu1 %v2124_v53  ;;  %2410 = vmatprep.mubr.f32.mxu0 %v2124_v53  ;;  %v2494_v47 = vld [vmem:[#allocation11 + $0x208] sm:$0xff]  ;;  %v2493_v51 = vld [vmem:[#allocation11 + $0x200] sm:$0xff]  ;;  %v2492_v53 = vld [vmem:[#allocation11 + $0x1f8] sm:$0xff] }
0x1063   :  { %2340 = vmatmul.mubr.f32.vlgmr.msra.gmra.mxu1 %v2121_v54  ;;  %2411 = vmatmul.mubr.f32.vlgmr.msra.gmra.mxu0 %v2121_v54  ;;  %v2556_v54 = vld [vmem:[#allocation11 + $0x3f8] sm:$0xff] }
0x1064   :  { %2570 = vmatpush1.msra.mxu1 %v2459_v55  ;;  %2641 = vmatpush1.msra.mxu0 %v2523_v50  ;;  %v2491_v55 = vld [vmem:[#allocation11 + $0x1f0] sm:$0xff] }
0x1065   :  { %2571 = vmatprep.subr.mxu1 %v2458_v56  ;;  %2642 = vmatprep.subr.mxu0 %v2522_v57  ;;  %v2555_v50 = vld [vmem:[#allocation11 + $0x3f0] sm:$0xff]  ;;  %v2490_v56 = vld [vmem:[#allocation11 + $0x1e8] sm:$0xff] }
0x1066   :  { %2572 = vmatpush1.msra.mxu1 %v2457_v58  ;;  %2643 = vmatpush1.msra.mxu0 %v2521_v59  ;;  %v2554_v57 = vld [vmem:[#allocation11 + $0x3e8] sm:$0xff]  ;;  %v2489_v58 = vld [vmem:[#allocation11 + $0x1e0] sm:$0xff] }
0x1067   :  { %2573 = vmatprep.subr.mxu1 %v2456_v60  ;;  %2644 = vmatprep.subr.mxu0 %v2520_v61  ;;  %v2553_v59 = vld [vmem:[#allocation11 + $0x3e0] sm:$0xff]  ;;  %v2488_v60 = vld [vmem:[#allocation11 + $0x1d8] sm:$0xff] }
0x1068   :  { %2574 = vmatpush1.msra.mxu1 %v2455_v62  ;;  %2645 = vmatpush1.msra.mxu0 %v2519_v63  ;;  %v2552_v61 = vld [vmem:[#allocation11 + $0x3d8] sm:$0xff]  ;;  %v2487_v62 = vld [vmem:[#allocation11 + $0x1d0] sm:$0xff] }
0x1069   :  { %2575 = vmatprep.subr.mxu1 %v2454_v0  ;;  %2646 = vmatprep.subr.mxu0 %v2518_v49  ;;  %v2551_v63 = vld [vmem:[#allocation11 + $0x3d0] sm:$0xff]  ;;  %v2486_v0 = vld [vmem:[#allocation11 + $0x1c8] sm:$0xff] }
0x106a   :  { %2576 = vmatpush1.msra.mxu1 %v2453_v9  ;;  %2647 = vmatpush1.msra.mxu0 %v2517_v5  ;;  %v2550_v49 = vld [vmem:[#allocation11 + $0x3c8] sm:$0xff]  ;;  %v2485_v9 = vld [vmem:[#allocation11 + $0x1c0] sm:$0xff] }
0x106b   :  { %2577 = vmatprep.subr.mxu1 %v2452_v1  ;;  %2648 = vmatprep.subr.mxu0 %v2516_v2  ;;  %v2549_v5 = vld [vmem:[#allocation11 + $0x3c0] sm:$0xff]  ;;  %v2484_v1 = vld [vmem:[#allocation11 + $0x1b8] sm:$0xff] }
0x106c   :  { %2578 = vmatpush1.msra.mxu1 %v2451_v3  ;;  %2649 = vmatpush1.msra.mxu0 %v2515_v52  ;;  %v2548_v2 = vld [vmem:[#allocation11 + $0x3b8] sm:$0xff]  ;;  %v2483_v3 = vld [vmem:[#allocation11 + $0x1b0] sm:$0xff] }
0x106d   :  { %2579 = vmatprep.subr.mxu1 %v2450_v4  ;;  %2650 = vmatprep.subr.mxu0 %v2514_v6  ;;  %v2547_v52 = vld [vmem:[#allocation11 + $0x3b0] sm:$0xff]  ;;  %v2482_v4 = vld [vmem:[#allocation11 + $0x1a8] sm:$0xff] }
0x106e   :  { %2580 = vmatpush1.msra.mxu1 %v2449_v7  ;;  %2651 = vmatpush1.msra.mxu0 %v2513_v10  ;;  %v2546_v6 = vld [vmem:[#allocation11 + $0x3a8] sm:$0xff]  ;;  %v2481_v7 = vld [vmem:[#allocation11 + $0x1a0] sm:$0xff] }
0x106f   :  { %2581 = vmatprep.subr.mxu1 %v2448_v8  ;;  %2652 = vmatprep.subr.mxu0 %v2512_v11  ;;  %v2545_v10 = vld [vmem:[#allocation11 + $0x3a0] sm:$0xff]  ;;  %v2480_v8 = vld [vmem:[#allocation11 + $0x198] sm:$0xff] }
0x1070   :  { %2582 = vmatpush1.msra.mxu1 %v2447_v12  ;;  %2653 = vmatpush1.msra.mxu0 %v2511_v13  ;;  %v2544_v11 = vld [vmem:[#allocation11 + $0x398] sm:$0xff]  ;;  %v2479_v12 = vld [vmem:[#allocation11 + $0x190] sm:$0xff] }
0x1071   :  { %2583 = vmatprep.subr.mxu1 %v2446_v16  ;;  %2654 = vmatprep.subr.mxu0 %v2510_v17  ;;  %v2543_v13 = vld [vmem:[#allocation11 + $0x390] sm:$0xff]  ;;  %v2478_v16 = vld [vmem:[#allocation11 + $0x188] sm:$0xff] }
0x1072   :  { %2584 = vmatpush1.msra.mxu1 %v2445_v18  ;;  %2655 = vmatpush1.msra.mxu0 %v2509_v14  ;;  %v2542_v17 = vld [vmem:[#allocation11 + $0x388] sm:$0xff]  ;;  %v2477_v18 = vld [vmem:[#allocation11 + $0x180] sm:$0xff] }
0x1073   :  { %2585 = vmatprep.subr.mxu1 %v2444_v19  ;;  %2656 = vmatprep.subr.mxu0 %v2508_v20  ;;  %v2541_v14 = vld [vmem:[#allocation11 + $0x380] sm:$0xff]  ;;  %v2476_v19 = vld [vmem:[#allocation11 + $0x178] sm:$0xff] }
0x1074   :  { %2586 = vmatpush1.msra.mxu1 %v2443_v21  ;;  %2657 = vmatpush1.msra.mxu0 %v2507_v22  ;;  %v2540_v20 = vld [vmem:[#allocation11 + $0x378] sm:$0xff]  ;;  %v2475_v21 = vld [vmem:[#allocation11 + $0x170] sm:$0xff] }
0x1075   :  { %2587 = vmatprep.subr.mxu1 %v2442_v23  ;;  %2658 = vmatprep.subr.mxu0 %v2506_v24  ;;  %v2539_v22 = vld [vmem:[#allocation11 + $0x370] sm:$0xff]  ;;  %v2474_v23 = vld [vmem:[#allocation11 + $0x168] sm:$0xff] }
0x1076   :  { %2588 = vmatpush1.msra.mxu1 %v2441_v25  ;;  %2659 = vmatpush1.msra.mxu0 %v2505_v26  ;;  %v2538_v24 = vld [vmem:[#allocation11 + $0x368] sm:$0xff]  ;;  %v2473_v25 = vld [vmem:[#allocation11 + $0x160] sm:$0xff] }
0x1077   :  { %2589 = vmatprep.subr.mxu1 %v2440_v27  ;;  %2660 = vmatprep.subr.mxu0 %v2504_v15  ;;  %v2537_v26 = vld [vmem:[#allocation11 + $0x360] sm:$0xff]  ;;  %v2472_v27 = vld [vmem:[#allocation11 + $0x158] sm:$0xff] }
0x1078   :  { %2590 = vmatpush1.msra.mxu1 %v2439_v28  ;;  %2661 = vmatpush1.msra.mxu0 %v2503_v29  ;;  %v2536_v15 = vld [vmem:[#allocation11 + $0x358] sm:$0xff]  ;;  %v2471_v28 = vld [vmem:[#allocation11 + $0x150] sm:$0xff] }
0x1079   :  { %2591 = vmatprep.subr.mxu1 %v2438_v30  ;;  %2662 = vmatprep.subr.mxu0 %v2502_v31  ;;  %v2535_v29 = vld [vmem:[#allocation11 + $0x350] sm:$0xff]  ;;  %v2470_v30 = vld [vmem:[#allocation11 + $0x148] sm:$0xff] }
0x107a   :  { %2592 = vmatpush1.msra.mxu1 %v2437_v32  ;;  %2663 = vmatpush1.msra.mxu0 %v2501_v33  ;;  %v2534_v31 = vld [vmem:[#allocation11 + $0x348] sm:$0xff]  ;;  %v2469_v32 = vld [vmem:[#allocation11 + $0x140] sm:$0xff] }
0x107b   :  { %2593 = vmatprep.subr.mxu1 %v2436_v34  ;;  %2664 = vmatprep.subr.mxu0 %v2500_v35  ;;  %v2533_v33 = vld [vmem:[#allocation11 + $0x340] sm:$0xff]  ;;  %v2468_v34 = vld [vmem:[#allocation11 + $0x138] sm:$0xff] }
0x107c   :  { %2594 = vmatpush1.msra.mxu1 %v2435_v36  ;;  %2665 = vmatpush1.msra.mxu0 %v2499_v37  ;;  %v2532_v35 = vld [vmem:[#allocation11 + $0x338] sm:$0xff]  ;;  %v2467_v36 = vld [vmem:[#allocation11 + $0x130] sm:$0xff] }
0x107d   :  { %2595 = vmatprep.subr.mxu1 %v2434_v38  ;;  %2666 = vmatprep.subr.mxu0 %v2498_v39  ;;  %v2531_v37 = vld [vmem:[#allocation11 + $0x330] sm:$0xff]  ;;  %v2466_v38 = vld [vmem:[#allocation11 + $0x128] sm:$0xff] }
0x107e   :  { %2596 = vmatpush1.msra.mxu1 %v2433_v40  ;;  %2667 = vmatpush1.msra.mxu0 %v2497_v41  ;;  %v2530_v39 = vld [vmem:[#allocation11 + $0x328] sm:$0xff]  ;;  %v2465_v40 = vld [vmem:[#allocation11 + $0x120] sm:$0xff] }
0x107f   :  { %2597 = vmatprep.subr.mxu1 %v2432_v42  ;;  %2668 = vmatprep.subr.mxu0 %v2496_v43  ;;  %v2529_v41 = vld [vmem:[#allocation11 + $0x320] sm:$0xff]  ;;  %v2464_v42 = vld [vmem:[#allocation11 + $0x118] sm:$0xff] }
0x1080   :  { %2598 = vmatpush1.msra.mxu1 %v2431_v44  ;;  %2669 = vmatpush1.msra.mxu0 %v2495_v45  ;;  %v2528_v43 = vld [vmem:[#allocation11 + $0x318] sm:$0xff]  ;;  %v2463_v44 = vld [vmem:[#allocation11 + $0x110] sm:$0xff] }
0x1081   :  { %2599 = vmatprep.subr.mxu1 %v2430_v46  ;;  %2670 = vmatprep.subr.mxu0 %v2494_v47  ;;  %v2527_v45 = vld [vmem:[#allocation11 + $0x310] sm:$0xff]  ;;  %v2462_v46 = vld [vmem:[#allocation11 + $0x108] sm:$0xff] }
0x1082   :  { %2600 = vmatpush1.msra.mxu1 %v2429_v48  ;;  %2671 = vmatpush1.msra.mxu0 %v2493_v51  ;;  %v2526_v47 = vld [vmem:[#allocation11 + $0x308] sm:$0xff]  ;;  %v2461_v48 = vld [vmem:[#allocation11 + $0x100] sm:$0xff] }
0x1083   :  { %2601 = vmatprep.subr.mxu1 %v2492_v53  ;;  %2672 = vmatprep.subr.mxu0 %v2556_v54  ;;  %v2525_v51 = vld [vmem:[#allocation11 + $0x300] sm:$0xff]  ;;  %v2778_v53 = vld [vmem:[#allocation13 + $0x1e8] sm:$0xff]  ;;  %v2780_v54 = vld [vmem:[#allocation13 + $0x1f8] sm:$0xff] }
0x1084   :  { %2602 = vmatpush2.msra.mxu1 %v2491_v55  ;;  %2673 = vmatpush2.msra.mxu0 %v2555_v50  ;;  %v2255_v55 = vlaneseq }
0x1085   :  { %2603 = vmatprep.subr.mxu1 %v2490_v56  ;;  %2674 = vmatprep.subr.mxu0 %v2554_v57 }
0x1086   :  { %2604 = vmatpush2.msra.mxu1 %v2489_v58  ;;  %2675 = vmatpush2.msra.mxu0 %v2553_v59  ;;  %v4841_v50 = vshrl.u32 %v2255_v55, 7  ;;  %v2253_v58 = vld [vmem:[%s4935_s15] sm:$0xf]  ;;  %v2743_v55 = vld [vmem:[#allocation13 + $0xd0] sm:$0xff] }
0x1087   :  { %2605 = vmatprep.subr.mxu1 %v2488_v60  ;;  %2676 = vmatprep.subr.mxu0 %v2552_v61 }
0x1088   :  { %2606 = vmatpush2.msra.mxu1 %v2487_v62  ;;  %2677 = vmatpush2.msra.mxu0 %v2551_v63  ;;  %v4844_v56 = vsub.s32 0, %v4841_v50  ;;  %v2265_v57 = vsub.s32 2, %v4841_v50  ;;  %v4851_v59 = vsub.s32 1, %v4841_v50  ;;  %v2269_v60 = vsub.s32 3, %v4841_v50 }
0x1089   :  { %2607 = vmatprep.subr.mxu1 %v2486_v0  ;;  %2678 = vmatprep.subr.mxu0 %v2550_v49 }
0x108a   :  { %2608 = vmatpush2.msra.mxu1 %v2485_v9  ;;  %2679 = vmatpush2.msra.mxu0 %v2549_v5  ;;  %v2258_v61 = vrot.slane %v2253_v58, %v4844_v56  ;;  %v2266_v62 = vrot.slane %v2253_v58, %v2265_v57  ;;  %v2262_v49 = vrot.slane %v2253_v58, %v4851_v59 }
0x108b   :  { %2609 = vmatprep.subr.mxu1 %v2484_v1  ;;  %2680 = vmatprep.subr.mxu0 %v2548_v2  ;;  %v2270_v9 = vrot.slane %v2253_v58, %v2269_v60  ;;  %v2738_v58 = vld [vmem:[#allocation13 + $0xa8] sm:$0xff] }
0x108c   :  { %2610 = vmatpush2.msra.mxu1 %v2483_v3  ;;  %2681 = vmatpush2.msra.mxu0 %v2547_v52 }
0x108d   :  { %2611 = vmatprep.subr.mxu1 %v2482_v4  ;;  %2682 = vmatprep.subr.mxu0 %v2546_v6 }
0x108e   :  { %2612 = vmatpush2.msra.mxu1 %v2481_v7  ;;  %2683 = vmatpush2.msra.mxu0 %v2545_v10 }
0x108f   :  { %2613 = vmatprep.subr.mxu1 %v2480_v8  ;;  %2684 = vmatprep.subr.mxu0 %v2544_v11 }
0x1090   :  { %2614 = vmatpush2.msra.mxu1 %v2479_v12  ;;  %2685 = vmatpush2.msra.mxu0 %v2543_v13  ;;  %v2777_v13 = vld [vmem:[#allocation13 + $0x1e0] sm:$0xff] }
0x1091   :  { %2615 = vmatprep.subr.mxu1 %v2478_v16  ;;  %2686 = vmatprep.subr.mxu0 %v2542_v17  ;;  %v2779_v16 = vld [vmem:[#allocation13 + $0x1f0] sm:$0xff] }
0x1092   :  { %2616 = vmatpush2.msra.mxu1 %v2477_v18  ;;  %2687 = vmatpush2.msra.mxu0 %v2541_v14  ;;  %v2774_v14 = vld [vmem:[#allocation13 + $0x1c8] sm:$0xff] }
0x1093   :  { %2617 = vmatprep.subr.mxu1 %v2476_v19  ;;  %2688 = vmatprep.subr.mxu0 %v2540_v20  ;;  %v2776_v19 = vld [vmem:[#allocation13 + $0x1d8] sm:$0xff]  ;;  %v2773_v20 = vld [vmem:[#allocation13 + $0x1c0] sm:$0xff] }
0x1094   :  { %2618 = vmatpush2.msra.mxu1 %v2475_v21  ;;  %2689 = vmatpush2.msra.mxu0 %v2539_v22  ;;  %v2775_v21 = vld [vmem:[#allocation13 + $0x1d0] sm:$0xff]  ;;  %v2770_v22 = vld [vmem:[#allocation13 + $0x1a8] sm:$0xff] }
0x1095   :  { %2619 = vmatprep.subr.mxu1 %v2474_v23  ;;  %2690 = vmatprep.subr.mxu0 %v2538_v24  ;;  %v2772_v23 = vld [vmem:[#allocation13 + $0x1b8] sm:$0xff]  ;;  %v2769_v24 = vld [vmem:[#allocation13 + $0x1a0] sm:$0xff] }
0x1096   :  { %2620 = vmatpush2.msra.mxu1 %v2473_v25  ;;  %2691 = vmatpush2.msra.mxu0 %v2537_v26  ;;  %v2771_v25 = vld [vmem:[#allocation13 + $0x1b0] sm:$0xff]  ;;  %v2766_v26 = vld [vmem:[#allocation13 + $0x188] sm:$0xff] }
0x1097   :  { %2621 = vmatprep.subr.mxu1 %v2472_v27  ;;  %2692 = vmatprep.subr.mxu0 %v2536_v15  ;;  %v2768_v27 = vld [vmem:[#allocation13 + $0x198] sm:$0xff]  ;;  %v2765_v15 = vld [vmem:[#allocation13 + $0x180] sm:$0xff] }
0x1098   :  { %2622 = vmatpush2.msra.mxu1 %v2471_v28  ;;  %2693 = vmatpush2.msra.mxu0 %v2535_v29  ;;  %v2767_v28 = vld [vmem:[#allocation13 + $0x190] sm:$0xff]  ;;  %v2762_v29 = vld [vmem:[#allocation13 + $0x168] sm:$0xff] }
0x1099   :  { %2623 = vmatprep.subr.mxu1 %v2470_v30  ;;  %2694 = vmatprep.subr.mxu0 %v2534_v31  ;;  %v2764_v30 = vld [vmem:[#allocation13 + $0x178] sm:$0xff]  ;;  %v2761_v31 = vld [vmem:[#allocation13 + $0x160] sm:$0xff] }
0x109a   :  { %2624 = vmatpush2.msra.mxu1 %v2469_v32  ;;  %2695 = vmatpush2.msra.mxu0 %v2533_v33  ;;  %v2763_v32 = vld [vmem:[#allocation13 + $0x170] sm:$0xff]  ;;  %v2758_v33 = vld [vmem:[#allocation13 + $0x148] sm:$0xff] }
0x109b   :  { %2625 = vmatprep.subr.mxu1 %v2468_v34  ;;  %2696 = vmatprep.subr.mxu0 %v2532_v35  ;;  %v2760_v34 = vld [vmem:[#allocation13 + $0x158] sm:$0xff]  ;;  %v2757_v35 = vld [vmem:[#allocation13 + $0x140] sm:$0xff] }
0x109c   :  { %2626 = vmatpush2.msra.mxu1 %v2467_v36  ;;  %2697 = vmatpush2.msra.mxu0 %v2531_v37  ;;  %v2759_v36 = vld [vmem:[#allocation13 + $0x150] sm:$0xff]  ;;  %v2754_v37 = vld [vmem:[#allocation13 + $0x128] sm:$0xff] }
0x109d   :  { %2627 = vmatprep.subr.mxu1 %v2466_v38  ;;  %2698 = vmatprep.subr.mxu0 %v2530_v39  ;;  %v2756_v38 = vld [vmem:[#allocation13 + $0x138] sm:$0xff]  ;;  %v2753_v39 = vld [vmem:[#allocation13 + $0x120] sm:$0xff] }
0x109e   :  { %2628 = vmatpush2.msra.mxu1 %v2465_v40  ;;  %2699 = vmatpush2.msra.mxu0 %v2529_v41  ;;  %v2755_v40 = vld [vmem:[#allocation13 + $0x130] sm:$0xff]  ;;  %v2750_v41 = vld [vmem:[#allocation13 + $0x108] sm:$0xff] }
0x109f   :  { %2629 = vmatprep.subr.mxu1 %v2464_v42  ;;  %2700 = vmatprep.subr.mxu0 %v2528_v43  ;;  %v2752_v42 = vld [vmem:[#allocation13 + $0x118] sm:$0xff]  ;;  %v2749_v43 = vld [vmem:[#allocation13 + $0x100] sm:$0xff] }
0x10a0   :  { %2630 = vmatpush2.msra.mxu1 %v2463_v44  ;;  %2701 = vmatpush2.msra.mxu0 %v2527_v45  ;;  %v2751_v44 = vld [vmem:[#allocation13 + $0x110] sm:$0xff]  ;;  %v2746_v45 = vld [vmem:[#allocation13 + $0xe8] sm:$0xff] }
0x10a1   :  { %2631 = vmatprep.subr.mxu1 %v2462_v46  ;;  %2702 = vmatprep.subr.mxu0 %v2526_v47  ;;  %v2748_v46 = vld [vmem:[#allocation13 + $0xf8] sm:$0xff]  ;;  %v2745_v47 = vld [vmem:[#allocation13 + $0xe0] sm:$0xff] }
0x10a2   :  { %2632 = vmatpush2.msra.mxu1 %v2461_v48  ;;  %2703 = vmatpush2.msra.mxu0 %v2525_v51  ;;  %v2747_v48 = vld [vmem:[#allocation13 + $0xf0] sm:$0xff]  ;;  %v2742_v51 = vld [vmem:[#allocation13 + $0xc8] sm:$0xff] }
0x10a3   :  { %2867 = vmatprep.subr.mxu1 %v2778_v53  ;;  %2938 = vmatprep.subr.mxu0 %v2780_v54  ;;  %v2744_v53 = vld [vmem:[#allocation13 + $0xd8] sm:$0xff]  ;;  %v2741_v54 = vld [vmem:[#allocation13 + $0xc0] sm:$0xff] }
0x1123   :  { %v2341_v63 = vpop.f32.mrf.mxu1  ;;  %v2412_v0 = vpop.f32.mrf.mxu0 }
0x1124   :  { %v2342_v5 = vadd.f32 %v2341_v63, %v2258_v61  ;;  %v2413_v1 = vadd.f32 %v2412_v0, %v2266_v62  ;;  %v2740_v61 = vld [vmem:[#allocation13 + $0xb8] sm:$0xff]  ;;  %v2737_v62 = vld [vmem:[#allocation13 + $0xa0] sm:$0xff]  ;;  %v2739_v63 = vld [vmem:[#allocation13 + $0xb0] sm:$0xff] }
0x1125   :  { %v2343_v2 = vpop.f32.mrf.mxu1  ;;  %v2414_v3 = vpop.f32.mrf.mxu0  ;;  %v2734_v0 = vld [vmem:[#allocation13 + $0x88] sm:$0xff] }
0x1126   :  { %v2344_v52 = vadd.f32 %v2343_v2, %v2262_v49  ;;  %v2415_v4 = vadd.f32 %v2414_v3, %v2270_v9  ;;  %vm2417_vm8 = vcmp.ge.f32.partialorder %v2342_v5, 0.0  ;;  %v2421_v6 = vmul.f32 0.01, %v2342_v5  ;;  %v2736_v49 = vld [vmem:[#allocation13 + $0x98] sm:$0xff]  ;;  %v2733_v9 = vld [vmem:[#allocation13 + $0x80] sm:$0xff] }
0x1127   :  { %vm2419_vm9 = vcmp.ge.f32.partialorder %v2413_v1, 0.0  ;;  %v2423_v7 = vmul.f32 0.01, %v2413_v1  ;;  %v2732_v2 = vld [vmem:[#allocation13 + $0x78] sm:$0xff]  ;;  %v2729_v3 = vld [vmem:[#allocation13 + $0x60] sm:$0xff] }
0x1128   :  { %v2422_v10 = vmul.f32 0.01, %v2344_v52  ;;  %v2424_v8 = vmul.f32 0.01, %v2415_v4  ;;  %vm2418_vm10 = vcmp.ge.f32.partialorder %v2344_v52, 0.0  ;;  %vm2420_vm11 = vcmp.ge.f32.partialorder %v2415_v4, 0.0 }
0x1129   :  { %v4866_v17 = vsel %vm2417_vm8, %v2342_v5, %v2421_v6  ;;  %v4868_v18 = vsel %vm2419_vm9, %v2413_v1, %v2423_v7  ;;  %v2735_v5 = vld [vmem:[#allocation13 + $0x90] sm:$0xff]  ;;  %v2730_v1 = vld [vmem:[#allocation13 + $0x68] sm:$0xff]  ;;  %v2728_v6 = vld [vmem:[#allocation13 + $0x58] sm:$0xff] }
0x112a   :  { %v4860_v11 = vsel %vm2418_vm10, %v2344_v52, %v2422_v10  ;;  %v4862_v12 = vsel %vm2420_vm11, %v2415_v4, %v2424_v8  ;;  %v2731_v52 = vld [vmem:[#allocation13 + $0x70] sm:$0xff]  ;;  %v2726_v4 = vld [vmem:[#allocation13 + $0x48] sm:$0xff]  ;;  %v2725_v7 = vld [vmem:[#allocation13 + $0x40] sm:$0xff] }
0x112b   :  { %2633 = vmatprep.mubr.f32.mxu1 %v4860_v11  ;;  %2704 = vmatprep.mubr.f32.mxu0 %v4862_v12  ;;  %v2727_v10 = vld [vmem:[#allocation13 + $0x50] sm:$0xff]  ;;  %v2722_v8 = vld [vmem:[#allocation13 + $0x28] sm:$0xff] }
0x112c   :  { %2634 = vmatmul.mubr.f32.vlgmr.msra.gmra.mxu1 %v4866_v17  ;;  %2705 = vmatmul.mubr.f32.vlgmr.msra.gmra.mxu0 %v4868_v18 }
0x112d   :  { %2868 = vmatpush1.msra.mxu1 %v2777_v13  ;;  %2939 = vmatpush1.msra.mxu0 %v2779_v16  ;;  %v2724_v13 = vld [vmem:[#allocation13 + $0x38] sm:$0xff]  ;;  %v2721_v16 = vld [vmem:[#allocation13 + $0x20] sm:$0xff] }
0x112e   :  { %2869 = vmatprep.subr.mxu1 %v2774_v14  ;;  %2940 = vmatprep.subr.mxu0 %v2776_v19  ;;  %v2723_v14 = vld [vmem:[#allocation13 + $0x30] sm:$0xff]  ;;  %v2718_v19 = vld [vmem:[#allocation13 + $0x8] sm:$0xff] }
0x112f   :  { %2870 = vmatpush1.msra.mxu1 %v2773_v20  ;;  %2941 = vmatpush1.msra.mxu0 %v2775_v21  ;;  %v2720_v20 = vld [vmem:[#allocation13 + $0x18] sm:$0xff]  ;;  %v2717_v21 = vld [vmem:[#allocation13] sm:$0xff] }
0x1130   :  { %2871 = vmatprep.subr.mxu1 %v2770_v22  ;;  %2942 = vmatprep.subr.mxu0 %v2772_v23  ;;  %v2719_v22 = vld [vmem:[#allocation13 + $0x10] sm:$0xff]  ;;  %v2842_v23 = vld [vmem:[#allocation13 + $0x3e8] sm:$0xff] }
0x1131   :  { %2872 = vmatpush1.msra.mxu1 %v2769_v24  ;;  %2943 = vmatpush1.msra.mxu0 %v2771_v25  ;;  %v2844_v24 = vld [vmem:[#allocation13 + $0x3f8] sm:$0xff]  ;;  %v2841_v25 = vld [vmem:[#allocation13 + $0x3e0] sm:$0xff] }
0x1132   :  { %2873 = vmatprep.subr.mxu1 %v2766_v26  ;;  %2944 = vmatprep.subr.mxu0 %v2768_v27  ;;  %v2843_v26 = vld [vmem:[#allocation13 + $0x3f0] sm:$0xff]  ;;  %v2838_v27 = vld [vmem:[#allocation13 + $0x3c8] sm:$0xff] }
0x1133   :  { %2874 = vmatpush1.msra.mxu1 %v2765_v15  ;;  %2945 = vmatpush1.msra.mxu0 %v2767_v28  ;;  %v2840_v15 = vld [vmem:[#allocation13 + $0x3d8] sm:$0xff]  ;;  %v2837_v28 = vld [vmem:[#allocation13 + $0x3c0] sm:$0xff] }
0x1134   :  { %2875 = vmatprep.subr.mxu1 %v2762_v29  ;;  %2946 = vmatprep.subr.mxu0 %v2764_v30  ;;  %v2839_v29 = vld [vmem:[#allocation13 + $0x3d0] sm:$0xff]  ;;  %v2834_v30 = vld [vmem:[#allocation13 + $0x3a8] sm:$0xff] }
0x1135   :  { %2876 = vmatpush1.msra.mxu1 %v2761_v31  ;;  %2947 = vmatpush1.msra.mxu0 %v2763_v32  ;;  %v2836_v31 = vld [vmem:[#allocation13 + $0x3b8] sm:$0xff]  ;;  %v2833_v32 = vld [vmem:[#allocation13 + $0x3a0] sm:$0xff] }
0x1136   :  { %2877 = vmatprep.subr.mxu1 %v2758_v33  ;;  %2948 = vmatprep.subr.mxu0 %v2760_v34  ;;  %v2835_v33 = vld [vmem:[#allocation13 + $0x3b0] sm:$0xff]  ;;  %v2830_v34 = vld [vmem:[#allocation13 + $0x388] sm:$0xff] }
0x1137   :  { %2878 = vmatpush1.msra.mxu1 %v2757_v35  ;;  %2949 = vmatpush1.msra.mxu0 %v2759_v36  ;;  %v2832_v35 = vld [vmem:[#allocation13 + $0x398] sm:$0xff]  ;;  %v2829_v36 = vld [vmem:[#allocation13 + $0x380] sm:$0xff] }
0x1138   :  { %2879 = vmatprep.subr.mxu1 %v2754_v37  ;;  %2950 = vmatprep.subr.mxu0 %v2756_v38  ;;  %v2831_v37 = vld [vmem:[#allocation13 + $0x390] sm:$0xff]  ;;  %v2826_v38 = vld [vmem:[#allocation13 + $0x368] sm:$0xff] }
0x1139   :  { %2880 = vmatpush1.msra.mxu1 %v2753_v39  ;;  %2951 = vmatpush1.msra.mxu0 %v2755_v40  ;;  %v2828_v39 = vld [vmem:[#allocation13 + $0x378] sm:$0xff]  ;;  %v2825_v40 = vld [vmem:[#allocation13 + $0x360] sm:$0xff] }
0x113a   :  { %2881 = vmatprep.subr.mxu1 %v2750_v41  ;;  %2952 = vmatprep.subr.mxu0 %v2752_v42  ;;  %v2827_v41 = vld [vmem:[#allocation13 + $0x370] sm:$0xff]  ;;  %v2822_v42 = vld [vmem:[#allocation13 + $0x348] sm:$0xff] }
0x113b   :  { %2882 = vmatpush1.msra.mxu1 %v2749_v43  ;;  %2953 = vmatpush1.msra.mxu0 %v2751_v44  ;;  %v2824_v43 = vld [vmem:[#allocation13 + $0x358] sm:$0xff]  ;;  %v2821_v44 = vld [vmem:[#allocation13 + $0x340] sm:$0xff] }
0x113c   :  { %2883 = vmatprep.subr.mxu1 %v2746_v45  ;;  %2954 = vmatprep.subr.mxu0 %v2748_v46  ;;  %v2823_v45 = vld [vmem:[#allocation13 + $0x350] sm:$0xff]  ;;  %v2818_v46 = vld [vmem:[#allocation13 + $0x328] sm:$0xff] }
0x113d   :  { %2884 = vmatpush1.msra.mxu1 %v2745_v47  ;;  %2955 = vmatpush1.msra.mxu0 %v2747_v48  ;;  %v2820_v47 = vld [vmem:[#allocation13 + $0x338] sm:$0xff]  ;;  %v2817_v48 = vld [vmem:[#allocation13 + $0x320] sm:$0xff] }
0x113e   :  { %2885 = vmatprep.subr.mxu1 %v2742_v51  ;;  %2956 = vmatprep.subr.mxu0 %v2744_v53  ;;  %v2819_v51 = vld [vmem:[#allocation13 + $0x330] sm:$0xff]  ;;  %v2814_v53 = vld [vmem:[#allocation13 + $0x308] sm:$0xff] }
0x113f   :  { %2886 = vmatpush1.msra.mxu1 %v2741_v54  ;;  %2957 = vmatpush1.msra.mxu0 %v2743_v55  ;;  %v2816_v54 = vld [vmem:[#allocation13 + $0x318] sm:$0xff]  ;;  %v2813_v55 = vld [vmem:[#allocation13 + $0x300] sm:$0xff] }
0x1140   :  { %2887 = vmatprep.subr.mxu1 %v2738_v58  ;;  %2958 = vmatprep.subr.mxu0 %v2740_v61  ;;  %v2815_v58 = vld [vmem:[#allocation13 + $0x310] sm:$0xff]  ;;  %v2810_v61 = vld [vmem:[#allocation13 + $0x2e8] sm:$0xff] }
0x1141   :  { %2888 = vmatpush1.msra.mxu1 %v2737_v62  ;;  %2959 = vmatpush1.msra.mxu0 %v2739_v63  ;;  %v2812_v62 = vld [vmem:[#allocation13 + $0x2f8] sm:$0xff]  ;;  %v2809_v63 = vld [vmem:[#allocation13 + $0x2e0] sm:$0xff] }
0x1142   :  { %2889 = vmatprep.subr.mxu1 %v2734_v0  ;;  %2960 = vmatprep.subr.mxu0 %v2736_v49  ;;  %v2811_v0 = vld [vmem:[#allocation13 + $0x2f0] sm:$0xff]  ;;  %v2806_v49 = vld [vmem:[#allocation13 + $0x2c8] sm:$0xff] }
0x1143   :  { %2890 = vmatpush1.msra.mxu1 %v2733_v9  ;;  %2961 = vmatpush1.msra.mxu0 %v2735_v5  ;;  %v2808_v9 = vld [vmem:[#allocation13 + $0x2d8] sm:$0xff]  ;;  %v2805_v5 = vld [vmem:[#allocation13 + $0x2c0] sm:$0xff] }
0x1144   :  { %2891 = vmatprep.subr.mxu1 %v2730_v1  ;;  %2962 = vmatprep.subr.mxu0 %v2732_v2  ;;  %v2807_v1 = vld [vmem:[#allocation13 + $0x2d0] sm:$0xff]  ;;  %v2802_v2 = vld [vmem:[#allocation13 + $0x2a8] sm:$0xff] }
0x1145   :  { %2892 = vmatpush1.msra.mxu1 %v2729_v3  ;;  %2963 = vmatpush1.msra.mxu0 %v2731_v52  ;;  %v2804_v3 = vld [vmem:[#allocation13 + $0x2b8] sm:$0xff]  ;;  %v2801_v52 = vld [vmem:[#allocation13 + $0x2a0] sm:$0xff] }
0x1146   :  { %2893 = vmatprep.subr.mxu1 %v2726_v4  ;;  %2964 = vmatprep.subr.mxu0 %v2728_v6  ;;  %v2803_v4 = vld [vmem:[#allocation13 + $0x2b0] sm:$0xff]  ;;  %v2798_v6 = vld [vmem:[#allocation13 + $0x288] sm:$0xff] }
0x1147   :  { %2894 = vmatpush1.msra.mxu1 %v2725_v7  ;;  %2965 = vmatpush1.msra.mxu0 %v2727_v10  ;;  %v2800_v7 = vld [vmem:[#allocation13 + $0x298] sm:$0xff]  ;;  %v2797_v10 = vld [vmem:[#allocation13 + $0x280] sm:$0xff] }
0x1148   :  { %2895 = vmatprep.subr.mxu1 %v2722_v8  ;;  %2966 = vmatprep.subr.mxu0 %v2724_v13  ;;  %v2799_v8 = vld [vmem:[#allocation13 + $0x290] sm:$0xff]  ;;  %v2794_v13 = vld [vmem:[#allocation13 + $0x268] sm:$0xff] }
0x1149   :  { %2896 = vmatpush1.msra.mxu1 %v2721_v16  ;;  %2967 = vmatpush1.msra.mxu0 %v2723_v14  ;;  %v2796_v16 = vld [vmem:[#allocation13 + $0x278] sm:$0xff]  ;;  %v2793_v14 = vld [vmem:[#allocation13 + $0x260] sm:$0xff] }
0x114a   :  { %2897 = vmatprep.subr.mxu1 %v2718_v19  ;;  %2968 = vmatprep.subr.mxu0 %v2720_v20  ;;  %v2795_v19 = vld [vmem:[#allocation13 + $0x270] sm:$0xff]  ;;  %v2790_v20 = vld [vmem:[#allocation13 + $0x248] sm:$0xff] }
0x114b   :  { %2898 = vmatpush1.msra.mxu1 %v2717_v21  ;;  %2969 = vmatpush1.msra.mxu0 %v2719_v22  ;;  %v2792_v21 = vld [vmem:[#allocation13 + $0x258] sm:$0xff]  ;;  %v2789_v22 = vld [vmem:[#allocation13 + $0x240] sm:$0xff] }
0x114c   :  { %2899 = vmatprep.subr.mxu1 %v2842_v23  ;;  %2970 = vmatprep.subr.mxu0 %v2844_v24  ;;  %v2791_v23 = vld [vmem:[#allocation13 + $0x250] sm:$0xff]  ;;  %v2786_v24 = vld [vmem:[#allocation13 + $0x228] sm:$0xff] }
0x114d   :  { %2900 = vmatpush2.msra.mxu1 %v2841_v25  ;;  %2971 = vmatpush2.msra.mxu0 %v2843_v26  ;;  %v2788_v25 = vld [vmem:[#allocation13 + $0x238] sm:$0xff]  ;;  %v2785_v26 = vld [vmem:[#allocation13 + $0x220] sm:$0xff] }
0x114e   :  { %2901 = vmatprep.subr.mxu1 %v2838_v27  ;;  %2972 = vmatprep.subr.mxu0 %v2840_v15  ;;  %v2787_v27 = vld [vmem:[#allocation13 + $0x230] sm:$0xff]  ;;  %v2782_v15 = vld [vmem:[#allocation13 + $0x208] sm:$0xff] }
0x114f   :  { %2902 = vmatpush2.msra.mxu1 %v2837_v28  ;;  %2973 = vmatpush2.msra.mxu0 %v2839_v29  ;;  %v2784_v28 = vld [vmem:[#allocation13 + $0x218] sm:$0xff]  ;;  %v2781_v29 = vld [vmem:[#allocation13 + $0x200] sm:$0xff] }
0x1150   :  { %2903 = vmatprep.subr.mxu1 %v2834_v30  ;;  %2974 = vmatprep.subr.mxu0 %v2836_v31  ;;  %v2783_v30 = vld [vmem:[#allocation13 + $0x210] sm:$0xff]  ;;  %v3056_v31 = vld [vmem:[#allocation14 + $0xf8] sm:$0xff] }
0x1151   :  { %2904 = vmatpush2.msra.mxu1 %v2833_v32  ;;  %2975 = vmatpush2.msra.mxu0 %v2835_v33  ;;  %v3120_v32 = vld [vmem:[#allocation14 + $0x2f8] sm:$0xff] }
0x1152   :  { %2905 = vmatprep.subr.mxu1 %v2830_v34  ;;  %2976 = vmatprep.subr.mxu0 %v2832_v35  ;;  %v2557_v33 = vld [vmem:[%s4937_s17] sm:$0x3] }
0x1153   :  { %2906 = vmatpush2.msra.mxu1 %v2829_v36  ;;  %2977 = vmatpush2.msra.mxu0 %v2831_v37  ;;  %v2562_v34 = vrot.slane %v2557_v33, %v4844_v56  ;;  %v2566_v35 = vrot.slane %v2557_v33, %v4851_v59  ;;  %v3035_v33 = vld [vmem:[#allocation14 + $0x50] sm:$0xff] }
0x1154   :  { %2907 = vmatprep.subr.mxu1 %v2826_v38  ;;  %2978 = vmatprep.subr.mxu0 %v2828_v39 }
0x1155   :  { %2908 = vmatpush2.msra.mxu1 %v2825_v40  ;;  %2979 = vmatpush2.msra.mxu0 %v2827_v41 }
0x1156   :  { %2909 = vmatprep.subr.mxu1 %v2822_v42  ;;  %2980 = vmatprep.subr.mxu0 %v2824_v43 }
0x1157   :  { %2910 = vmatpush2.msra.mxu1 %v2821_v44  ;;  %2981 = vmatpush2.msra.mxu0 %v2823_v45 }
0x1158   :  { %2911 = vmatprep.subr.mxu1 %v2818_v46  ;;  %2982 = vmatprep.subr.mxu0 %v2820_v47  ;;  %v3055_v47 = vld [vmem:[#allocation14 + $0xf0] sm:$0xff] }
0x1159   :  { %2912 = vmatpush2.msra.mxu1 %v2817_v48  ;;  %2983 = vmatpush2.msra.mxu0 %v2819_v51  ;;  %v3119_v48 = vld [vmem:[#allocation14 + $0x2f0] sm:$0xff] }
0x115a   :  { %2913 = vmatprep.subr.mxu1 %v2814_v53  ;;  %2984 = vmatprep.subr.mxu0 %v2816_v54  ;;  %v3054_v53 = vld [vmem:[#allocation14 + $0xe8] sm:$0xff] }
0x115b   :  { %2914 = vmatpush2.msra.mxu1 %v2813_v55  ;;  %2985 = vmatpush2.msra.mxu0 %v2815_v58  ;;  %v3118_v54 = vld [vmem:[#allocation14 + $0x2e8] sm:$0xff]  ;;  %v3053_v55 = vld [vmem:[#allocation14 + $0xe0] sm:$0xff] }
0x115c   :  { %2915 = vmatprep.subr.mxu1 %v2810_v61  ;;  %2986 = vmatprep.subr.mxu0 %v2812_v62  ;;  %v3117_v58 = vld [vmem:[#allocation14 + $0x2e0] sm:$0xff]  ;;  %v3052_v61 = vld [vmem:[#allocation14 + $0xd8] sm:$0xff] }
0x115d   :  { %2916 = vmatpush2.msra.mxu1 %v2809_v63  ;;  %2987 = vmatpush2.msra.mxu0 %v2811_v0  ;;  %v3116_v62 = vld [vmem:[#allocation14 + $0x2d8] sm:$0xff]  ;;  %v3051_v63 = vld [vmem:[#allocation14 + $0xd0] sm:$0xff] }
0x115e   :  { %2917 = vmatprep.subr.mxu1 %v2806_v49  ;;  %2988 = vmatprep.subr.mxu0 %v2808_v9  ;;  %v3115_v0 = vld [vmem:[#allocation14 + $0x2d0] sm:$0xff]  ;;  %v3050_v49 = vld [vmem:[#allocation14 + $0xc8] sm:$0xff] }
0x115f   :  { %2918 = vmatpush2.msra.mxu1 %v2805_v5  ;;  %2989 = vmatpush2.msra.mxu0 %v2807_v1  ;;  %v3114_v9 = vld [vmem:[#allocation14 + $0x2c8] sm:$0xff]  ;;  %v3049_v5 = vld [vmem:[#allocation14 + $0xc0] sm:$0xff] }
0x1160   :  { %2919 = vmatprep.subr.mxu1 %v2802_v2  ;;  %2990 = vmatprep.subr.mxu0 %v2804_v3  ;;  %v3113_v1 = vld [vmem:[#allocation14 + $0x2c0] sm:$0xff]  ;;  %v3048_v2 = vld [vmem:[#allocation14 + $0xb8] sm:$0xff] }
0x1161   :  { %2920 = vmatpush2.msra.mxu1 %v2801_v52  ;;  %2991 = vmatpush2.msra.mxu0 %v2803_v4  ;;  %v3112_v3 = vld [vmem:[#allocation14 + $0x2b8] sm:$0xff]  ;;  %v3047_v52 = vld [vmem:[#allocation14 + $0xb0] sm:$0xff] }
0x1162   :  { %2921 = vmatprep.subr.mxu1 %v2798_v6  ;;  %2992 = vmatprep.subr.mxu0 %v2800_v7  ;;  %v3111_v4 = vld [vmem:[#allocation14 + $0x2b0] sm:$0xff]  ;;  %v3046_v6 = vld [vmem:[#allocation14 + $0xa8] sm:$0xff] }
0x1163   :  { %2922 = vmatpush2.msra.mxu1 %v2797_v10  ;;  %2993 = vmatpush2.msra.mxu0 %v2799_v8  ;;  %v3110_v7 = vld [vmem:[#allocation14 + $0x2a8] sm:$0xff]  ;;  %v3045_v10 = vld [vmem:[#allocation14 + $0xa0] sm:$0xff] }
0x1164   :  { %2923 = vmatprep.subr.mxu1 %v2794_v13  ;;  %2994 = vmatprep.subr.mxu0 %v2796_v16  ;;  %v3109_v8 = vld [vmem:[#allocation14 + $0x2a0] sm:$0xff]  ;;  %v3044_v13 = vld [vmem:[#allocation14 + $0x98] sm:$0xff] }
0x1165   :  { %2924 = vmatpush2.msra.mxu1 %v2793_v14  ;;  %2995 = vmatpush2.msra.mxu0 %v2795_v19  ;;  %v3108_v16 = vld [vmem:[#allocation14 + $0x298] sm:$0xff]  ;;  %v3043_v14 = vld [vmem:[#allocation14 + $0x90] sm:$0xff] }
0x1166   :  { %2925 = vmatprep.subr.mxu1 %v2790_v20  ;;  %2996 = vmatprep.subr.mxu0 %v2792_v21  ;;  %v3107_v19 = vld [vmem:[#allocation14 + $0x290] sm:$0xff]  ;;  %v3042_v20 = vld [vmem:[#allocation14 + $0x88] sm:$0xff] }
0x1167   :  { %2926 = vmatpush2.msra.mxu1 %v2789_v22  ;;  %2997 = vmatpush2.msra.mxu0 %v2791_v23  ;;  %v3106_v21 = vld [vmem:[#allocation14 + $0x288] sm:$0xff]  ;;  %v3041_v22 = vld [vmem:[#allocation14 + $0x80] sm:$0xff] }
0x1168   :  { %2927 = vmatprep.subr.mxu1 %v2786_v24  ;;  %2998 = vmatprep.subr.mxu0 %v2788_v25  ;;  %v3105_v23 = vld [vmem:[#allocation14 + $0x280] sm:$0xff]  ;;  %v3040_v24 = vld [vmem:[#allocation14 + $0x78] sm:$0xff] }
0x1169   :  { %2928 = vmatpush2.msra.mxu1 %v2785_v26  ;;  %2999 = vmatpush2.msra.mxu0 %v2787_v27  ;;  %v3104_v25 = vld [vmem:[#allocation14 + $0x278] sm:$0xff]  ;;  %v3039_v26 = vld [vmem:[#allocation14 + $0x70] sm:$0xff] }
0x116a   :  { %2929 = vmatprep.subr.mxu1 %v2782_v15  ;;  %3000 = vmatprep.subr.mxu0 %v2784_v28  ;;  %v3103_v27 = vld [vmem:[#allocation14 + $0x270] sm:$0xff]  ;;  %v3038_v15 = vld [vmem:[#allocation14 + $0x68] sm:$0xff] }
0x116b   :  { %2930 = vmatpush2.msra.mxu1 %v2781_v29  ;;  %3001 = vmatpush2.msra.mxu0 %v2783_v30  ;;  %v3102_v28 = vld [vmem:[#allocation14 + $0x268] sm:$0xff]  ;;  %v3037_v29 = vld [vmem:[#allocation14 + $0x60] sm:$0xff] }
0x116c   :  { %3165 = vmatprep.subr.mxu1 %v3056_v31  ;;  %3236 = vmatprep.subr.mxu0 %v3120_v32  ;;  %v3101_v30 = vld [vmem:[#allocation14 + $0x260] sm:$0xff]  ;;  %v3036_v31 = vld [vmem:[#allocation14 + $0x58] sm:$0xff] }
0x116d   :  { %v3100_v32 = vld [vmem:[#allocation14 + $0x258] sm:$0xff] }
0x11ec   :  { %v2635_v36 = vpop.f32.mrf.mxu1  ;;  %v2706_v37 = vpop.f32.mrf.mxu0 }
0x11ed   :  { %v2636_v38 = vadd.f32 %v2635_v36, %v2562_v34  ;;  %v3099_v34 = vld [vmem:[#allocation14 + $0x250] sm:$0xff]  ;;  %v3098_v36 = vld [vmem:[#allocation14 + $0x248] sm:$0xff] }
0x11ee   :  { %v2637_v39 = vpop.f32.mrf.mxu1  ;;  %v2708_v42 = vpop.f32.mrf.mxu0 }
0x11ef   :  { %v2707_v40 = vadd.f32 %v2706_v37, %v2636_v38  ;;  %v2638_v41 = vadd.f32 %v2637_v39, %v2566_v35  ;;  %v3034_v35 = vld [vmem:[#allocation14 + $0x48] sm:$0xff]  ;;  %v3033_v37 = vld [vmem:[#allocation14 + $0x40] sm:$0xff]  ;;  %v3032_v39 = vld [vmem:[#allocation14 + $0x38] sm:$0xff] }
0x11f0   :  { %v3097_v38 = vld [vmem:[#allocation14 + $0x240] sm:$0xff] }
0x11f1   :  { %v2709_v43 = vadd.f32 %v2708_v42, %v2638_v41  ;;  %v2713_v44 = vmul.f32 0.01, %v2707_v40  ;;  %vm2711_vm12 = vcmp.ge.f32.partialorder %v2707_v40, 0.0  ;;  %v3031_v41 = vld [vmem:[#allocation14 + $0x30] sm:$0xff] }
0x11f2   :  { %v3095_v42 = vld [vmem:[#allocation14 + $0x230] sm:$0xff] }
0x11f3   :  { %v2714_v45 = vmul.f32 0.01, %v2709_v43  ;;  %vm2712_vm13 = vcmp.ge.f32.partialorder %v2709_v43, 0.0  ;;  %v2715_v51 = vsel %vm2711_vm12, %v2707_v40, %v2713_v44  ;;  %v3096_v40 = vld [vmem:[#allocation14 + $0x238] sm:$0xff]  ;;  %v3094_v44 = vld [vmem:[#allocation14 + $0x228] sm:$0xff] }
0x11f5   :  { %v2716_v46 = vsel %vm2712_vm13, %v2709_v43, %v2714_v45  ;;  %v3030_v43 = vld [vmem:[#allocation14 + $0x28] sm:$0xff]  ;;  %v3029_v45 = vld [vmem:[#allocation14 + $0x20] sm:$0xff] }
0x11f6   :  { %2931 = vmatprep.mubr.f32.mxu1 %v2716_v46  ;;  %3002 = vmatprep.mubr.f32.mxu0 %v2716_v46  ;;  %v3093_v46 = vld [vmem:[#allocation14 + $0x220] sm:$0xff] }
0x11f7   :  { %2932 = vmatmul.mubr.f32.vlgmr.msra.gmra.mxu1 %v2715_v51  ;;  %3003 = vmatmul.mubr.f32.vlgmr.msra.gmra.mxu0 %v2715_v51  ;;  %v3027_v51 = vld [vmem:[#allocation14 + $0x10] sm:$0xff] }
0x11f8   :  { %3166 = vmatpush1.msra.mxu1 %v3055_v47  ;;  %3237 = vmatpush1.msra.mxu0 %v3119_v48  ;;  %v3028_v47 = vld [vmem:[#allocation14 + $0x18] sm:$0xff] }
0x11f9   :  { %3167 = vmatprep.subr.mxu1 %v3054_v53  ;;  %3238 = vmatprep.subr.mxu0 %v3118_v54  ;;  %v3092_v48 = vld [vmem:[#allocation14 + $0x218] sm:$0xff]  ;;  %v3091_v53 = vld [vmem:[#allocation14 + $0x210] sm:$0xff]  ;;  %v3026_v54 = vld [vmem:[#allocation14 + $0x8] sm:$0xff] }
0x11fa   :  { %3168 = vmatpush1.msra.mxu1 %v3053_v55  ;;  %3239 = vmatpush1.msra.mxu0 %v3117_v58  ;;  %v3090_v55 = vld [vmem:[#allocation14 + $0x208] sm:$0xff]  ;;  %v3025_v58 = vld [vmem:[#allocation14] sm:$0xff] }
0x11fb   :  { %3169 = vmatprep.subr.mxu1 %v3052_v61  ;;  %3240 = vmatprep.subr.mxu0 %v3116_v62  ;;  %v3089_v61 = vld [vmem:[#allocation14 + $0x200] sm:$0xff]  ;;  %v3088_v62 = vld [vmem:[#allocation14 + $0x1f8] sm:$0xff] }
0x11fc   :  { %3170 = vmatpush1.msra.mxu1 %v3051_v63  ;;  %3241 = vmatpush1.msra.mxu0 %v3115_v0  ;;  %v3152_v63 = vld [vmem:[#allocation14 + $0x3f8] sm:$0xff]  ;;  %v3087_v0 = vld [vmem:[#allocation14 + $0x1f0] sm:$0xff] }
0x11fd   :  { %3171 = vmatprep.subr.mxu1 %v3050_v49  ;;  %3242 = vmatprep.subr.mxu0 %v3114_v9  ;;  %v3151_v49 = vld [vmem:[#allocation14 + $0x3f0] sm:$0xff]  ;;  %v3086_v9 = vld [vmem:[#allocation14 + $0x1e8] sm:$0xff] }
0x11fe   :  { %3172 = vmatpush1.msra.mxu1 %v3049_v5  ;;  %3243 = vmatpush1.msra.mxu0 %v3113_v1  ;;  %v3150_v5 = vld [vmem:[#allocation14 + $0x3e8] sm:$0xff]  ;;  %v3085_v1 = vld [vmem:[#allocation14 + $0x1e0] sm:$0xff] }
0x11ff   :  { %3173 = vmatprep.subr.mxu1 %v3048_v2  ;;  %3244 = vmatprep.subr.mxu0 %v3112_v3  ;;  %v3149_v2 = vld [vmem:[#allocation14 + $0x3e0] sm:$0xff]  ;;  %v3084_v3 = vld [vmem:[#allocation14 + $0x1d8] sm:$0xff] }
0x1200   :  { %3174 = vmatpush1.msra.mxu1 %v3047_v52  ;;  %3245 = vmatpush1.msra.mxu0 %v3111_v4  ;;  %v3148_v52 = vld [vmem:[#allocation14 + $0x3d8] sm:$0xff]  ;;  %v3083_v4 = vld [vmem:[#allocation14 + $0x1d0] sm:$0xff] }
0x1201   :  { %3175 = vmatprep.subr.mxu1 %v3046_v6  ;;  %3246 = vmatprep.subr.mxu0 %v3110_v7  ;;  %v3147_v6 = vld [vmem:[#allocation14 + $0x3d0] sm:$0xff]  ;;  %v3082_v7 = vld [vmem:[#allocation14 + $0x1c8] sm:$0xff] }
0x1202   :  { %3176 = vmatpush1.msra.mxu1 %v3045_v10  ;;  %3247 = vmatpush1.msra.mxu0 %v3109_v8  ;;  %v3146_v10 = vld [vmem:[#allocation14 + $0x3c8] sm:$0xff]  ;;  %v3081_v8 = vld [vmem:[#allocation14 + $0x1c0] sm:$0xff] }
0x1203   :  { %3177 = vmatprep.subr.mxu1 %v3044_v13  ;;  %3248 = vmatprep.subr.mxu0 %v3108_v16  ;;  %v3145_v13 = vld [vmem:[#allocation14 + $0x3c0] sm:$0xff]  ;;  %v3080_v16 = vld [vmem:[#allocation14 + $0x1b8] sm:$0xff] }
0x1204   :  { %3178 = vmatpush1.msra.mxu1 %v3043_v14  ;;  %3249 = vmatpush1.msra.mxu0 %v3107_v19  ;;  %v3144_v14 = vld [vmem:[#allocation14 + $0x3b8] sm:$0xff]  ;;  %v3079_v19 = vld [vmem:[#allocation14 + $0x1b0] sm:$0xff] }
0x1205   :  { %3179 = vmatprep.subr.mxu1 %v3042_v20  ;;  %3250 = vmatprep.subr.mxu0 %v3106_v21  ;;  %v3143_v20 = vld [vmem:[#allocation14 + $0x3b0] sm:$0xff]  ;;  %v3078_v21 = vld [vmem:[#allocation14 + $0x1a8] sm:$0xff] }
0x1206   :  { %3180 = vmatpush1.msra.mxu1 %v3041_v22  ;;  %3251 = vmatpush1.msra.mxu0 %v3105_v23  ;;  %v3142_v22 = vld [vmem:[#allocation14 + $0x3a8] sm:$0xff]  ;;  %v3077_v23 = vld [vmem:[#allocation14 + $0x1a0] sm:$0xff] }
0x1207   :  { %3181 = vmatprep.subr.mxu1 %v3040_v24  ;;  %3252 = vmatprep.subr.mxu0 %v3104_v25  ;;  %v3141_v24 = vld [vmem:[#allocation14 + $0x3a0] sm:$0xff]  ;;  %v3076_v25 = vld [vmem:[#allocation14 + $0x198] sm:$0xff] }
0x1208   :  { %3182 = vmatpush1.msra.mxu1 %v3039_v26  ;;  %3253 = vmatpush1.msra.mxu0 %v3103_v27  ;;  %v3140_v26 = vld [vmem:[#allocation14 + $0x398] sm:$0xff]  ;;  %v3075_v27 = vld [vmem:[#allocation14 + $0x190] sm:$0xff] }
0x1209   :  { %3183 = vmatprep.subr.mxu1 %v3038_v15  ;;  %3254 = vmatprep.subr.mxu0 %v3102_v28  ;;  %v3139_v15 = vld [vmem:[#allocation14 + $0x390] sm:$0xff]  ;;  %v3074_v28 = vld [vmem:[#allocation14 + $0x188] sm:$0xff] }
0x120a   :  { %3184 = vmatpush1.msra.mxu1 %v3037_v29  ;;  %3255 = vmatpush1.msra.mxu0 %v3101_v30  ;;  %v3138_v29 = vld [vmem:[#allocation14 + $0x388] sm:$0xff]  ;;  %v3073_v30 = vld [vmem:[#allocation14 + $0x180] sm:$0xff] }
0x120b   :  { %3185 = vmatprep.subr.mxu1 %v3036_v31  ;;  %3256 = vmatprep.subr.mxu0 %v3100_v32  ;;  %v3137_v31 = vld [vmem:[#allocation14 + $0x380] sm:$0xff]  ;;  %v3072_v32 = vld [vmem:[#allocation14 + $0x178] sm:$0xff] }
0x120c   :  { %3186 = vmatpush1.msra.mxu1 %v3035_v33  ;;  %3257 = vmatpush1.msra.mxu0 %v3099_v34  ;;  %v3136_v33 = vld [vmem:[#allocation14 + $0x378] sm:$0xff]  ;;  %v3071_v34 = vld [vmem:[#allocation14 + $0x170] sm:$0xff] }
0x120d   :  { %3187 = vmatprep.subr.mxu1 %v3034_v35  ;;  %3258 = vmatprep.subr.mxu0 %v3098_v36  ;;  %v3135_v35 = vld [vmem:[#allocation14 + $0x370] sm:$0xff]  ;;  %v3070_v36 = vld [vmem:[#allocation14 + $0x168] sm:$0xff] }
0x120e   :  { %3188 = vmatpush1.msra.mxu1 %v3033_v37  ;;  %3259 = vmatpush1.msra.mxu0 %v3097_v38  ;;  %v3134_v37 = vld [vmem:[#allocation14 + $0x368] sm:$0xff]  ;;  %v3069_v38 = vld [vmem:[#allocation14 + $0x160] sm:$0xff] }
0x120f   :  { %3189 = vmatprep.subr.mxu1 %v3032_v39  ;;  %3260 = vmatprep.subr.mxu0 %v3096_v40  ;;  %v3133_v39 = vld [vmem:[#allocation14 + $0x360] sm:$0xff]  ;;  %v3068_v40 = vld [vmem:[#allocation14 + $0x158] sm:$0xff] }
0x1210   :  { %3190 = vmatpush1.msra.mxu1 %v3031_v41  ;;  %3261 = vmatpush1.msra.mxu0 %v3095_v42  ;;  %v3132_v41 = vld [vmem:[#allocation14 + $0x358] sm:$0xff]  ;;  %v3067_v42 = vld [vmem:[#allocation14 + $0x150] sm:$0xff] }
0x1211   :  { %3191 = vmatprep.subr.mxu1 %v3030_v43  ;;  %3262 = vmatprep.subr.mxu0 %v3094_v44  ;;  %v3131_v43 = vld [vmem:[#allocation14 + $0x350] sm:$0xff]  ;;  %v3066_v44 = vld [vmem:[#allocation14 + $0x148] sm:$0xff] }
0x1212   :  { %3192 = vmatpush1.msra.mxu1 %v3029_v45  ;;  %3263 = vmatpush1.msra.mxu0 %v3093_v46  ;;  %v3130_v45 = vld [vmem:[#allocation14 + $0x348] sm:$0xff]  ;;  %v3065_v46 = vld [vmem:[#allocation14 + $0x140] sm:$0xff] }
0x1213   :  { %3193 = vmatprep.subr.mxu1 %v3028_v47  ;;  %3264 = vmatprep.subr.mxu0 %v3092_v48  ;;  %v3129_v47 = vld [vmem:[#allocation14 + $0x340] sm:$0xff]  ;;  %v3064_v48 = vld [vmem:[#allocation14 + $0x138] sm:$0xff] }
0x1214   :  { %3194 = vmatpush1.msra.mxu1 %v3027_v51  ;;  %3265 = vmatpush1.msra.mxu0 %v3091_v53  ;;  %v3128_v51 = vld [vmem:[#allocation14 + $0x338] sm:$0xff]  ;;  %v3063_v53 = vld [vmem:[#allocation14 + $0x130] sm:$0xff] }
0x1215   :  { %3195 = vmatprep.subr.mxu1 %v3026_v54  ;;  %3266 = vmatprep.subr.mxu0 %v3090_v55  ;;  %v3127_v54 = vld [vmem:[#allocation14 + $0x330] sm:$0xff]  ;;  %v3062_v55 = vld [vmem:[#allocation14 + $0x128] sm:$0xff] }
0x1216   :  { %3196 = vmatpush1.msra.mxu1 %v3025_v58  ;;  %3267 = vmatpush1.msra.mxu0 %v3089_v61  ;;  %v3126_v58 = vld [vmem:[#allocation14 + $0x328] sm:$0xff]  ;;  %v3061_v61 = vld [vmem:[#allocation14 + $0x120] sm:$0xff] }
0x1217   :  { %3197 = vmatprep.subr.mxu1 %v3088_v62  ;;  %3268 = vmatprep.subr.mxu0 %v3152_v63  ;;  %v3125_v62 = vld [vmem:[#allocation14 + $0x320] sm:$0xff]  ;;  %v3060_v63 = vld [vmem:[#allocation14 + $0x118] sm:$0xff] }
0x1218   :  { %3198 = vmatpush2.msra.mxu1 %v3087_v0  ;;  %3269 = vmatpush2.msra.mxu0 %v3151_v49  ;;  %v3124_v0 = vld [vmem:[#allocation14 + $0x318] sm:$0xff]  ;;  %v3059_v49 = vld [vmem:[#allocation14 + $0x110] sm:$0xff] }
0x1219   :  { %3199 = vmatprep.subr.mxu1 %v3086_v9  ;;  %3270 = vmatprep.subr.mxu0 %v3150_v5  ;;  %v3123_v9 = vld [vmem:[#allocation14 + $0x310] sm:$0xff]  ;;  %v3058_v5 = vld [vmem:[#allocation14 + $0x108] sm:$0xff] }
0x121a   :  { %3200 = vmatpush2.msra.mxu1 %v3085_v1  ;;  %3271 = vmatpush2.msra.mxu0 %v3149_v2  ;;  %v3122_v1 = vld [vmem:[#allocation14 + $0x308] sm:$0xff]  ;;  %v3057_v2 = vld [vmem:[#allocation14 + $0x100] sm:$0xff] }
0x121b   :  { %3201 = vmatprep.subr.mxu1 %v3084_v3  ;;  %3272 = vmatprep.subr.mxu0 %v3148_v52  ;;  %v3121_v3 = vld [vmem:[#allocation14 + $0x300] sm:$0xff]  ;;  %v3338_v52 = vld [vmem:[#allocation16 + $0xf8] sm:$0xff] }
0x121c   :  { %3202 = vmatpush2.msra.mxu1 %v3083_v4  ;;  %3273 = vmatpush2.msra.mxu0 %v3147_v6  ;;  %v2845_v4 = vld [vmem:[%s4939_s19] sm:$0xf] }
0x121d   :  { %3203 = vmatprep.subr.mxu1 %v3082_v7  ;;  %3274 = vmatprep.subr.mxu0 %v3146_v10  ;;  %v2850_v6 = vrot.slane %v2845_v4, %v4844_v56  ;;  %v2858_v7 = vrot.slane %v2845_v4, %v2265_v57 }
0x121e   :  { %3204 = vmatpush2.msra.mxu1 %v3081_v8  ;;  %3275 = vmatpush2.msra.mxu0 %v3145_v13  ;;  %v2854_v13 = vrot.slane %v2845_v4, %v4851_v59 }
0x121f   :  { %3205 = vmatprep.subr.mxu1 %v3080_v16  ;;  %3276 = vmatprep.subr.mxu0 %v3144_v14  ;;  %v2862_v16 = vrot.slane %v2845_v4, %v2269_v60  ;;  %v3364_v4 = vld [vmem:[#allocation16 + $0x1c8] sm:$0xff] }
0x1220   :  { %3206 = vmatpush2.msra.mxu1 %v3079_v19  ;;  %3277 = vmatpush2.msra.mxu0 %v3143_v20 }
0x1221   :  { %3207 = vmatprep.subr.mxu1 %v3078_v21  ;;  %3278 = vmatprep.subr.mxu0 %v3142_v22 }
0x1222   :  { %3208 = vmatpush2.msra.mxu1 %v3077_v23  ;;  %3279 = vmatpush2.msra.mxu0 %v3141_v24 }
0x1223   :  { %3209 = vmatprep.subr.mxu1 %v3076_v25  ;;  %3280 = vmatprep.subr.mxu0 %v3140_v26 }
0x1224   :  { %3210 = vmatpush2.msra.mxu1 %v3075_v27  ;;  %3281 = vmatpush2.msra.mxu0 %v3139_v15 }
0x1225   :  { %3211 = vmatprep.subr.mxu1 %v3074_v28  ;;  %3282 = vmatprep.subr.mxu0 %v3138_v29 }
0x1226   :  { %3212 = vmatpush2.msra.mxu1 %v3073_v30  ;;  %3283 = vmatpush2.msra.mxu0 %v3137_v31  ;;  %v3337_v31 = vld [vmem:[#allocation16 + $0xf0] sm:$0xff] }
0x1227   :  { %3213 = vmatprep.subr.mxu1 %v3072_v32  ;;  %3284 = vmatprep.subr.mxu0 %v3136_v33  ;;  %v3336_v33 = vld [vmem:[#allocation16 + $0xe8] sm:$0xff] }
0x1228   :  { %3214 = vmatpush2.msra.mxu1 %v3071_v34  ;;  %3285 = vmatpush2.msra.mxu0 %v3135_v35  ;;  %v3335_v34 = vld [vmem:[#allocation16 + $0xe0] sm:$0xff]  ;;  %v3334_v35 = vld [vmem:[#allocation16 + $0xd8] sm:$0xff] }
0x1229   :  { %3215 = vmatprep.subr.mxu1 %v3070_v36  ;;  %3286 = vmatprep.subr.mxu0 %v3134_v37  ;;  %v3333_v36 = vld [vmem:[#allocation16 + $0xd0] sm:$0xff]  ;;  %v3331_v37 = vld [vmem:[#allocation16 + $0xc0] sm:$0xff] }
0x122a   :  { %3216 = vmatpush2.msra.mxu1 %v3069_v38  ;;  %3287 = vmatpush2.msra.mxu0 %v3133_v39  ;;  %v3327_v38 = vld [vmem:[#allocation16 + $0xa0] sm:$0xff]  ;;  %v3326_v39 = vld [vmem:[#allocation16 + $0x98] sm:$0xff] }
0x122b   :  { %3217 = vmatprep.subr.mxu1 %v3068_v40  ;;  %3288 = vmatprep.subr.mxu0 %v3132_v41  ;;  %v3325_v40 = vld [vmem:[#allocation16 + $0x90] sm:$0xff]  ;;  %v3324_v41 = vld [vmem:[#allocation16 + $0x88] sm:$0xff] }
0x122c   :  { %3218 = vmatpush2.msra.mxu1 %v3067_v42  ;;  %3289 = vmatpush2.msra.mxu0 %v3131_v43  ;;  %v3323_v42 = vld [vmem:[#allocation16 + $0x80] sm:$0xff]  ;;  %v3322_v43 = vld [vmem:[#allocation16 + $0x78] sm:$0xff] }
0x122d   :  { %3219 = vmatprep.subr.mxu1 %v3066_v44  ;;  %3290 = vmatprep.subr.mxu0 %v3130_v45  ;;  %v3321_v44 = vld [vmem:[#allocation16 + $0x70] sm:$0xff]  ;;  %v3320_v45 = vld [vmem:[#allocation16 + $0x68] sm:$0xff] }
0x122e   :  { %3220 = vmatpush2.msra.mxu1 %v3065_v46  ;;  %3291 = vmatpush2.msra.mxu0 %v3129_v47  ;;  %v3319_v46 = vld [vmem:[#allocation16 + $0x60] sm:$0xff]  ;;  %v3318_v47 = vld [vmem:[#allocation16 + $0x58] sm:$0xff] }
0x122f   :  { %3221 = vmatprep.subr.mxu1 %v3064_v48  ;;  %3292 = vmatprep.subr.mxu0 %v3128_v51  ;;  %v3317_v48 = vld [vmem:[#allocation16 + $0x50] sm:$0xff]  ;;  %v3316_v51 = vld [vmem:[#allocation16 + $0x48] sm:$0xff] }
0x1230   :  { %3222 = vmatpush2.msra.mxu1 %v3063_v53  ;;  %3293 = vmatpush2.msra.mxu0 %v3127_v54  ;;  %v3315_v53 = vld [vmem:[#allocation16 + $0x40] sm:$0xff]  ;;  %v3314_v54 = vld [vmem:[#allocation16 + $0x38] sm:$0xff] }
0x1231   :  { %3223 = vmatprep.subr.mxu1 %v3062_v55  ;;  %3294 = vmatprep.subr.mxu0 %v3126_v58  ;;  %v3313_v55 = vld [vmem:[#allocation16 + $0x30] sm:$0xff]  ;;  %v3312_v58 = vld [vmem:[#allocation16 + $0x28] sm:$0xff] }
0x1232   :  { %3224 = vmatpush2.msra.mxu1 %v3061_v61  ;;  %3295 = vmatpush2.msra.mxu0 %v3125_v62  ;;  %v3311_v61 = vld [vmem:[#allocation16 + $0x20] sm:$0xff]  ;;  %v3310_v62 = vld [vmem:[#allocation16 + $0x18] sm:$0xff] }
0x1233   :  { %3225 = vmatprep.subr.mxu1 %v3060_v63  ;;  %3296 = vmatprep.subr.mxu0 %v3124_v0  ;;  %v3309_v63 = vld [vmem:[#allocation16 + $0x10] sm:$0xff]  ;;  %v3308_v0 = vld [vmem:[#allocation16 + $0x8] sm:$0xff] }
0x1234   :  { %3226 = vmatpush2.msra.mxu1 %v3059_v49  ;;  %3297 = vmatpush2.msra.mxu0 %v3123_v9  ;;  %v3307_v49 = vld [vmem:[#allocation16] sm:$0xff]  ;;  %v3370_v9 = vld [vmem:[#allocation16 + $0x1f8] sm:$0xff] }
0x1235   :  { %3227 = vmatprep.subr.mxu1 %v3058_v5  ;;  %3298 = vmatprep.subr.mxu0 %v3122_v1  ;;  %v3369_v5 = vld [vmem:[#allocation16 + $0x1f0] sm:$0xff]  ;;  %v3368_v1 = vld [vmem:[#allocation16 + $0x1e8] sm:$0xff] }
0x1236   :  { %3228 = vmatpush2.msra.mxu1 %v3057_v2  ;;  %3299 = vmatpush2.msra.mxu0 %v3121_v3  ;;  %v3367_v2 = vld [vmem:[#allocation16 + $0x1e0] sm:$0xff]  ;;  %v3366_v3 = vld [vmem:[#allocation16 + $0x1d8] sm:$0xff] }
0x1237   :  { %3383 = vmatprep.subr.mxu1 %v3338_v52  ;;  %v3365_v52 = vld [vmem:[#allocation16 + $0x1d0] sm:$0xff] }
0x12b7   :  { %v2933_v10 = vpop.f32.mrf.mxu1  ;;  %v3004_v8 = vpop.f32.mrf.mxu0 }
0x12b8   :  { %v2934_v14 = vadd.f32 %v2933_v10, %v2850_v6  ;;  %v3005_v19 = vadd.f32 %v3004_v8, %v2858_v7  ;;  %v3363_v6 = vld [vmem:[#allocation16 + $0x1c0] sm:$0xff]  ;;  %v3362_v7 = vld [vmem:[#allocation16 + $0x1b8] sm:$0xff]  ;;  %v3361_v10 = vld [vmem:[#allocation16 + $0x1b0] sm:$0xff] }
0x12b9   :  { %v2935_v20 = vpop.f32.mrf.mxu1  ;;  %v3006_v21 = vpop.f32.mrf.mxu0  ;;  %v3360_v8 = vld [vmem:[#allocation16 + $0x1a8] sm:$0xff] }
0x12ba   :  { %v3013_v22 = vmul.f32 0.01, %v2934_v14  ;;  %vm3009_vm14 = vcmp.ge.f32.partialorder %v2934_v14, 0.0  ;;  %v3015_v23 = vmul.f32 0.01, %v3005_v19  ;;  %v2936_v24 = vadd.f32 %v2935_v20, %v2854_v13  ;;  %v3359_v13 = vld [vmem:[#allocation16 + $0x1a0] sm:$0xff] }
0x12bb   :  { %v3007_v25 = vadd.f32 %v3006_v21, %v2862_v16  ;;  %vm3011_vm15 = vcmp.ge.f32.partialorder %v3005_v19, 0.0  ;;  %v3358_v16 = vld [vmem:[#allocation16 + $0x198] sm:$0xff]  ;;  %v3355_v20 = vld [vmem:[#allocation16 + $0x180] sm:$0xff] }
0x12bc   :  { %vm3010_vm0 = vcmp.ge.f32.partialorder %v2936_v24, 0.0  ;;  %v3014_v26 = vmul.f32 0.01, %v2936_v24  ;;  %v3017_v57 = vsel %vm3009_vm14, %v2934_v14, %v3013_v22  ;;  %v3019_v15 = vsel %vm3011_vm15, %v3005_v19, %v3015_v23  ;;  %v3357_v14 = vld [vmem:[#allocation16 + $0x190] sm:$0xff]  ;;  %v3356_v19 = vld [vmem:[#allocation16 + $0x188] sm:$0xff]  ;;  %v3354_v21 = vld [vmem:[#allocation16 + $0x178] sm:$0xff] }
0x12bd   :  { %vm3012_vm1 = vcmp.ge.f32.partialorder %v3007_v25, 0.0  ;;  %v3016_v27 = vmul.f32 0.01, %v3007_v25  ;;  %v3021_v29 = vadd.f32 %v3017_v57, %v4866_v17  ;;  %v3023_v32 = vadd.f32 %v3019_v15, %v4868_v18  ;;  %v3330_v17 = vld [vmem:[#allocation16 + $0xb8] sm:$0xff]  ;;  %v3328_v18 = vld [vmem:[#allocation16 + $0xa8] sm:$0xff]  ;;  %v3353_v22 = vld [vmem:[#allocation16 + $0x170] sm:$0xff] }
0x12be   :  { %v3018_v28 = vsel %vm3010_vm0, %v2936_v24, %v3014_v26  ;;  %v3352_v23 = vld [vmem:[#allocation16 + $0x168] sm:$0xff]  ;;  %v3351_v24 = vld [vmem:[#allocation16 + $0x160] sm:$0xff]  ;;  %v3349_v26 = vld [vmem:[#allocation16 + $0x150] sm:$0xff] }
0x12bf   :  { %v3022_v50 = vadd.f32 %v3018_v28, %v4860_v11  ;;  %v3020_v60 = vsel %vm3012_vm1, %v3007_v25, %v3016_v27  ;;  %v3332_v11 = vld [vmem:[#allocation16 + $0xc8] sm:$0xff]  ;;  %v3350_v25 = vld [vmem:[#allocation16 + $0x158] sm:$0xff]  ;;  %v3347_v27 = vld [vmem:[#allocation16 + $0x140] sm:$0xff] }
0x12c0   :  { %v3024_v30 = vadd.f32 %v3020_v60, %v4862_v12  ;;  %v3329_v12 = vld [vmem:[#allocation16 + $0xb0] sm:$0xff]  ;;  %v3348_v57 = vld [vmem:[#allocation16 + $0x148] sm:$0xff]  ;;  %v3346_v15 = vld [vmem:[#allocation16 + $0x138] sm:$0xff] }
0x12c1   :  { %3229 = vmatprep.mubr.f32.mxu1 %v3022_v50  ;;  %v3345_v28 = vld [vmem:[#allocation16 + $0x130] sm:$0xff]  ;;  %v3344_v50 = vld [vmem:[#allocation16 + $0x128] sm:$0xff]  ;;  %v3343_v60 = vld [vmem:[#allocation16 + $0x120] sm:$0xff] }
0x12c2   :  { %3300 = vmatprep.mubr.f32.mxu0 %v3024_v30  ;;  %3230 = vmatmul.mubr.f32.vlgmr.msra.gmra.mxu1 %v3021_v29  ;;  %v3342_v29 = vld [vmem:[#allocation16 + $0x118] sm:$0xff]  ;;  %v3341_v30 = vld [vmem:[#allocation16 + $0x110] sm:$0xff] }
0x12c3   :  { %3301 = vmatmul.mubr.f32.vlgmr.msra.gmra.mxu0 %v3023_v32  ;;  %3384 = vmatpush1.msra.mxu1 %v3337_v31  ;;  %v3340_v31 = vld [vmem:[#allocation16 + $0x108] sm:$0xff]  ;;  %v3339_v32 = vld [vmem:[#allocation16 + $0x100] sm:$0xff] }
0x12c4   :  { %3385 = vmatprep.subr.mxu1 %v3336_v33  ;;  %v3153_v33 = vld [vmem:[%s4941_s21] sm:$0x3]  ;;  %s4374_s21 = smov [#allocation23]  }
0x12c5   :  { %3386 = vmatpush1.msra.mxu1 %v3335_v34  ;;  %v3158_v34 = vrot.slane %v3153_v33, %v4844_v56  ;;  %s3626_s6 = sshll.u32 %s4374_s21, 4  ;;  %s3627_s6 = int_to_ptr.vmem [resolvable:$true] %s3626_s6 }
0x12c6   :  { %3387 = vmatprep.subr.mxu1 %v3334_v35  ;;  %v3162_v35 = vrot.slane %v3153_v33, %v4851_v59  ;;  %s4264_s20 = scalar_lea.vmem %s3627_s6, 64  ;;  %p4269_p5 = scmp.lt.s32.totalorder %s3627_s6, %s3627_s6 }
0x12c7   :  { %3388 = vmatpush1.msra.mxu1 %v3333_v36  ;;  %p4265_p4 = scmp.ne.s32.totalorder %s3627_s6, %s4264_s20  ;;  %p4270_p6 = scmp.lt.s32.totalorder %s4264_s20, %s4264_s20 }
0x12c8   :  { %3389 = vmatprep.subr.mxu1 %v3332_v11 }
0x12c9   :  { %3390 = vmatpush1.msra.mxu1 %v3331_v37  ;;  %p4271_p7 = por %p4270_p6, %p4269_p5 }
0x12ca   :  { %3391 = vmatprep.subr.mxu1 %v3330_v17 }
0x12cb   :  { %3392 = vmatpush1.msra.mxu1 %v3329_v12  ;;  %p4272_p8 = pnand %p4271_p7, %p4265_p4 }
0x12cc   :  { %3393 = vmatprep.subr.mxu1 %v3328_v18 }
0x12cd   :  { %3394 = vmatpush1.msra.mxu1 %v3327_v38 }
0x12ce   :  { %3395 = vmatprep.subr.mxu1 %v3326_v39 }
0x12cf   :  { %3396 = vmatpush1.msra.mxu1 %v3325_v40 }
0x12d0   :  { %3397 = vmatprep.subr.mxu1 %v3324_v41  ;;  %v3371_v41 = vld [vmem:[#allocation17] sm:$0x3] }
0x12d1   :  { %3398 = vmatpush1.msra.mxu1 %v3323_v42  ;;  %v3376_v42 = vrot.slane %v3371_v41, %v4844_v56  ;;  %v3505_v56 = vld [vmem:[#allocation19 + $0xe8] sm:$0xff] }
0x12d2   :  { %3399 = vmatprep.subr.mxu1 %v3322_v43  ;;  %v3380_v43 = vrot.slane %v3371_v41, %v4851_v59  ;;  %v3489_v59 = vld [vmem:[#allocation19 + $0x68] sm:$0xff] }
0x12d3   :  { %3400 = vmatpush1.msra.mxu1 %v3321_v44 }
0x12d4   :  { %3401 = vmatprep.subr.mxu1 %v3320_v45 }
0x12d5   :  { %3402 = vmatpush1.msra.mxu1 %v3319_v46 }
0x12d6   :  { %3403 = vmatprep.subr.mxu1 %v3318_v47 }
0x12d7   :  { %3404 = vmatpush1.msra.mxu1 %v3317_v48 }
0x12d8   :  { %3405 = vmatprep.subr.mxu1 %v3316_v51 }
0x12d9   :  { %3406 = vmatpush1.msra.mxu1 %v3315_v53 }
0x12da   :  { %3407 = vmatprep.subr.mxu1 %v3314_v54  ;;  %v3507_v54 = vld [vmem:[#allocation19 + $0xf8] sm:$0xff] }
0x12db   :  { %3408 = vmatpush1.msra.mxu1 %v3313_v55  ;;  %v3491_v55 = vld [vmem:[#allocation19 + $0x78] sm:$0xff]  ;;  %3761 = vmatprep.subr.mxu0 %v3507_v54 }
0x12dc   :  { %3409 = vmatprep.subr.mxu1 %v3312_v58  ;;  %v3506_v58 = vld [vmem:[#allocation19 + $0xf0] sm:$0xff]  ;;  %3762 = vmatpush3.msra.mxu0 %v3491_v55 }
0x12dd   :  { %3410 = vmatpush1.msra.mxu1 %v3311_v61  ;;  %v3490_v61 = vld [vmem:[#allocation19 + $0x70] sm:$0xff]  ;;  %3763 = vmatprep.subr.mxu0 %v3506_v58 }
0x12de   :  { %3411 = vmatprep.subr.mxu1 %v3310_v62  ;;  %3764 = vmatpush3.msra.mxu0 %v3490_v61  ;;  %v3504_v62 = vld [vmem:[#allocation19 + $0xe0] sm:$0xff] }
0x12df   :  { %3412 = vmatpush1.msra.mxu1 %v3309_v63  ;;  %3765 = vmatprep.subr.mxu0 %v3505_v56  ;;  %v3488_v63 = vld [vmem:[#allocation19 + $0x60] sm:$0xff] }
0x12e0   :  { %3413 = vmatprep.subr.mxu1 %v3308_v0  ;;  %3766 = vmatpush3.msra.mxu0 %v3489_v59  ;;  %v3503_v0 = vld [vmem:[#allocation19 + $0xd8] sm:$0xff] }
0x12e1   :  { %3414 = vmatpush1.msra.mxu1 %v3307_v49  ;;  %3767 = vmatprep.subr.mxu0 %v3504_v62  ;;  %v3487_v49 = vld [vmem:[#allocation19 + $0x58] sm:$0xff] }
0x12e2   :  { %3415 = vmatprep.subr.mxu1 %v3370_v9  ;;  %3768 = vmatpush3.msra.mxu0 %v3488_v63  ;;  %v3502_v9 = vld [vmem:[#allocation19 + $0xd0] sm:$0xff] }
0x12e3   :  { %3416 = vmatpush2.msra.mxu1 %v3369_v5  ;;  %3769 = vmatprep.subr.mxu0 %v3503_v0  ;;  %v3486_v5 = vld [vmem:[#allocation19 + $0x50] sm:$0xff] }
0x12e4   :  { %3417 = vmatprep.subr.mxu1 %v3368_v1  ;;  %3770 = vmatpush3.msra.mxu0 %v3487_v49  ;;  %v3501_v1 = vld [vmem:[#allocation19 + $0xc8] sm:$0xff] }
0x12e5   :  { %3418 = vmatpush2.msra.mxu1 %v3367_v2  ;;  %3771 = vmatprep.subr.mxu0 %v3502_v9 }
0x12e6   :  { %3419 = vmatprep.subr.mxu1 %v3366_v3  ;;  %3772 = vmatpush3.msra.mxu0 %v3486_v5 }
0x12e7   :  { %3420 = vmatpush2.msra.mxu1 %v3365_v52  ;;  %3773 = vmatprep.subr.mxu0 %v3501_v1 }
0x12e8   :  { %3421 = vmatprep.subr.mxu1 %v3364_v4 }
0x12e9   :  { %3422 = vmatpush2.msra.mxu1 %v3363_v6 }
0x12ea   :  { %3423 = vmatprep.subr.mxu1 %v3362_v7 }
0x12eb   :  { %3424 = vmatpush2.msra.mxu1 %v3361_v10 }
0x12ec   :  { %3425 = vmatprep.subr.mxu1 %v3360_v8 }
0x12ed   :  { %3426 = vmatpush2.msra.mxu1 %v3359_v13 }
0x12ee   :  { %3427 = vmatprep.subr.mxu1 %v3358_v16 }
0x12ef   :  { %3428 = vmatpush2.msra.mxu1 %v3357_v14  ;;  %v3485_v14 = vld [vmem:[#allocation19 + $0x48] sm:$0xff] }
0x12f0   :  { %3429 = vmatprep.subr.mxu1 %v3356_v19  ;;  %3774 = vmatpush3.msra.mxu0 %v3485_v14  ;;  %v3500_v19 = vld [vmem:[#allocation19 + $0xc0] sm:$0xff] }
0x12f1   :  { %3430 = vmatpush2.msra.mxu1 %v3355_v20  ;;  %v3484_v20 = vld [vmem:[#allocation19 + $0x40] sm:$0xff]  ;;  %3775 = vmatprep.subr.mxu0 %v3500_v19 }
0x12f2   :  { %3431 = vmatprep.subr.mxu1 %v3354_v21  ;;  %v3499_v21 = vld [vmem:[#allocation19 + $0xb8] sm:$0xff]  ;;  %3776 = vmatpush3.msra.mxu0 %v3484_v20 }
0x12f3   :  { %3432 = vmatpush2.msra.mxu1 %v3353_v22  ;;  %v3483_v22 = vld [vmem:[#allocation19 + $0x38] sm:$0xff]  ;;  %3777 = vmatprep.subr.mxu0 %v3499_v21 }
0x12f4   :  { %3433 = vmatprep.subr.mxu1 %v3352_v23  ;;  %v3498_v23 = vld [vmem:[#allocation19 + $0xb0] sm:$0xff]  ;;  %3778 = vmatpush3.msra.mxu0 %v3483_v22 }
0x12f5   :  { %3434 = vmatpush2.msra.mxu1 %v3351_v24  ;;  %v3482_v24 = vld [vmem:[#allocation19 + $0x30] sm:$0xff]  ;;  %3779 = vmatprep.subr.mxu0 %v3498_v23 }
0x12f6   :  { %3435 = vmatprep.subr.mxu1 %v3350_v25  ;;  %v3497_v25 = vld [vmem:[#allocation19 + $0xa8] sm:$0xff]  ;;  %3780 = vmatpush3.msra.mxu0 %v3482_v24 }
0x12f7   :  { %3436 = vmatpush2.msra.mxu1 %v3349_v26  ;;  %v3481_v26 = vld [vmem:[#allocation19 + $0x28] sm:$0xff]  ;;  %3781 = vmatprep.subr.mxu0 %v3497_v25 }
0x12f8   :  { %3437 = vmatprep.subr.mxu1 %v3348_v57  ;;  %v3496_v57 = vld [vmem:[#allocation19 + $0xa0] sm:$0xff]  ;;  %3782 = vmatpush3.msra.mxu0 %v3481_v26 }
0x12f9   :  { %3438 = vmatpush2.msra.mxu1 %v3347_v27  ;;  %v3480_v27 = vld [vmem:[#allocation19 + $0x20] sm:$0xff]  ;;  %3783 = vmatprep.subr.mxu0 %v3496_v57 }
0x12fa   :  { %3439 = vmatprep.subr.mxu1 %v3346_v15  ;;  %v3495_v15 = vld [vmem:[#allocation19 + $0x98] sm:$0xff]  ;;  %3784 = vmatpush3.msra.mxu0 %v3480_v27 }
0x12fb   :  { %3440 = vmatpush2.msra.mxu1 %v3345_v28  ;;  %v3479_v28 = vld [vmem:[#allocation19 + $0x18] sm:$0xff]  ;;  %3785 = vmatprep.subr.mxu0 %v3495_v15 }
0x12fc   :  { %3441 = vmatprep.subr.mxu1 %v3344_v50  ;;  %v3494_v50 = vld [vmem:[#allocation19 + $0x90] sm:$0xff]  ;;  %3786 = vmatpush3.msra.mxu0 %v3479_v28 }
0x12fd   :  { %3442 = vmatpush2.msra.mxu1 %v3343_v60  ;;  %v3478_v60 = vld [vmem:[#allocation19 + $0x10] sm:$0xff]  ;;  %3787 = vmatprep.subr.mxu0 %v3494_v50 }
0x12fe   :  { %3443 = vmatprep.subr.mxu1 %v3342_v29  ;;  %v3493_v29 = vld [vmem:[#allocation19 + $0x88] sm:$0xff]  ;;  %3788 = vmatpush3.msra.mxu0 %v3478_v60 }
0x12ff   :  { %3444 = vmatpush2.msra.mxu1 %v3341_v30  ;;  %v3477_v30 = vld [vmem:[#allocation19 + $0x8] sm:$0xff]  ;;  %3789 = vmatprep.subr.mxu0 %v3493_v29 }
0x1300   :  { %3445 = vmatprep.subr.mxu1 %v3340_v31  ;;  %v3492_v31 = vld [vmem:[#allocation19 + $0x80] sm:$0xff]  ;;  %3790 = vmatpush3.msra.mxu0 %v3477_v30 }
0x1301   :  { %3446 = vmatpush2.msra.mxu1 %v3339_v32  ;;  %v3476_v32 = vld [vmem:[#allocation19] sm:$0xff]  ;;  %3791 = vmatprep.subr.mxu0 %v3492_v31 }
0x1302   :  { %3792 = vmatpush3.msra.mxu0 %v3476_v32 }
0x1382   :  { %v3231_v36 = vpop.f32.mrf.mxu1 }
0x1383   :  { %v3232_v11 = vadd.f32 %v3231_v36, %v3158_v34  ;;  %v3302_v37 = vpop.f32.mrf.mxu0 }
0x1384   :  { %v3233_v17 = vpop.f32.mrf.mxu1 }
0x1385   :  { %v3234_v12 = vadd.f32 %v3233_v17, %v3162_v35  ;;  %v3304_v18 = vpop.f32.mrf.mxu0  ;;  %v4895_v38 = vadd.f32 %v3302_v37, %v3232_v11 }
0x1387   :  { %v4897_v39 = vadd.f32 %v3304_v18, %v3234_v12 }
0x1389   :  { %3447 = vmatprep.mubr.f32.mxu1 %v4897_v39  ;;  %v3588_v40 = vcombine.low %v4895_v38, %v4897_v39 }
0x138a   :  { %3448 = vmatmul.mubr.f32.vlgmr.msra.gmra.mxu1 %v4895_v38 }
0x138b   :  { %3699 = vst.sshfl [vmem:[#allocation23] sm:$0x33 pattern:$0x76325410] %v3588_v40 }
0x144a   :  { %v3449_v44 = vpop.f32.mrf.mxu1 }
0x144b   :  { %v3450_v45 = vadd.f32 %v3449_v44, %v3376_v42 }
0x144c   :  { %v3451_v46 = vpop.f32.mrf.mxu1 }
0x144d   :  { %v3452_v47 = vadd.f32 %v3451_v46, %v3380_v43  ;;  %v3455_v48 = vsel %vm3454_vm2, %v3450_v45, -inf }
0x144f   :  { %v3456_v51 = vsel %vm3454_vm2, %v3452_v47, -inf }
0x1450   :  { %v3457_v53 = vmax.f32 %v3455_v48, %v3456_v51 }
0x1452   :  { %3458 = vmax.xlane.f32.xlu1 %v3457_v53 }
0x14db   :  { %v3459_v2 = vpop.xlane.xlu1 %3458 }
0x14dc   :  { %v3460_v3 = vsub.f32 %v3450_v45, %v3459_v2  ;;  %v3461_v52 = vsub.f32 %v3452_v47, %v3459_v2 }
0x14de   :  { %v3462_v4 = vmul.f32 1.442695, %v3460_v3  ;;  %v3464_v6 = vmul.f32 1.442695, %v3461_v52 }
0x14e0   :  { %4018 = vpow2.f32 %v3462_v4 }
0x14e1   :  { %4020 = vpow2.f32 %v3464_v6 }
0x14ed   :  { %v4019_v7 = vpop.eup %4018 }
0x14ee   :  { %v4021_v10 = vpop.eup %4020  ;;  %v3466_v8 = vsel %vm3454_vm2, %v4019_v7, 0.0 }
0x14ef   :  { %v3467_v13 = vsel %vm3454_vm2, %v4021_v10, 0.0 }
0x14f0   :  { %v3468_v16 = vadd.f32 %v3467_v13, %v3466_v8 }
0x14f2   :  { %3469 = vadd.xlane.f32.xlu0 %v3468_v16 }
0x157b   :  { %v3470_v33 = vpop.xlane.xlu0 %3469 }
0x157c   :  { %4022 = vrcp.f32 %v3470_v33 }
0x1589   :  { %v4023_v34 = vpop.eup %4022 }
0x158a   :  { %v3473_v35 = vmul.f32 %v4023_v34, %v4021_v10  ;;  %v3472_v36 = vmul.f32 %v4023_v34, %v4019_v7 }
0x158c   :  { %v3475_v11 = vmul.f32 %v3473_v35, %v4897_v39  ;;  %v3474_v37 = vmul.f32 %v3472_v36, %v4895_v38  ;;  %v3600_v17 = vcombine.low %v3472_v36, %v3473_v35 }
0x158e   :  { %3579 = vmatprep.mubr.f32.mxu0 %v3475_v11  ;;  %3700 = vst.sshfl [vmem:[#allocation25] sm:$0x33 pattern:$0x76325410] %v3600_v17 }
0x158f   :  { %3580 = vmatmul.mubr.f32.vlgmr.msra.gmra.mxu0 %v3474_v37 }
0x1590   :  { %4275 = shalt.err (!%p4272_p8)
}
0x1591   :  { %3629 = dma.vmem_to_hbm [thread:$0]  %s3627_s6, 64, %s4947_s27, [#allocation24]  }
0x1592   :  { %s4375_s13 = smov [#allocation25]  }
0x1593   :  { %s3636_s3 = sshll.u32 %s4375_s13, 4  ;;  %s3637_s3 = int_to_ptr.vmem [resolvable:$true] %s3636_s3 }
0x1594   :  { %s4284_s24 = scalar_lea.vmem %s3637_s3, 64  ;;  %p4289_p10 = scmp.lt.s32.totalorder %s3637_s3, %s3637_s3 }
0x1595   :  { %p4285_p9 = scmp.ne.s32.totalorder %s3637_s3, %s4284_s24  ;;  %p4290_p11 = scmp.lt.s32.totalorder %s4284_s24, %s4284_s24 }
0x1597   :  { %p4291_p12 = por %p4290_p11, %p4289_p10 }
0x1599   :  { %p4292_p13 = pnand %p4291_p12, %p4285_p9 }
0x159b   :  { %4295 = shalt.err (!%p4292_p13)
}
0x159c   :  { %3639 = dma.vmem_to_hbm [thread:$0]  %s3637_s3, 64, %s4948_s28, [#allocation24]   ;;  %v3698_v18 = vld [vmem:[#allocation20] ss:$0 sm:$0xff] }
0x159d   :  { %s4376_s23 = smov [#allocation22]  }
0x159e   :  { %s3616_s0 = sshll.u32 %s4376_s23, 4  ;;  %s3617_s0 = int_to_ptr.vmem [resolvable:$true] %s3616_s0 }
0x159f   :  { %s4304_s27 = scalar_lea.vmem %s3617_s0, 32  ;;  %p4309_p1 = scmp.lt.s32.totalorder %s3617_s0, %s3617_s0 }
0x15a0   :  { %p4305_p0 = scmp.ne.s32.totalorder %s3617_s0, %s4304_s27  ;;  %p4310_p2 = scmp.lt.s32.totalorder %s4304_s27, %s4304_s27 }
0x15a2   :  { %p4311_p3 = por %p4310_p2, %p4309_p1 }
0x15a4   :  { %p4312_p4 = pnand %p4311_p3, %p4305_p0 }
0x164f   :  { %v3793_v12 = vpop.f32.mrf.mxu0 }
0x1651   :  { %v3794_v38 = vpop.f32.mrf.mxu0 }
0x1652   :  { %v3795_v39 = vadd.f32 %v3794_v38, %v3793_v12 }
0x1654   :  { %v3582_v40 = vadd.f32 %v3795_v39, %v3698_v18 }
0x1656   :  { %3585 = vst [vmem:[#allocation22] sm:$0x3] %v3582_v40 }
0x1657   :  { %4315 = shalt.err (!%p4312_p4)
}
0x1658   :  { %3619 = dma.vmem_to_hbm [thread:$0]  %s3617_s0, 32, %s4946_s26, [#allocation4]  }
0x1659   :  { %4338 = dma.done.wait [#allocation4], 32  }
0x165a   :  { %4339 = vsyncadd [#allocation4], 4294967264 }
0x165b   :  { %4340 = dma.done.wait [#allocation24], 128  }
0x165c   :  { %4341 = vsyncadd [#allocation24], 4294967168 }
0x165d   :  { %3649 = vsyncpa [#allocation3], 1 }
0x165e   :  { %3650 = vsyncpa [#allocation6], 1 }
0x165f   :  { %3651 = vsyncpa [#allocation9], 1 }
0x1660   :  { %3652 = vsyncpa [#allocation12], 1 }
0x1661   :  { %3653 = vsyncpa [#allocation15], 1 }
0x1662   :  { %3654 = vsyncpa [#allocation18], 1 }
0x1663   :  { %3655 = vsyncpa [#allocation21], 1 }
0x1664   :  { %3656 = vsyncpa [#allocation4], 1 }
0x1665   :  { %3657 = vsyncpa [#allocation24], 1 }

</bundles_post_ra>
